<compile_context>
chip_gen: v7x
topology: tpu7x:2x2x1
jax: 0.10.0
libtpu: 0.0.40
codegen_flags: <defaults>
</compile_context>

<pallas_src>
import math
import functools
import numpy as np

import jax
import jax.numpy as jnp
from jax.experimental import pallas as pl
from jax.experimental.pallas import tpu as pltpu


# ----------------------------------------------------------------------------
# Host-side (numpy) interpolation / blur matrices — deterministic parameters.
# ----------------------------------------------------------------------------
def _cubic(x, a=-0.75):  # PyTorch/kornia bicubic kernel (Keys, a=-0.75)
    x = abs(x)
    if x <= 1.0:
        return (a + 2.0) * x ** 3 - (a + 3.0) * x ** 2 + 1.0
    if x < 2.0:
        return a * x ** 3 - 5.0 * a * x ** 2 + 8.0 * a * x - 4.0 * a
    return 0.0


def bicubic_crop_matrix(in_size, out_size, crop_start, crop_len):
    """(out_size, in_size) matrix: crop [start, start+len) then bicubic resize."""
    W = np.zeros((out_size, in_size), dtype=np.float32)
    for oi in range(out_size):
        src = crop_start + (oi + 0.5) * crop_len / out_size - 0.5
        fs = math.floor(src)
        taps, idxs = [], []
        for t in range(fs - 1, fs + 3):
            taps.append(_cubic(src - t))
            idxs.append(min(max(t, 0), in_size - 1))
        tot = sum(taps)
        for w, j in zip(taps, idxs):
            W[oi, j] += w / tot
    return W


def box_blur_matrix(n, k=3):
    """1-D normalized box blur with 'reflect' border as an (n, n) matrix."""
    B = np.zeros((n, n), dtype=np.float32)
    r = k // 2
    for i in range(n):
        for d in range(-r, r + 1):
            j = i + d
            if j < 0:
                j = -j
            if j >= n:
                j = 2 * n - 2 - j
            B[i, j] += 1.0 / k
    return B


def _choose_tb(batch, r):
    """Largest divisor of batch with TB*R <= ~256 lanes (MXU-N / lane-dense)."""
    # TODO(synk): on v7x (64 MiB VMEM) halve this target and set vmem_limit_bytes.
    target = max(1, 256 // r)
    tb = 1
    for d in range(1, batch + 1):
        if batch % d == 0 and d <= target:
            tb = d
    return tb


# ----------------------------------------------------------------------------
# Fused Pallas kernel: (crop1∘blur∘brightness) -> color jitter -> (crop2∘norm)
# One batch block of TB images per grid step; intermediates lane-dense
# (rows, TB*R); per-channel/per-image matmuls are short unrolled loops.
# ----------------------------------------------------------------------------
def _dino_fused_kernel(x_ref, ww1t_ref, wh1_ref, wh2_ref, ww2t_ref, pmat_ref,
                       o_ref, t1_ref, z_ref, *,
                       C, H, R, TB, contrast, saturation, hue):
    # x_ref   : (TB, C*H, W) bf16   batch block, channel rows stacked per image
    # ww1t_ref: (W, R)        bf16  (blur @ crop1-col)^T
    # wh1_ref : (R, H)        bf16  brightness * (blur @ crop1-row)
    # wh2_ref : (R, R)        bf16  crop2-row
    # ww2t_ref: (R, R)        bf16  (2 * crop2-col)^T   [Normalize scale fused]
    # pmat_ref: (TB*R, TB*R)  f32   block-diag(ones(R,R)/R): per-image col mean
    # o_ref   : (1, C*R, TB*R) f32  TB images side-by-side along lanes
    # t1_ref  : (C*H, TB*R)   bf16  scratch (stage A col-resample, lane-stacked)
    # z_ref   : (C*R, TB*R)   bf16  scratch (stage C row-resample)
    f32 = jnp.float32
    bf16 = jnp.bfloat16
    N = TB * R

    def c01(v):
        return jnp.clip(v, 0.0, 1.0)

    # ---- stage A1: per-image column resample (crop1 cols ∘ blur) ------------
    ww1t = ww1t_ref[...]
    for bi in range(TB):
        xb = x_ref[bi]                                              # (C*H, W)
        tb = jnp.dot(xb, ww1t, preferred_element_type=f32)          # (C*H, R)
        t1_ref[:, bi * R:(bi + 1) * R] = tb.astype(bf16)

    # ---- stage A2: per-channel row resample (crop1 rows ∘ blur ∘ brightness)
    wh1 = wh1_ref[...]
    chans = []
    for c in range(C):
        yc = jnp.dot(wh1, t1_ref[c * H:(c + 1) * H, :],
                     preferred_element_type=f32)                    # (R, N)
        chans.append(c01(yc))            # brightness folded into wh1; clamp
    r, g, b = chans

    # ---- stage B: ColorJitter (contrast -> saturation -> hue) ----------------
    # contrast: blend with PER-IMAGE mean of grayscale (block-averaging matmul
    # keeps images separated even though they share lanes).
    gray = 0.299 * r + 0.587 * g + 0.114 * b
    tmp = jnp.dot(gray, pmat_ref[...], preferred_element_type=f32)  # (R, N)
    mean_row = jnp.mean(tmp, axis=0, keepdims=True)                 # (1, N)
    mean_term = jnp.broadcast_to(mean_row * (1.0 - contrast), (R, N))
    r = c01(r * contrast + mean_term)
    g = c01(g * contrast + mean_term)
    b = c01(b * contrast + mean_term)

    # saturation: blend with per-pixel grayscale (folded: one mul+add/channel)
    gray2 = 0.299 * r + 0.587 * g + 0.114 * b
    gray_term = gray2 * (1.0 - saturation)
    r = c01(r * saturation + gray_term)
    g = c01(g * saturation + gray_term)
    b = c01(b * saturation + gray_term)

    # hue shift: RGB -> HSV -> +hue -> RGB (arithmetic form, EUP reciprocals)
    maxc = jnp.maximum(jnp.maximum(r, g), b)
    minc = jnp.minimum(jnp.minimum(r, g), b)
    v = maxc
    delta = maxc - minc
    inv_d = pl.reciprocal(jnp.where(delta <= 0.0, 1.0, delta), approx=True)
    s = delta * pl.reciprocal(jnp.where(maxc <= 0.0, 1.0, maxc), approx=True)
    rc = (maxc - r) * inv_d
    gc = (maxc - g) * inv_d
    bc = (maxc - b) * inv_d
    is_r = r == maxc
    is_g = jnp.logical_and(g == maxc, jnp.logical_not(is_r))
    h = jnp.where(is_r, bc - gc,
                  jnp.where(is_g, 2.0 + rc - bc, 4.0 + gc - rc))
    h = h * (1.0 / 6.0)
    h = h - jnp.floor(h)
    h = h + hue
    h6 = (h - jnp.floor(h)) * 6.0          # shifted hue in [0, 6)

    def hsv_channel(n):
        k = n + h6
        k = k - jnp.where(k >= 6.0, 6.0, 0.0)          # mod 6
        w = jnp.maximum(jnp.minimum(jnp.minimum(k, 4.0 - k), 1.0), 0.0)
        return c01(v * (1.0 - s * w))

    r = hsv_channel(5.0)
    g = hsv_channel(3.0)
    b = hsv_channel(1.0)

    # ---- stage C1: crop2 row resample per channel (lane-dense matmuls) -------
    wh2 = wh2_ref[...]
    z_ref[0 * R:1 * R, :] = jnp.dot(wh2, r.astype(bf16),
                                    preferred_element_type=f32).astype(bf16)
    z_ref[1 * R:2 * R, :] = jnp.dot(wh2, g.astype(bf16),
                                    preferred_element_type=f32).astype(bf16)
    z_ref[2 * R:3 * R, :] = jnp.dot(wh2, b.astype(bf16),
                                    preferred_element_type=f32).astype(bf16)

    # ---- stage C2: per-image column resample + Normalize shift ---------------
    ww2t = ww2t_ref[...]                   # already scaled by 2 (Normalize)
    for bi in range(TB):
        zi = z_ref[:, bi * R:(bi + 1) * R]                              # (C*R, R)
        oi = jnp.dot(zi, ww2t, preferred_element_type=f32) - 1.0        # (C*R, R)
        o_ref[0, :, bi * R:(bi + 1) * R] = oi.astype(o_ref.dtype)


# ----------------------------------------------------------------------------
# DINOAugment forward
# ----------------------------------------------------------------------------
def dino_augment(x, c_resolution):
    B, C, H, W = x.shape
    assert C == 3, "DINOAugment expects RGB input"
    R = c_resolution
    assert R % 8 == 0, "c_resolution must be a multiple of 8 (sublane tiles)"

    TB = _choose_tb(B, R)                  # images per grid step (lane blocking)
    NB = B // TB

    # ---- deterministic augmentation parameters ------------------------------
    # TODO(synk): kornia RNG sampling (crop boxes, jitter factors, blur gate,
    #             random jitter op order) replaced by fixed in-range parameters.
    brightness, contrast, saturation, hue = 1.03, 0.97, 1.02, 0.01

    crop_h1, crop_w1 = 0.8 * H, 0.8 * W      # area fraction 0.64 in [0.4, 1.0]
    y0_1, x0_1 = 2.0, 3.0
    Wh1 = bicubic_crop_matrix(H, R, y0_1, crop_h1)    # (R, H)
    Ww1 = bicubic_crop_matrix(W, R, x0_1, crop_w1)    # (R, W)

    # 3x3 box blur composed into the crop1 matrices (host-side numpy):
    # Bm @ (Wh1 @ x @ Ww1^T) @ Bm^T == (Bm@Wh1) @ x @ (Bm@Ww1)^T
    Bm = box_blur_matrix(R, 3)
    Wh1b = (brightness * (Bm @ Wh1)).astype(np.float32)   # brightness folded
    Ww1b = (Bm @ Ww1).astype(np.float32)

    side2 = math.sqrt(0.9) * R               # area fraction 0.90 in [0.75, 1.0]
    Wh2 = bicubic_crop_matrix(R, R, 0.4, side2)
    Ww2 = bicubic_crop_matrix(R, R, 0.3, side2)

    bf16 = jnp.bfloat16
    wh1 = jnp.asarray(Wh1b, dtype=bf16)                    # (R, H)
    ww1t = jnp.asarray(Ww1b.T, dtype=bf16)                 # (W, R)
    wh2 = jnp.asarray(Wh2, dtype=bf16)                     # (R, R)
    ww2t = jnp.asarray((2.0 * Ww2).T, dtype=bf16)          # (R, R) Normalize x2
    # per-image column-mean / broadcast matrix for contrast (block-diag 1/R)
    pmat = jnp.asarray(np.kron(np.eye(TB, dtype=np.float32),
                               np.full((R, R), 1.0 / R, dtype=np.float32)))

    x2 = x.astype(bf16).reshape(B, C * H, W)   # bf16 DMA, channel rows stacked

    kernel = functools.partial(_dino_fused_kernel, C=C, H=H, R=R, TB=TB,
                               contrast=contrast, saturation=saturation,
                               hue=hue)

    out = pl.pallas_call(
        kernel,
        out_shape=jax.ShapeDtypeStruct((NB, C * R, TB * R), x.dtype),
        grid=(NB,),
        in_specs=[
            pl.BlockSpec((TB, C * H, W), lambda i: (i, 0, 0)),
            pl.BlockSpec((W, R), lambda i: (0, 0)),
            pl.BlockSpec((R, H), lambda i: (0, 0)),
            pl.BlockSpec((R, R), lambda i: (0, 0)),
            pl.BlockSpec((R, R), lambda i: (0, 0)),
            pl.BlockSpec((TB * R, TB * R), lambda i: (0, 0)),
        ],
        out_specs=pl.BlockSpec((1, C * R, TB * R), lambda i: (i, 0, 0)),
        scratch_shapes=[
            pltpu.VMEM((C * H, TB * R), bf16),   # stage A col-resample buffer
            pltpu.VMEM((C * R, TB * R), bf16),   # stage C row-resample buffer
        ],
        compiler_params=pltpu.CompilerParams(
            dimension_semantics=("parallel",)),
    )(x2, ww1t, wh1, wh2, ww2t, pmat)

    # (NB, C*R, TB*R) -> (B, C, R, R): pure layout plumbing outside the kernel
    out = out.reshape(NB, C, R, TB, R).transpose(0, 3, 1, 2, 4)
    return out.reshape(B, C, R, R)


if __name__ == "__main__":
    B, C, H, W = 32, 3, 32, 32
    c_resolution = 16
    key = jax.random.PRNGKey(0)
    x = jax.random.uniform(key, (B, C, H, W), dtype=jnp.float32)

    y = dino_augment(x, c_resolution)
    y = jax.block_until_ready(y)

    assert y.shape == (B, C, c_resolution, c_resolution), y.shape
    assert y.dtype == jnp.float32
    assert bool(jnp.all(jnp.isfinite(y)))
    assert bool(jnp.all(y >= -1.5)) and bool(jnp.all(y <= 1.5))
    print("KERNEL_OK")
</pallas_src>

<mosaic_0001>
module attributes {stable_mosaic.version = 11 : i64} {
  func.func @_dino_fused_kernel(%arg0: i32, %arg1: memref<16x96x32xbf16, #tpu.memory_space<vmem>>, %arg2: memref<32x16xbf16, #tpu.memory_space<vmem>>, %arg3: memref<16x32xbf16, #tpu.memory_space<vmem>>, %arg4: memref<16x16xbf16, #tpu.memory_space<vmem>>, %arg5: memref<16x16xbf16, #tpu.memory_space<vmem>>, %arg6: memref<256x256xf32, #tpu.memory_space<vmem>>, %arg7: memref<1x48x256xf32, #tpu.memory_space<vmem>>, %arg8: memref<96x256xbf16, #tpu.memory_space<vmem>>, %arg9: memref<48x256xbf16, #tpu.memory_space<vmem>>) attributes {dimension_semantics = [#tpu.dimension_semantics<parallel>], iteration_bounds = array<i64: 2>, scalar_prefetch = 0 : i64, scratch_operands = 2 : i64, tpu.core_type = #tpu.core_type<tc>, window_params = [{transform_indices = @transform_0, window_bounds = array<i64: 16, 96, 32>}, {pipeline_mode = #tpu.pipeline_mode<synchronous>, transform_indices = @transform_1, window_bounds = array<i64: 32, 16>}, {pipeline_mode = #tpu.pipeline_mode<synchronous>, transform_indices = @transform_2, window_bounds = array<i64: 16, 32>}, {pipeline_mode = #tpu.pipeline_mode<synchronous>, transform_indices = @transform_3, window_bounds = array<i64: 16, 16>}, {pipeline_mode = #tpu.pipeline_mode<synchronous>, transform_indices = @transform_4, window_bounds = array<i64: 16, 16>}, {pipeline_mode = #tpu.pipeline_mode<synchronous>, transform_indices = @transform_5, window_bounds = array<i64: 256, 256>}, {transform_indices = @transform_6, window_bounds = array<i64: 1, 48, 256>}]} {
    %c0 = arith.constant 0 : index
    %c0_0 = arith.constant 0 : index
    %0 = vector.load %arg2[%c0, %c0_0] : memref<32x16xbf16, #tpu.memory_space<vmem>>, vector<32x16xbf16>
    %c0_1 = arith.constant 0 : index
    %c0_2 = arith.constant 0 : index
    %c0_3 = arith.constant 0 : index
    %1 = vector.load %arg1[%c0_1, %c0_2, %c0_3] : memref<16x96x32xbf16, #tpu.memory_space<vmem>>, vector<1x96x32xbf16>
    %2 = vector.shape_cast %1 : vector<1x96x32xbf16> to vector<96x32xbf16>
    %cst = arith.constant dense<0.000000e+00> : vector<96x16xf32>
    %3 = tpu.matmul %2, %0, %cst {dimension_numbers = #tpu.dot_dimension_numbers<[1], [0], [0], [1], [0, 0, 1, 1], [], []>} : vector<96x32xbf16>, vector<32x16xbf16>, vector<96x16xf32> -> vector<96x16xf32>
    %4 = arith.truncf %3 : vector<96x16xf32> to vector<96x16xbf16>
    %c0_4 = arith.constant 0 : index
    %c0_5 = arith.constant 0 : index
    %5 = vector.load %arg8[%c0_4, %c0_5] : memref<96x256xbf16, #tpu.memory_space<vmem>>, vector<96x16xbf16>
    tpu.vector_store %arg8[%c0_4, %c0_5], %4 {strides = array<i32>} : memref<96x256xbf16, #tpu.memory_space<vmem>>, vector<96x16xbf16>,
    %c1 = arith.constant 1 : index
    %c0_6 = arith.constant 0 : index
    %c0_7 = arith.constant 0 : index
    %6 = vector.load %arg1[%c1, %c0_6, %c0_7] : memref<16x96x32xbf16, #tpu.memory_space<vmem>>, vector<1x96x32xbf16>
    %7 = vector.shape_cast %6 : vector<1x96x32xbf16> to vector<96x32xbf16>
    %cst_8 = arith.constant dense<0.000000e+00> : vector<96x16xf32>
    %8 = tpu.matmul %7, %0, %cst_8 {dimension_numbers = #tpu.dot_dimension_numbers<[1], [0], [0], [1], [0, 0, 1, 1], [], []>} : vector<96x32xbf16>, vector<32x16xbf16>, vector<96x16xf32> -> vector<96x16xf32>
    %9 = arith.truncf %8 : vector<96x16xf32> to vector<96x16xbf16>
    %c0_9 = arith.constant 0 : index
    %c16 = arith.constant 16 : index
    %10 = vector.load %arg8[%c0_9, %c16] : memref<96x256xbf16, #tpu.memory_space<vmem>>, vector<96x16xbf16>
    tpu.vector_store %arg8[%c0_9, %c16], %9 {strides = array<i32>} : memref<96x256xbf16, #tpu.memory_space<vmem>>, vector<96x16xbf16>,
    %c2 = arith.constant 2 : index
    %c0_10 = arith.constant 0 : index
    %c0_11 = arith.constant 0 : index
    %11 = vector.load %arg1[%c2, %c0_10, %c0_11] : memref<16x96x32xbf16, #tpu.memory_space<vmem>>, vector<1x96x32xbf16>
    %12 = vector.shape_cast %11 : vector<1x96x32xbf16> to vector<96x32xbf16>
    %cst_12 = arith.constant dense<0.000000e+00> : vector<96x16xf32>
    %13 = tpu.matmul %12, %0, %cst_12 {dimension_numbers = #tpu.dot_dimension_numbers<[1], [0], [0], [1], [0, 0, 1, 1], [], []>} : vector<96x32xbf16>, vector<32x16xbf16>, vector<96x16xf32> -> vector<96x16xf32>
    %14 = arith.truncf %13 : vector<96x16xf32> to vector<96x16xbf16>
    %c0_13 = arith.constant 0 : index
    %c32 = arith.constant 32 : index
    %15 = vector.load %arg8[%c0_13, %c32] : memref<96x256xbf16, #tpu.memory_space<vmem>>, vector<96x16xbf16>
    tpu.vector_store %arg8[%c0_13, %c32], %14 {strides = array<i32>} : memref<96x256xbf16, #tpu.memory_space<vmem>>, vector<96x16xbf16>,
    %c3 = arith.constant 3 : index
    %c0_14 = arith.constant 0 : index
    %c0_15 = arith.constant 0 : index
    %16 = vector.load %arg1[%c3, %c0_14, %c0_15] : memref<16x96x32xbf16, #tpu.memory_space<vmem>>, vector<1x96x32xbf16>
    %17 = vector.shape_cast %16 : vector<1x96x32xbf16> to vector<96x32xbf16>
    %cst_16 = arith.constant dense<0.000000e+00> : vector<96x16xf32>
    %18 = tpu.matmul %17, %0, %cst_16 {dimension_numbers = #tpu.dot_dimension_numbers<[1], [0], [0], [1], [0, 0, 1, 1], [], []>} : vector<96x32xbf16>, vector<32x16xbf16>, vector<96x16xf32> -> vector<96x16xf32>
    %19 = arith.truncf %18 : vector<96x16xf32> to vector<96x16xbf16>
    %c0_17 = arith.constant 0 : index
    %c48 = arith.constant 48 : index
    %20 = vector.load %arg8[%c0_17, %c48] : memref<96x256xbf16, #tpu.memory_space<vmem>>, vector<96x16xbf16>
    tpu.vector_store %arg8[%c0_17, %c48], %19 {strides = array<i32>} : memref<96x256xbf16, #tpu.memory_space<vmem>>, vector<96x16xbf16>,
    %c4 = arith.constant 4 : index
    %c0_18 = arith.constant 0 : index
    %c0_19 = arith.constant 0 : index
    %21 = vector.load %arg1[%c4, %c0_18, %c0_19] : memref<16x96x32xbf16, #tpu.memory_space<vmem>>, vector<1x96x32xbf16>
    %22 = vector.shape_cast %21 : vector<1x96x32xbf16> to vector<96x32xbf16>
    %cst_20 = arith.constant dense<0.000000e+00> : vector<96x16xf32>
    %23 = tpu.matmul %22, %0, %cst_20 {dimension_numbers = #tpu.dot_dimension_numbers<[1], [0], [0], [1], [0, 0, 1, 1], [], []>} : vector<96x32xbf16>, vector<32x16xbf16>, vector<96x16xf32> -> vector<96x16xf32>
    %24 = arith.truncf %23 : vector<96x16xf32> to vector<96x16xbf16>
    %c0_21 = arith.constant 0 : index
    %c64 = arith.constant 64 : index
    %25 = vector.load %arg8[%c0_21, %c64] : memref<96x256xbf16, #tpu.memory_space<vmem>>, vector<96x16xbf16>
    tpu.vector_store %arg8[%c0_21, %c64], %24 {strides = array<i32>} : memref<96x256xbf16, #tpu.memory_space<vmem>>, vector<96x16xbf16>,
    %c5 = arith.constant 5 : index
    %c0_22 = arith.constant 0 : index
    %c0_23 = arith.constant 0 : index
    %26 = vector.load %arg1[%c5, %c0_22, %c0_23] : memref<16x96x32xbf16, #tpu.memory_space<vmem>>, vector<1x96x32xbf16>
    %27 = vector.shape_cast %26 : vector<1x96x32xbf16> to vector<96x32xbf16>
    %cst_24 = arith.constant dense<0.000000e+00> : vector<96x16xf32>
    %28 = tpu.matmul %27, %0, %cst_24 {dimension_numbers = #tpu.dot_dimension_numbers<[1], [0], [0], [1], [0, 0, 1, 1], [], []>} : vector<96x32xbf16>, vector<32x16xbf16>, vector<96x16xf32> -> vector<96x16xf32>
    %29 = arith.truncf %28 : vector<96x16xf32> to vector<96x16xbf16>
    %c0_25 = arith.constant 0 : index
    %c80 = arith.constant 80 : index
    %30 = vector.load %arg8[%c0_25, %c80] : memref<96x256xbf16, #tpu.memory_space<vmem>>, vector<96x16xbf16>
    tpu.vector_store %arg8[%c0_25, %c80], %29 {strides = array<i32>} : memref<96x256xbf16, #tpu.memory_space<vmem>>, vector<96x16xbf16>,
    %c6 = arith.constant 6 : index
    %c0_26 = arith.constant 0 : index
    %c0_27 = arith.constant 0 : index
    %31 = vector.load %arg1[%c6, %c0_26, %c0_27] : memref<16x96x32xbf16, #tpu.memory_space<vmem>>, vector<1x96x32xbf16>
    %32 = vector.shape_cast %31 : vector<1x96x32xbf16> to vector<96x32xbf16>
    %cst_28 = arith.constant dense<0.000000e+00> : vector<96x16xf32>
    %33 = tpu.matmul %32, %0, %cst_28 {dimension_numbers = #tpu.dot_dimension_numbers<[1], [0], [0], [1], [0, 0, 1, 1], [], []>} : vector<96x32xbf16>, vector<32x16xbf16>, vector<96x16xf32> -> vector<96x16xf32>
    %34 = arith.truncf %33 : vector<96x16xf32> to vector<96x16xbf16>
    %c0_29 = arith.constant 0 : index
    %c96 = arith.constant 96 : index
    %35 = vector.load %arg8[%c0_29, %c96] : memref<96x256xbf16, #tpu.memory_space<vmem>>, vector<96x16xbf16>
    tpu.vector_store %arg8[%c0_29, %c96], %34 {strides = array<i32>} : memref<96x256xbf16, #tpu.memory_space<vmem>>, vector<96x16xbf16>,
    %c7 = arith.constant 7 : index
    %c0_30 = arith.constant 0 : index
    %c0_31 = arith.constant 0 : index
    %36 = vector.load %arg1[%c7, %c0_30, %c0_31] : memref<16x96x32xbf16, #tpu.memory_space<vmem>>, vector<1x96x32xbf16>
    %37 = vector.shape_cast %36 : vector<1x96x32xbf16> to vector<96x32xbf16>
    %cst_32 = arith.constant dense<0.000000e+00> : vector<96x16xf32>
    %38 = tpu.matmul %37, %0, %cst_32 {dimension_numbers = #tpu.dot_dimension_numbers<[1], [0], [0], [1], [0, 0, 1, 1], [], []>} : vector<96x32xbf16>, vector<32x16xbf16>, vector<96x16xf32> -> vector<96x16xf32>
    %39 = arith.truncf %38 : vector<96x16xf32> to vector<96x16xbf16>
    %c0_33 = arith.constant 0 : index
    %c112 = arith.constant 112 : index
    %40 = vector.load %arg8[%c0_33, %c112] : memref<96x256xbf16, #tpu.memory_space<vmem>>, vector<96x16xbf16>
    tpu.vector_store %arg8[%c0_33, %c112], %39 {strides = array<i32>} : memref<96x256xbf16, #tpu.memory_space<vmem>>, vector<96x16xbf16>,
    %c8 = arith.constant 8 : index
    %c0_34 = arith.constant 0 : index
    %c0_35 = arith.constant 0 : index
    %41 = vector.load %arg1[%c8, %c0_34, %c0_35] : memref<16x96x32xbf16, #tpu.memory_space<vmem>>, vector<1x96x32xbf16>
    %42 = vector.shape_cast %41 : vector<1x96x32xbf16> to vector<96x32xbf16>
    %cst_36 = arith.constant dense<0.000000e+00> : vector<96x16xf32>
    %43 = tpu.matmul %42, %0, %cst_36 {dimension_numbers = #tpu.dot_dimension_numbers<[1], [0], [0], [1], [0, 0, 1, 1], [], []>} : vector<96x32xbf16>, vector<32x16xbf16>, vector<96x16xf32> -> vector<96x16xf32>
    %44 = arith.truncf %43 : vector<96x16xf32> to vector<96x16xbf16>
    %c0_37 = arith.constant 0 : index
    %c128 = arith.constant 128 : index
    %45 = vector.load %arg8[%c0_37, %c128] : memref<96x256xbf16, #tpu.memory_space<vmem>>, vector<96x16xbf16>
    tpu.vector_store %arg8[%c0_37, %c128], %44 {strides = array<i32>} : memref<96x256xbf16, #tpu.memory_space<vmem>>, vector<96x16xbf16>,
    %c9 = arith.constant 9 : index
    %c0_38 = arith.constant 0 : index
    %c0_39 = arith.constant 0 : index
    %46 = vector.load %arg1[%c9, %c0_38, %c0_39] : memref<16x96x32xbf16, #tpu.memory_space<vmem>>, vector<1x96x32xbf16>
    %47 = vector.shape_cast %46 : vector<1x96x32xbf16> to vector<96x32xbf16>
    %cst_40 = arith.constant dense<0.000000e+00> : vector<96x16xf32>
    %48 = tpu.matmul %47, %0, %cst_40 {dimension_numbers = #tpu.dot_dimension_numbers<[1], [0], [0], [1], [0, 0, 1, 1], [], []>} : vector<96x32xbf16>, vector<32x16xbf16>, vector<96x16xf32> -> vector<96x16xf32>
    %49 = arith.truncf %48 : vector<96x16xf32> to vector<96x16xbf16>
    %c0_41 = arith.constant 0 : index
    %c144 = arith.constant 144 : index
    %50 = vector.load %arg8[%c0_41, %c144] : memref<96x256xbf16, #tpu.memory_space<vmem>>, vector<96x16xbf16>
    tpu.vector_store %arg8[%c0_41, %c144], %49 {strides = array<i32>} : memref<96x256xbf16, #tpu.memory_space<vmem>>, vector<96x16xbf16>,
    %c10 = arith.constant 10 : index
    %c0_42 = arith.constant 0 : index
    %c0_43 = arith.constant 0 : index
    %51 = vector.load %arg1[%c10, %c0_42, %c0_43] : memref<16x96x32xbf16, #tpu.memory_space<vmem>>, vector<1x96x32xbf16>
    %52 = vector.shape_cast %51 : vector<1x96x32xbf16> to vector<96x32xbf16>
    %cst_44 = arith.constant dense<0.000000e+00> : vector<96x16xf32>
    %53 = tpu.matmul %52, %0, %cst_44 {dimension_numbers = #tpu.dot_dimension_numbers<[1], [0], [0], [1], [0, 0, 1, 1], [], []>} : vector<96x32xbf16>, vector<32x16xbf16>, vector<96x16xf32> -> vector<96x16xf32>
    %54 = arith.truncf %53 : vector<96x16xf32> to vector<96x16xbf16>
    %c0_45 = arith.constant 0 : index
    %c160 = arith.constant 160 : index
    %55 = vector.load %arg8[%c0_45, %c160] : memref<96x256xbf16, #tpu.memory_space<vmem>>, vector<96x16xbf16>
    tpu.vector_store %arg8[%c0_45, %c160], %54 {strides = array<i32>} : memref<96x256xbf16, #tpu.memory_space<vmem>>, vector<96x16xbf16>,
    %c11 = arith.constant 11 : index
    %c0_46 = arith.constant 0 : index
    %c0_47 = arith.constant 0 : index
    %56 = vector.load %arg1[%c11, %c0_46, %c0_47] : memref<16x96x32xbf16, #tpu.memory_space<vmem>>, vector<1x96x32xbf16>
    %57 = vector.shape_cast %56 : vector<1x96x32xbf16> to vector<96x32xbf16>
    %cst_48 = arith.constant dense<0.000000e+00> : vector<96x16xf32>
    %58 = tpu.matmul %57, %0, %cst_48 {dimension_numbers = #tpu.dot_dimension_numbers<[1], [0], [0], [1], [0, 0, 1, 1], [], []>} : vector<96x32xbf16>, vector<32x16xbf16>, vector<96x16xf32> -> vector<96x16xf32>
    %59 = arith.truncf %58 : vector<96x16xf32> to vector<96x16xbf16>
    %c0_49 = arith.constant 0 : index
    %c176 = arith.constant 176 : index
    %60 = vector.load %arg8[%c0_49, %c176] : memref<96x256xbf16, #tpu.memory_space<vmem>>, vector<96x16xbf16>
    tpu.vector_store %arg8[%c0_49, %c176], %59 {strides = array<i32>} : memref<96x256xbf16, #tpu.memory_space<vmem>>, vector<96x16xbf16>,
    %c12 = arith.constant 12 : index
    %c0_50 = arith.constant 0 : index
    %c0_51 = arith.constant 0 : index
    %61 = vector.load %arg1[%c12, %c0_50, %c0_51] : memref<16x96x32xbf16, #tpu.memory_space<vmem>>, vector<1x96x32xbf16>
    %62 = vector.shape_cast %61 : vector<1x96x32xbf16> to vector<96x32xbf16>
    %cst_52 = arith.constant dense<0.000000e+00> : vector<96x16xf32>
    %63 = tpu.matmul %62, %0, %cst_52 {dimension_numbers = #tpu.dot_dimension_numbers<[1], [0], [0], [1], [0, 0, 1, 1], [], []>} : vector<96x32xbf16>, vector<32x16xbf16>, vector<96x16xf32> -> vector<96x16xf32>
    %64 = arith.truncf %63 : vector<96x16xf32> to vector<96x16xbf16>
    %c0_53 = arith.constant 0 : index
    %c192 = arith.constant 192 : index
    %65 = vector.load %arg8[%c0_53, %c192] : memref<96x256xbf16, #tpu.memory_space<vmem>>, vector<96x16xbf16>
    tpu.vector_store %arg8[%c0_53, %c192], %64 {strides = array<i32>} : memref<96x256xbf16, #tpu.memory_space<vmem>>, vector<96x16xbf16>,
    %c13 = arith.constant 13 : index
    %c0_54 = arith.constant 0 : index
    %c0_55 = arith.constant 0 : index
    %66 = vector.load %arg1[%c13, %c0_54, %c0_55] : memref<16x96x32xbf16, #tpu.memory_space<vmem>>, vector<1x96x32xbf16>
    %67 = vector.shape_cast %66 : vector<1x96x32xbf16> to vector<96x32xbf16>
    %cst_56 = arith.constant dense<0.000000e+00> : vector<96x16xf32>
    %68 = tpu.matmul %67, %0, %cst_56 {dimension_numbers = #tpu.dot_dimension_numbers<[1], [0], [0], [1], [0, 0, 1, 1], [], []>} : vector<96x32xbf16>, vector<32x16xbf16>, vector<96x16xf32> -> vector<96x16xf32>
    %69 = arith.truncf %68 : vector<96x16xf32> to vector<96x16xbf16>
    %c0_57 = arith.constant 0 : index
    %c208 = arith.constant 208 : index
    %70 = vector.load %arg8[%c0_57, %c208] : memref<96x256xbf16, #tpu.memory_space<vmem>>, vector<96x16xbf16>
    tpu.vector_store %arg8[%c0_57, %c208], %69 {strides = array<i32>} : memref<96x256xbf16, #tpu.memory_space<vmem>>, vector<96x16xbf16>,
    %c14 = arith.constant 14 : index
    %c0_58 = arith.constant 0 : index
    %c0_59 = arith.constant 0 : index
    %71 = vector.load %arg1[%c14, %c0_58, %c0_59] : memref<16x96x32xbf16, #tpu.memory_space<vmem>>, vector<1x96x32xbf16>
    %72 = vector.shape_cast %71 : vector<1x96x32xbf16> to vector<96x32xbf16>
    %cst_60 = arith.constant dense<0.000000e+00> : vector<96x16xf32>
    %73 = tpu.matmul %72, %0, %cst_60 {dimension_numbers = #tpu.dot_dimension_numbers<[1], [0], [0], [1], [0, 0, 1, 1], [], []>} : vector<96x32xbf16>, vector<32x16xbf16>, vector<96x16xf32> -> vector<96x16xf32>
    %74 = arith.truncf %73 : vector<96x16xf32> to vector<96x16xbf16>
    %c0_61 = arith.constant 0 : index
    %c224 = arith.constant 224 : index
    %75 = vector.load %arg8[%c0_61, %c224] : memref<96x256xbf16, #tpu.memory_space<vmem>>, vector<96x16xbf16>
    tpu.vector_store %arg8[%c0_61, %c224], %74 {strides = array<i32>} : memref<96x256xbf16, #tpu.memory_space<vmem>>, vector<96x16xbf16>,
    %c15 = arith.constant 15 : index
    %c0_62 = arith.constant 0 : index
    %c0_63 = arith.constant 0 : index
    %76 = vector.load %arg1[%c15, %c0_62, %c0_63] : memref<16x96x32xbf16, #tpu.memory_space<vmem>>, vector<1x96x32xbf16>
    %77 = vector.shape_cast %76 : vector<1x96x32xbf16> to vector<96x32xbf16>
    %cst_64 = arith.constant dense<0.000000e+00> : vector<96x16xf32>
    %78 = tpu.matmul %77, %0, %cst_64 {dimension_numbers = #tpu.dot_dimension_numbers<[1], [0], [0], [1], [0, 0, 1, 1], [], []>} : vector<96x32xbf16>, vector<32x16xbf16>, vector<96x16xf32> -> vector<96x16xf32>
    %79 = arith.truncf %78 : vector<96x16xf32> to vector<96x16xbf16>
    %c0_65 = arith.constant 0 : index
    %c240 = arith.constant 240 : index
    %80 = vector.load %arg8[%c0_65, %c240] : memref<96x256xbf16, #tpu.memory_space<vmem>>, vector<96x16xbf16>
    tpu.vector_store %arg8[%c0_65, %c240], %79 {strides = array<i32>} : memref<96x256xbf16, #tpu.memory_space<vmem>>, vector<96x16xbf16>,
    %c0_66 = arith.constant 0 : index
    %c0_67 = arith.constant 0 : index
    %81 = vector.load %arg3[%c0_66, %c0_67] : memref<16x32xbf16, #tpu.memory_space<vmem>>, vector<16x32xbf16>
    %c0_68 = arith.constant 0 : index
    %c0_69 = arith.constant 0 : index
    %82 = vector.load %arg8[%c0_68, %c0_69] : memref<96x256xbf16, #tpu.memory_space<vmem>>, vector<32x256xbf16>
    %cst_70 = arith.constant dense<0.000000e+00> : vector<16x256xf32>
    %83 = tpu.matmul %81, %82, %cst_70 {dimension_numbers = #tpu.dot_dimension_numbers<[1], [0], [0], [1], [0, 0, 1, 1], [], []>} : vector<16x32xbf16>, vector<32x256xbf16>, vector<16x256xf32> -> vector<16x256xf32>
    %cst_71 = arith.constant 0.000000e+00 : f32
    %cst_72 = arith.constant 1.000000e+00 : f32
    %84 = vector.broadcast %cst_71 : f32 to vector<16x256xf32>
    %85 = arith.maximumf %84, %83 : vector<16x256xf32>
    %86 = vector.broadcast %cst_72 : f32 to vector<16x256xf32>
    %87 = arith.minimumf %86, %85 : vector<16x256xf32>
    %c32_73 = arith.constant 32 : index
    %c0_74 = arith.constant 0 : index
    %88 = vector.load %arg8[%c32_73, %c0_74] : memref<96x256xbf16, #tpu.memory_space<vmem>>, vector<32x256xbf16>
    %cst_75 = arith.constant dense<0.000000e+00> : vector<16x256xf32>
    %89 = tpu.matmul %81, %88, %cst_75 {dimension_numbers = #tpu.dot_dimension_numbers<[1], [0], [0], [1], [0, 0, 1, 1], [], []>} : vector<16x32xbf16>, vector<32x256xbf16>, vector<16x256xf32> -> vector<16x256xf32>
    %cst_76 = arith.constant 0.000000e+00 : f32
    %cst_77 = arith.constant 1.000000e+00 : f32
    %90 = vector.broadcast %cst_76 : f32 to vector<16x256xf32>
    %91 = arith.maximumf %90, %89 : vector<16x256xf32>
    %92 = vector.broadcast %cst_77 : f32 to vector<16x256xf32>
    %93 = arith.minimumf %92, %91 : vector<16x256xf32>
    %c64_78 = arith.constant 64 : index
    %c0_79 = arith.constant 0 : index
    %94 = vector.load %arg8[%c64_78, %c0_79] : memref<96x256xbf16, #tpu.memory_space<vmem>>, vector<32x256xbf16>
    %cst_80 = arith.constant dense<0.000000e+00> : vector<16x256xf32>
    %95 = tpu.matmul %81, %94, %cst_80 {dimension_numbers = #tpu.dot_dimension_numbers<[1], [0], [0], [1], [0, 0, 1, 1], [], []>} : vector<16x32xbf16>, vector<32x256xbf16>, vector<16x256xf32> -> vector<16x256xf32>
    %cst_81 = arith.constant 0.000000e+00 : f32
    %cst_82 = arith.constant 1.000000e+00 : f32
    %96 = vector.broadcast %cst_81 : f32 to vector<16x256xf32>
    %97 = arith.maximumf %96, %95 : vector<16x256xf32>
    %98 = vector.broadcast %cst_82 : f32 to vector<16x256xf32>
    %99 = arith.minimumf %98, %97 : vector<16x256xf32>
    %cst_83 = arith.constant 2.990000e-01 : f32
    %100 = vector.broadcast %cst_83 : f32 to vector<16x256xf32>
    %101 = arith.mulf %100, %87 : vector<16x256xf32>
    %cst_84 = arith.constant 5.870000e-01 : f32
    %102 = vector.broadcast %cst_84 : f32 to vector<16x256xf32>
    %103 = arith.mulf %102, %93 : vector<16x256xf32>
    %104 = arith.addf %101, %103 : vector<16x256xf32>
    %cst_85 = arith.constant 1.140000e-01 : f32
    %105 = vector.broadcast %cst_85 : f32 to vector<16x256xf32>
    %106 = arith.mulf %105, %99 : vector<16x256xf32>
    %107 = arith.addf %104, %106 : vector<16x256xf32>
    %c0_86 = arith.constant 0 : index
    %c0_87 = arith.constant 0 : index
    %108 = vector.load %arg6[%c0_86, %c0_87] : memref<256x256xf32, #tpu.memory_space<vmem>>, vector<256x256xf32>
    %cst_88 = arith.constant dense<0.000000e+00> : vector<16x256xf32>
    %109 = tpu.matmul %107, %108, %cst_88 {dimension_numbers = #tpu.dot_dimension_numbers<[1], [0], [0], [1], [0, 0, 1, 1], [], []>} : vector<16x256xf32>, vector<256x256xf32>, vector<16x256xf32> -> vector<16x256xf32>
    %cst_89 = arith.constant dense<0.000000e+00> : vector<256xf32>
    %110 = vector.multi_reduction <add>, %109, %cst_89 [0] : vector<16x256xf32> to vector<256xf32>
    %111 = vector.shape_cast %110 : vector<256xf32> to vector<1x256xf32>
    %cst_90 = arith.constant 1.600000e+01 : f32
    %112 = vector.broadcast %cst_90 : f32 to vector<1x256xf32>
    %113 = arith.divf %111, %112 : vector<1x256xf32>
    %cst_91 = arith.constant 3.000000e-02 : f32
    %114 = vector.broadcast %cst_91 : f32 to vector<1x256xf32>
    %115 = arith.mulf %113, %114 : vector<1x256xf32>
    %116 = vector.shape_cast %115 : vector<1x256xf32> to vector<1x256xf32>
    %117 = vector.broadcast %116 : vector<1x256xf32> to vector<16x256xf32>
    %cst_92 = arith.constant 9.700000e-01 : f32
    %118 = vector.broadcast %cst_92 : f32 to vector<16x256xf32>
    %119 = arith.mulf %87, %118 : vector<16x256xf32>
    %120 = arith.addf %119, %117 : vector<16x256xf32>
    %cst_93 = arith.constant 0.000000e+00 : f32
    %cst_94 = arith.constant 1.000000e+00 : f32
    %121 = vector.broadcast %cst_93 : f32 to vector<16x256xf32>
    %122 = arith.maximumf %121, %120 : vector<16x256xf32>
    %123 = vector.broadcast %cst_94 : f32 to vector<16x256xf32>
    %124 = arith.minimumf %123, %122 : vector<16x256xf32>
    %cst_95 = arith.constant 9.700000e-01 : f32
    %125 = vector.broadcast %cst_95 : f32 to vector<16x256xf32>
    %126 = arith.mulf %93, %125 : vector<16x256xf32>
    %127 = arith.addf %126, %117 : vector<16x256xf32>
    %cst_96 = arith.constant 0.000000e+00 : f32
    %cst_97 = arith.constant 1.000000e+00 : f32
    %128 = vector.broadcast %cst_96 : f32 to vector<16x256xf32>
    %129 = arith.maximumf %128, %127 : vector<16x256xf32>
    %130 = vector.broadcast %cst_97 : f32 to vector<16x256xf32>
    %131 = arith.minimumf %130, %129 : vector<16x256xf32>
    %cst_98 = arith.constant 9.700000e-01 : f32
    %132 = vector.broadcast %cst_98 : f32 to vector<16x256xf32>
    %133 = arith.mulf %99, %132 : vector<16x256xf32>
    %134 = arith.addf %133, %117 : vector<16x256xf32>
    %cst_99 = arith.constant 0.000000e+00 : f32
    %cst_100 = arith.constant 1.000000e+00 : f32
    %135 = vector.broadcast %cst_99 : f32 to vector<16x256xf32>
    %136 = arith.maximumf %135, %134 : vector<16x256xf32>
    %137 = vector.broadcast %cst_100 : f32 to vector<16x256xf32>
    %138 = arith.minimumf %137, %136 : vector<16x256xf32>
    %cst_101 = arith.constant 2.990000e-01 : f32
    %139 = vector.broadcast %cst_101 : f32 to vector<16x256xf32>
    %140 = arith.mulf %139, %124 : vector<16x256xf32>
    %cst_102 = arith.constant 5.870000e-01 : f32
    %141 = vector.broadcast %cst_102 : f32 to vector<16x256xf32>
    %142 = arith.mulf %141, %131 : vector<16x256xf32>
    %143 = arith.addf %140, %142 : vector<16x256xf32>
    %cst_103 = arith.constant 1.140000e-01 : f32
    %144 = vector.broadcast %cst_103 : f32 to vector<16x256xf32>
    %145 = arith.mulf %144, %138 : vector<16x256xf32>
    %146 = arith.addf %143, %145 : vector<16x256xf32>
    %cst_104 = arith.constant -2.000000e-02 : f32
    %147 = vector.broadcast %cst_104 : f32 to vector<16x256xf32>
    %148 = arith.mulf %146, %147 : vector<16x256xf32>
    %cst_105 = arith.constant 1.020000e+00 : f32
    %149 = vector.broadcast %cst_105 : f32 to vector<16x256xf32>
    %150 = arith.mulf %124, %149 : vector<16x256xf32>
    %151 = arith.addf %150, %148 : vector<16x256xf32>
    %cst_106 = arith.constant 0.000000e+00 : f32
    %cst_107 = arith.constant 1.000000e+00 : f32
    %152 = vector.broadcast %cst_106 : f32 to vector<16x256xf32>
    %153 = arith.maximumf %152, %151 : vector<16x256xf32>
    %154 = vector.broadcast %cst_107 : f32 to vector<16x256xf32>
    %155 = arith.minimumf %154, %153 : vector<16x256xf32>
    %cst_108 = arith.constant 1.020000e+00 : f32
    %156 = vector.broadcast %cst_108 : f32 to vector<16x256xf32>
    %157 = arith.mulf %131, %156 : vector<16x256xf32>
    %158 = arith.addf %157, %148 : vector<16x256xf32>
    %cst_109 = arith.constant 0.000000e+00 : f32
    %cst_110 = arith.constant 1.000000e+00 : f32
    %159 = vector.broadcast %cst_109 : f32 to vector<16x256xf32>
    %160 = arith.maximumf %159, %158 : vector<16x256xf32>
    %161 = vector.broadcast %cst_110 : f32 to vector<16x256xf32>
    %162 = arith.minimumf %161, %160 : vector<16x256xf32>
    %cst_111 = arith.constant 1.020000e+00 : f32
    %163 = vector.broadcast %cst_111 : f32 to vector<16x256xf32>
    %164 = arith.mulf %138, %163 : vector<16x256xf32>
    %165 = arith.addf %164, %148 : vector<16x256xf32>
    %cst_112 = arith.constant 0.000000e+00 : f32
    %cst_113 = arith.constant 1.000000e+00 : f32
    %166 = vector.broadcast %cst_112 : f32 to vector<16x256xf32>
    %167 = arith.maximumf %166, %165 : vector<16x256xf32>
    %168 = vector.broadcast %cst_113 : f32 to vector<16x256xf32>
    %169 = arith.minimumf %168, %167 : vector<16x256xf32>
    %170 = arith.maximumf %155, %162 : vector<16x256xf32>
    %171 = arith.maximumf %170, %169 : vector<16x256xf32>
    %172 = arith.minimumf %155, %162 : vector<16x256xf32>
    %173 = arith.minimumf %172, %169 : vector<16x256xf32>
    %174 = arith.subf %171, %173 : vector<16x256xf32>
    %cst_114 = arith.constant 0.000000e+00 : f32
    %175 = vector.broadcast %cst_114 : f32 to vector<16x256xf32>
    %176 = arith.cmpf ole, %174, %175 : vector<16x256xf32>
    %cst_115 = arith.constant 1.000000e+00 : f32
    %177 = vector.broadcast %cst_115 : f32 to vector<16x256xf32>
    %178 = arith.select %176, %177, %174 : vector<16x256xi1>, vector<16x256xf32>
    %179 = tpu.reciprocal %178 {approx = true} : vector<16x256xf32> -> vector<16x256xf32>
    %cst_116 = arith.constant 0.000000e+00 : f32
    %180 = vector.broadcast %cst_116 : f32 to vector<16x256xf32>
    %181 = arith.cmpf ole, %171, %180 : vector<16x256xf32>
    %cst_117 = arith.constant 1.000000e+00 : f32
    %182 = vector.broadcast %cst_117 : f32 to vector<16x256xf32>
    %183 = arith.select %181, %182, %171 : vector<16x256xi1>, vector<16x256xf32>
    %184 = tpu.reciprocal %183 {approx = true} : vector<16x256xf32> -> vector<16x256xf32>
    %185 = arith.mulf %174, %184 : vector<16x256xf32>
    %186 = arith.subf %171, %155 : vector<16x256xf32>
    %187 = arith.mulf %186, %179 : vector<16x256xf32>
    %188 = arith.subf %171, %162 : vector<16x256xf32>
    %189 = arith.mulf %188, %179 : vector<16x256xf32>
    %190 = arith.subf %171, %169 : vector<16x256xf32>
    %191 = arith.mulf %190, %179 : vector<16x256xf32>
    %192 = arith.cmpf oeq, %155, %171 : vector<16x256xf32>
    %193 = arith.cmpf oeq, %162, %171 : vector<16x256xf32>
    %cst_118 = arith.constant dense<true> : vector<16x256xi1>
    %194 = arith.xori %192, %cst_118 : vector<16x256xi1>
    %195 = arith.andi %193, %194 : vector<16x256xi1>
    %196 = arith.subf %191, %189 : vector<16x256xf32>
    %cst_119 = arith.constant 2.000000e+00 : f32
    %197 = vector.broadcast %cst_119 : f32 to vector<16x256xf32>
    %198 = arith.addf %197, %187 : vector<16x256xf32>
    %199 = arith.subf %198, %191 : vector<16x256xf32>
    %cst_120 = arith.constant 4.000000e+00 : f32
    %200 = vector.broadcast %cst_120 : f32 to vector<16x256xf32>
    %201 = arith.addf %200, %189 : vector<16x256xf32>
    %202 = arith.subf %201, %187 : vector<16x256xf32>
    %203 = arith.select %195, %199, %202 : vector<16x256xi1>, vector<16x256xf32>
    %204 = arith.select %192, %196, %203 : vector<16x256xi1>, vector<16x256xf32>
    %cst_121 = arith.constant 0.166666672 : f32
    %205 = vector.broadcast %cst_121 : f32 to vector<16x256xf32>
    %206 = arith.mulf %204, %205 : vector<16x256xf32>
    %207 = math.floor %206 : vector<16x256xf32>
    %208 = arith.subf %206, %207 : vector<16x256xf32>
    %cst_122 = arith.constant 0.00999999977 : f32
    %209 = vector.broadcast %cst_122 : f32 to vector<16x256xf32>
    %210 = arith.addf %208, %209 : vector<16x256xf32>
    %211 = math.floor %210 : vector<16x256xf32>
    %212 = arith.subf %210, %211 : vector<16x256xf32>
    %cst_123 = arith.constant 6.000000e+00 : f32
    %213 = vector.broadcast %cst_123 : f32 to vector<16x256xf32>
    %214 = arith.mulf %212, %213 : vector<16x256xf32>
    %cst_124 = arith.constant 5.000000e+00 : f32
    %215 = vector.broadcast %cst_124 : f32 to vector<16x256xf32>
    %216 = arith.addf %215, %214 : vector<16x256xf32>
    %cst_125 = arith.constant 6.000000e+00 : f32
    %217 = vector.broadcast %cst_125 : f32 to vector<16x256xf32>
    %218 = arith.cmpf oge, %216, %217 : vector<16x256xf32>
    %cst_126 = arith.constant 6.000000e+00 : f32
    %cst_127 = arith.constant 0.000000e+00 : f32
    %219 = vector.broadcast %cst_126 : f32 to vector<16x256xf32>
    %220 = vector.broadcast %cst_127 : f32 to vector<16x256xf32>
    %221 = arith.select %218, %219, %220 : vector<16x256xi1>, vector<16x256xf32>
    %222 = arith.subf %216, %221 : vector<16x256xf32>
    %cst_128 = arith.constant 4.000000e+00 : f32
    %223 = vector.broadcast %cst_128 : f32 to vector<16x256xf32>
    %224 = arith.subf %223, %222 : vector<16x256xf32>
    %225 = arith.minimumf %222, %224 : vector<16x256xf32>
    %cst_129 = arith.constant 1.000000e+00 : f32
    %226 = vector.broadcast %cst_129 : f32 to vector<16x256xf32>
    %227 = arith.minimumf %225, %226 : vector<16x256xf32>
    %cst_130 = arith.constant 0.000000e+00 : f32
    %228 = vector.broadcast %cst_130 : f32 to vector<16x256xf32>
    %229 = arith.maximumf %227, %228 : vector<16x256xf32>
    %230 = arith.mulf %185, %229 : vector<16x256xf32>
    %cst_131 = arith.constant 1.000000e+00 : f32
    %231 = vector.broadcast %cst_131 : f32 to vector<16x256xf32>
    %232 = arith.subf %231, %230 : vector<16x256xf32>
    %233 = arith.mulf %171, %232 : vector<16x256xf32>
    %cst_132 = arith.constant 0.000000e+00 : f32
    %cst_133 = arith.constant 1.000000e+00 : f32
    %234 = vector.broadcast %cst_132 : f32 to vector<16x256xf32>
    %235 = arith.maximumf %234, %233 : vector<16x256xf32>
    %236 = vector.broadcast %cst_133 : f32 to vector<16x256xf32>
    %237 = arith.minimumf %236, %235 : vector<16x256xf32>
    %cst_134 = arith.constant 3.000000e+00 : f32
    %238 = vector.broadcast %cst_134 : f32 to vector<16x256xf32>
    %239 = arith.addf %238, %214 : vector<16x256xf32>
    %cst_135 = arith.constant 6.000000e+00 : f32
    %240 = vector.broadcast %cst_135 : f32 to vector<16x256xf32>
    %241 = arith.cmpf oge, %239, %240 : vector<16x256xf32>
    %cst_136 = arith.constant 6.000000e+00 : f32
    %cst_137 = arith.constant 0.000000e+00 : f32
    %242 = vector.broadcast %cst_136 : f32 to vector<16x256xf32>
    %243 = vector.broadcast %cst_137 : f32 to vector<16x256xf32>
    %244 = arith.select %241, %242, %243 : vector<16x256xi1>, vector<16x256xf32>
    %245 = arith.subf %239, %244 : vector<16x256xf32>
    %cst_138 = arith.constant 4.000000e+00 : f32
    %246 = vector.broadcast %cst_138 : f32 to vector<16x256xf32>
    %247 = arith.subf %246, %245 : vector<16x256xf32>
    %248 = arith.minimumf %245, %247 : vector<16x256xf32>
    %cst_139 = arith.constant 1.000000e+00 : f32
    %249 = vector.broadcast %cst_139 : f32 to vector<16x256xf32>
    %250 = arith.minimumf %248, %249 : vector<16x256xf32>
    %cst_140 = arith.constant 0.000000e+00 : f32
    %251 = vector.broadcast %cst_140 : f32 to vector<16x256xf32>
    %252 = arith.maximumf %250, %251 : vector<16x256xf32>
    %253 = arith.mulf %185, %252 : vector<16x256xf32>
    %cst_141 = arith.constant 1.000000e+00 : f32
    %254 = vector.broadcast %cst_141 : f32 to vector<16x256xf32>
    %255 = arith.subf %254, %253 : vector<16x256xf32>
    %256 = arith.mulf %171, %255 : vector<16x256xf32>
    %cst_142 = arith.constant 0.000000e+00 : f32
    %cst_143 = arith.constant 1.000000e+00 : f32
    %257 = vector.broadcast %cst_142 : f32 to vector<16x256xf32>
    %258 = arith.maximumf %257, %256 : vector<16x256xf32>
    %259 = vector.broadcast %cst_143 : f32 to vector<16x256xf32>
    %260 = arith.minimumf %259, %258 : vector<16x256xf32>
    %cst_144 = arith.constant 1.000000e+00 : f32
    %261 = vector.broadcast %cst_144 : f32 to vector<16x256xf32>
    %262 = arith.addf %261, %214 : vector<16x256xf32>
    %cst_145 = arith.constant 6.000000e+00 : f32
    %263 = vector.broadcast %cst_145 : f32 to vector<16x256xf32>
    %264 = arith.cmpf oge, %262, %263 : vector<16x256xf32>
    %cst_146 = arith.constant 6.000000e+00 : f32
    %cst_147 = arith.constant 0.000000e+00 : f32
    %265 = vector.broadcast %cst_146 : f32 to vector<16x256xf32>
    %266 = vector.broadcast %cst_147 : f32 to vector<16x256xf32>
    %267 = arith.select %264, %265, %266 : vector<16x256xi1>, vector<16x256xf32>
    %268 = arith.subf %262, %267 : vector<16x256xf32>
    %cst_148 = arith.constant 4.000000e+00 : f32
    %269 = vector.broadcast %cst_148 : f32 to vector<16x256xf32>
    %270 = arith.subf %269, %268 : vector<16x256xf32>
    %271 = arith.minimumf %268, %270 : vector<16x256xf32>
    %cst_149 = arith.constant 1.000000e+00 : f32
    %272 = vector.broadcast %cst_149 : f32 to vector<16x256xf32>
    %273 = arith.minimumf %271, %272 : vector<16x256xf32>
    %cst_150 = arith.constant 0.000000e+00 : f32
    %274 = vector.broadcast %cst_150 : f32 to vector<16x256xf32>
    %275 = arith.maximumf %273, %274 : vector<16x256xf32>
    %276 = arith.mulf %185, %275 : vector<16x256xf32>
    %cst_151 = arith.constant 1.000000e+00 : f32
    %277 = vector.broadcast %cst_151 : f32 to vector<16x256xf32>
    %278 = arith.subf %277, %276 : vector<16x256xf32>
    %279 = arith.mulf %171, %278 : vector<16x256xf32>
    %cst_152 = arith.constant 0.000000e+00 : f32
    %cst_153 = arith.constant 1.000000e+00 : f32
    %280 = vector.broadcast %cst_152 : f32 to vector<16x256xf32>
    %281 = arith.maximumf %280, %279 : vector<16x256xf32>
    %282 = vector.broadcast %cst_153 : f32 to vector<16x256xf32>
    %283 = arith.minimumf %282, %281 : vector<16x256xf32>
    %c0_154 = arith.constant 0 : index
    %c0_155 = arith.constant 0 : index
    %284 = vector.load %arg4[%c0_154, %c0_155] : memref<16x16xbf16, #tpu.memory_space<vmem>>, vector<16x16xbf16>
    %285 = arith.truncf %237 : vector<16x256xf32> to vector<16x256xbf16>
    %cst_156 = arith.constant dense<0.000000e+00> : vector<16x256xf32>
    %286 = tpu.matmul %284, %285, %cst_156 {dimension_numbers = #tpu.dot_dimension_numbers<[1], [0], [0], [1], [0, 0, 1, 1], [], []>} : vector<16x16xbf16>, vector<16x256xbf16>, vector<16x256xf32> -> vector<16x256xf32>
    %287 = arith.truncf %286 : vector<16x256xf32> to vector<16x256xbf16>
    %c0_157 = arith.constant 0 : index
    %c0_158 = arith.constant 0 : index
    %288 = vector.load %arg9[%c0_157, %c0_158] : memref<48x256xbf16, #tpu.memory_space<vmem>>, vector<16x256xbf16>
    tpu.vector_store %arg9[%c0_157, %c0_158], %287 {strides = array<i32>} : memref<48x256xbf16, #tpu.memory_space<vmem>>, vector<16x256xbf16>,
    %289 = arith.truncf %260 : vector<16x256xf32> to vector<16x256xbf16>
    %cst_159 = arith.constant dense<0.000000e+00> : vector<16x256xf32>
    %290 = tpu.matmul %284, %289, %cst_159 {dimension_numbers = #tpu.dot_dimension_numbers<[1], [0], [0], [1], [0, 0, 1, 1], [], []>} : vector<16x16xbf16>, vector<16x256xbf16>, vector<16x256xf32> -> vector<16x256xf32>
    %291 = arith.truncf %290 : vector<16x256xf32> to vector<16x256xbf16>
    %c16_160 = arith.constant 16 : index
    %c0_161 = arith.constant 0 : index
    %292 = vector.load %arg9[%c16_160, %c0_161] : memref<48x256xbf16, #tpu.memory_space<vmem>>, vector<16x256xbf16>
    tpu.vector_store %arg9[%c16_160, %c0_161], %291 {strides = array<i32>} : memref<48x256xbf16, #tpu.memory_space<vmem>>, vector<16x256xbf16>,
    %293 = arith.truncf %283 : vector<16x256xf32> to vector<16x256xbf16>
    %cst_162 = arith.constant dense<0.000000e+00> : vector<16x256xf32>
    %294 = tpu.matmul %284, %293, %cst_162 {dimension_numbers = #tpu.dot_dimension_numbers<[1], [0], [0], [1], [0, 0, 1, 1], [], []>} : vector<16x16xbf16>, vector<16x256xbf16>, vector<16x256xf32> -> vector<16x256xf32>
    %295 = arith.truncf %294 : vector<16x256xf32> to vector<16x256xbf16>
    %c32_163 = arith.constant 32 : index
    %c0_164 = arith.constant 0 : index
    %296 = vector.load %arg9[%c32_163, %c0_164] : memref<48x256xbf16, #tpu.memory_space<vmem>>, vector<16x256xbf16>
    tpu.vector_store %arg9[%c32_163, %c0_164], %295 {strides = array<i32>} : memref<48x256xbf16, #tpu.memory_space<vmem>>, vector<16x256xbf16>,
    %c0_165 = arith.constant 0 : index
    %c0_166 = arith.constant 0 : index
    %297 = vector.load %arg5[%c0_165, %c0_166] : memref<16x16xbf16, #tpu.memory_space<vmem>>, vector<16x16xbf16>
    %c0_167 = arith.constant 0 : index
    %c0_168 = arith.constant 0 : index
    %298 = vector.load %arg9[%c0_167, %c0_168] : memref<48x256xbf16, #tpu.memory_space<vmem>>, vector<48x16xbf16>
    %cst_169 = arith.constant dense<0.000000e+00> : vector<48x16xf32>
    %299 = tpu.matmul %298, %297, %cst_169 {dimension_numbers = #tpu.dot_dimension_numbers<[1], [0], [0], [1], [0, 0, 1, 1], [], []>} : vector<48x16xbf16>, vector<16x16xbf16>, vector<48x16xf32> -> vector<48x16xf32>
    %cst_170 = arith.constant 1.000000e+00 : f32
    %300 = vector.broadcast %cst_170 : f32 to vector<48x16xf32>
    %301 = arith.subf %299, %300 : vector<48x16xf32>
    %c0_171 = arith.constant 0 : index
    %c0_172 = arith.constant 0 : index
    %c0_173 = arith.constant 0 : index
    %302 = vector.load %arg7[%c0_171, %c0_172, %c0_173] : memref<1x48x256xf32, #tpu.memory_space<vmem>>, vector<1x48x16xf32>
    %303 = vector.shape_cast %302 : vector<1x48x16xf32> to vector<48x16xf32>
    %304 = vector.shape_cast %301 : vector<48x16xf32> to vector<1x48x16xf32>
    tpu.vector_store %arg7[%c0_171, %c0_172, %c0_173], %304 {strides = array<i32>} : memref<1x48x256xf32, #tpu.memory_space<vmem>>, vector<1x48x16xf32>,
    %c0_174 = arith.constant 0 : index
    %c16_175 = arith.constant 16 : index
    %305 = vector.load %arg9[%c0_174, %c16_175] : memref<48x256xbf16, #tpu.memory_space<vmem>>, vector<48x16xbf16>
    %cst_176 = arith.constant dense<0.000000e+00> : vector<48x16xf32>
    %306 = tpu.matmul %305, %297, %cst_176 {dimension_numbers = #tpu.dot_dimension_numbers<[1], [0], [0], [1], [0, 0, 1, 1], [], []>} : vector<48x16xbf16>, vector<16x16xbf16>, vector<48x16xf32> -> vector<48x16xf32>
    %cst_177 = arith.constant 1.000000e+00 : f32
    %307 = vector.broadcast %cst_177 : f32 to vector<48x16xf32>
    %308 = arith.subf %306, %307 : vector<48x16xf32>
    %c0_178 = arith.constant 0 : index
    %c0_179 = arith.constant 0 : index
    %c16_180 = arith.constant 16 : index
    %309 = vector.load %arg7[%c0_178, %c0_179, %c16_180] : memref<1x48x256xf32, #tpu.memory_space<vmem>>, vector<1x48x16xf32>
    %310 = vector.shape_cast %309 : vector<1x48x16xf32> to vector<48x16xf32>
    %311 = vector.shape_cast %308 : vector<48x16xf32> to vector<1x48x16xf32>
    tpu.vector_store %arg7[%c0_178, %c0_179, %c16_180], %311 {strides = array<i32>} : memref<1x48x256xf32, #tpu.memory_space<vmem>>, vector<1x48x16xf32>,
    %c0_181 = arith.constant 0 : index
    %c32_182 = arith.constant 32 : index
    %312 = vector.load %arg9[%c0_181, %c32_182] : memref<48x256xbf16, #tpu.memory_space<vmem>>, vector<48x16xbf16>
    %cst_183 = arith.constant dense<0.000000e+00> : vector<48x16xf32>
    %313 = tpu.matmul %312, %297, %cst_183 {dimension_numbers = #tpu.dot_dimension_numbers<[1], [0], [0], [1], [0, 0, 1, 1], [], []>} : vector<48x16xbf16>, vector<16x16xbf16>, vector<48x16xf32> -> vector<48x16xf32>
    %cst_184 = arith.constant 1.000000e+00 : f32
    %314 = vector.broadcast %cst_184 : f32 to vector<48x16xf32>
    %315 = arith.subf %313, %314 : vector<48x16xf32>
    %c0_185 = arith.constant 0 : index
    %c0_186 = arith.constant 0 : index
    %c32_187 = arith.constant 32 : index
    %316 = vector.load %arg7[%c0_185, %c0_186, %c32_187] : memref<1x48x256xf32, #tpu.memory_space<vmem>>, vector<1x48x16xf32>
    %317 = vector.shape_cast %316 : vector<1x48x16xf32> to vector<48x16xf32>
    %318 = vector.shape_cast %315 : vector<48x16xf32> to vector<1x48x16xf32>
    tpu.vector_store %arg7[%c0_185, %c0_186, %c32_187], %318 {strides = array<i32>} : memref<1x48x256xf32, #tpu.memory_space<vmem>>, vector<1x48x16xf32>,
    %c0_188 = arith.constant 0 : index
    %c48_189 = arith.constant 48 : index
    %319 = vector.load %arg9[%c0_188, %c48_189] : memref<48x256xbf16, #tpu.memory_space<vmem>>, vector<48x16xbf16>
    %cst_190 = arith.constant dense<0.000000e+00> : vector<48x16xf32>
    %320 = tpu.matmul %319, %297, %cst_190 {dimension_numbers = #tpu.dot_dimension_numbers<[1], [0], [0], [1], [0, 0, 1, 1], [], []>} : vector<48x16xbf16>, vector<16x16xbf16>, vector<48x16xf32> -> vector<48x16xf32>
    %cst_191 = arith.constant 1.000000e+00 : f32
    %321 = vector.broadcast %cst_191 : f32 to vector<48x16xf32>
    %322 = arith.subf %320, %321 : vector<48x16xf32>
    %c0_192 = arith.constant 0 : index
    %c0_193 = arith.constant 0 : index
    %c48_194 = arith.constant 48 : index
    %323 = vector.load %arg7[%c0_192, %c0_193, %c48_194] : memref<1x48x256xf32, #tpu.memory_space<vmem>>, vector<1x48x16xf32>
    %324 = vector.shape_cast %323 : vector<1x48x16xf32> to vector<48x16xf32>
    %325 = vector.shape_cast %322 : vector<48x16xf32> to vector<1x48x16xf32>
    tpu.vector_store %arg7[%c0_192, %c0_193, %c48_194], %325 {strides = array<i32>} : memref<1x48x256xf32, #tpu.memory_space<vmem>>, vector<1x48x16xf32>,
    %c0_195 = arith.constant 0 : index
    %c64_196 = arith.constant 64 : index
    %326 = vector.load %arg9[%c0_195, %c64_196] : memref<48x256xbf16, #tpu.memory_space<vmem>>, vector<48x16xbf16>
    %cst_197 = arith.constant dense<0.000000e+00> : vector<48x16xf32>
    %327 = tpu.matmul %326, %297, %cst_197 {dimension_numbers = #tpu.dot_dimension_numbers<[1], [0], [0], [1], [0, 0, 1, 1], [], []>} : vector<48x16xbf16>, vector<16x16xbf16>, vector<48x16xf32> -> vector<48x16xf32>
    %cst_198 = arith.constant 1.000000e+00 : f32
    %328 = vector.broadcast %cst_198 : f32 to vector<48x16xf32>
    %329 = arith.subf %327, %328 : vector<48x16xf32>
    %c0_199 = arith.constant 0 : index
    %c0_200 = arith.constant 0 : index
    %c64_201 = arith.constant 64 : index
    %330 = vector.load %arg7[%c0_199, %c0_200, %c64_201] : memref<1x48x256xf32, #tpu.memory_space<vmem>>, vector<1x48x16xf32>
    %331 = vector.shape_cast %330 : vector<1x48x16xf32> to vector<48x16xf32>
    %332 = vector.shape_cast %329 : vector<48x16xf32> to vector<1x48x16xf32>
    tpu.vector_store %arg7[%c0_199, %c0_200, %c64_201], %332 {strides = array<i32>} : memref<1x48x256xf32, #tpu.memory_space<vmem>>, vector<1x48x16xf32>,
    %c0_202 = arith.constant 0 : index
    %c80_203 = arith.constant 80 : index
    %333 = vector.load %arg9[%c0_202, %c80_203] : memref<48x256xbf16, #tpu.memory_space<vmem>>, vector<48x16xbf16>
    %cst_204 = arith.constant dense<0.000000e+00> : vector<48x16xf32>
    %334 = tpu.matmul %333, %297, %cst_204 {dimension_numbers = #tpu.dot_dimension_numbers<[1], [0], [0], [1], [0, 0, 1, 1], [], []>} : vector<48x16xbf16>, vector<16x16xbf16>, vector<48x16xf32> -> vector<48x16xf32>
    %cst_205 = arith.constant 1.000000e+00 : f32
    %335 = vector.broadcast %cst_205 : f32 to vector<48x16xf32>
    %336 = arith.subf %334, %335 : vector<48x16xf32>
    %c0_206 = arith.constant 0 : index
    %c0_207 = arith.constant 0 : index
    %c80_208 = arith.constant 80 : index
    %337 = vector.load %arg7[%c0_206, %c0_207, %c80_208] : memref<1x48x256xf32, #tpu.memory_space<vmem>>, vector<1x48x16xf32>
    %338 = vector.shape_cast %337 : vector<1x48x16xf32> to vector<48x16xf32>
    %339 = vector.shape_cast %336 : vector<48x16xf32> to vector<1x48x16xf32>
    tpu.vector_store %arg7[%c0_206, %c0_207, %c80_208], %339 {strides = array<i32>} : memref<1x48x256xf32, #tpu.memory_space<vmem>>, vector<1x48x16xf32>,
    %c0_209 = arith.constant 0 : index
    %c96_210 = arith.constant 96 : index
    %340 = vector.load %arg9[%c0_209, %c96_210] : memref<48x256xbf16, #tpu.memory_space<vmem>>, vector<48x16xbf16>
    %cst_211 = arith.constant dense<0.000000e+00> : vector<48x16xf32>
    %341 = tpu.matmul %340, %297, %cst_211 {dimension_numbers = #tpu.dot_dimension_numbers<[1], [0], [0], [1], [0, 0, 1, 1], [], []>} : vector<48x16xbf16>, vector<16x16xbf16>, vector<48x16xf32> -> vector<48x16xf32>
    %cst_212 = arith.constant 1.000000e+00 : f32
    %342 = vector.broadcast %cst_212 : f32 to vector<48x16xf32>
    %343 = arith.subf %341, %342 : vector<48x16xf32>
    %c0_213 = arith.constant 0 : index
    %c0_214 = arith.constant 0 : index
    %c96_215 = arith.constant 96 : index
    %344 = vector.load %arg7[%c0_213, %c0_214, %c96_215] : memref<1x48x256xf32, #tpu.memory_space<vmem>>, vector<1x48x16xf32>
    %345 = vector.shape_cast %344 : vector<1x48x16xf32> to vector<48x16xf32>
    %346 = vector.shape_cast %343 : vector<48x16xf32> to vector<1x48x16xf32>
    tpu.vector_store %arg7[%c0_213, %c0_214, %c96_215], %346 {strides = array<i32>} : memref<1x48x256xf32, #tpu.memory_space<vmem>>, vector<1x48x16xf32>,
    %c0_216 = arith.constant 0 : index
    %c112_217 = arith.constant 112 : index
    %347 = vector.load %arg9[%c0_216, %c112_217] : memref<48x256xbf16, #tpu.memory_space<vmem>>, vector<48x16xbf16>
    %cst_218 = arith.constant dense<0.000000e+00> : vector<48x16xf32>
    %348 = tpu.matmul %347, %297, %cst_218 {dimension_numbers = #tpu.dot_dimension_numbers<[1], [0], [0], [1], [0, 0, 1, 1], [], []>} : vector<48x16xbf16>, vector<16x16xbf16>, vector<48x16xf32> -> vector<48x16xf32>
    %cst_219 = arith.constant 1.000000e+00 : f32
    %349 = vector.broadcast %cst_219 : f32 to vector<48x16xf32>
    %350 = arith.subf %348, %349 : vector<48x16xf32>
    %c0_220 = arith.constant 0 : index
    %c0_221 = arith.constant 0 : index
    %c112_222 = arith.constant 112 : index
    %351 = vector.load %arg7[%c0_220, %c0_221, %c112_222] : memref<1x48x256xf32, #tpu.memory_space<vmem>>, vector<1x48x16xf32>
    %352 = vector.shape_cast %351 : vector<1x48x16xf32> to vector<48x16xf32>
    %353 = vector.shape_cast %350 : vector<48x16xf32> to vector<1x48x16xf32>
    tpu.vector_store %arg7[%c0_220, %c0_221, %c112_222], %353 {strides = array<i32>} : memref<1x48x256xf32, #tpu.memory_space<vmem>>, vector<1x48x16xf32>,
    %c0_223 = arith.constant 0 : index
    %c128_224 = arith.constant 128 : index
    %354 = vector.load %arg9[%c0_223, %c128_224] : memref<48x256xbf16, #tpu.memory_space<vmem>>, vector<48x16xbf16>
    %cst_225 = arith.constant dense<0.000000e+00> : vector<48x16xf32>
    %355 = tpu.matmul %354, %297, %cst_225 {dimension_numbers = #tpu.dot_dimension_numbers<[1], [0], [0], [1], [0, 0, 1, 1], [], []>} : vector<48x16xbf16>, vector<16x16xbf16>, vector<48x16xf32> -> vector<48x16xf32>
    %cst_226 = arith.constant 1.000000e+00 : f32
    %356 = vector.broadcast %cst_226 : f32 to vector<48x16xf32>
    %357 = arith.subf %355, %356 : vector<48x16xf32>
    %c0_227 = arith.constant 0 : index
    %c0_228 = arith.constant 0 : index
    %c128_229 = arith.constant 128 : index
    %358 = vector.load %arg7[%c0_227, %c0_228, %c128_229] : memref<1x48x256xf32, #tpu.memory_space<vmem>>, vector<1x48x16xf32>
    %359 = vector.shape_cast %358 : vector<1x48x16xf32> to vector<48x16xf32>
    %360 = vector.shape_cast %357 : vector<48x16xf32> to vector<1x48x16xf32>
    tpu.vector_store %arg7[%c0_227, %c0_228, %c128_229], %360 {strides = array<i32>} : memref<1x48x256xf32, #tpu.memory_space<vmem>>, vector<1x48x16xf32>,
    %c0_230 = arith.constant 0 : index
    %c144_231 = arith.constant 144 : index
    %361 = vector.load %arg9[%c0_230, %c144_231] : memref<48x256xbf16, #tpu.memory_space<vmem>>, vector<48x16xbf16>
    %cst_232 = arith.constant dense<0.000000e+00> : vector<48x16xf32>
    %362 = tpu.matmul %361, %297, %cst_232 {dimension_numbers = #tpu.dot_dimension_numbers<[1], [0], [0], [1], [0, 0, 1, 1], [], []>} : vector<48x16xbf16>, vector<16x16xbf16>, vector<48x16xf32> -> vector<48x16xf32>
    %cst_233 = arith.constant 1.000000e+00 : f32
    %363 = vector.broadcast %cst_233 : f32 to vector<48x16xf32>
    %364 = arith.subf %362, %363 : vector<48x16xf32>
    %c0_234 = arith.constant 0 : index
    %c0_235 = arith.constant 0 : index
    %c144_236 = arith.constant 144 : index
    %365 = vector.load %arg7[%c0_234, %c0_235, %c144_236] : memref<1x48x256xf32, #tpu.memory_space<vmem>>, vector<1x48x16xf32>
    %366 = vector.shape_cast %365 : vector<1x48x16xf32> to vector<48x16xf32>
    %367 = vector.shape_cast %364 : vector<48x16xf32> to vector<1x48x16xf32>
    tpu.vector_store %arg7[%c0_234, %c0_235, %c144_236], %367 {strides = array<i32>} : memref<1x48x256xf32, #tpu.memory_space<vmem>>, vector<1x48x16xf32>,
    %c0_237 = arith.constant 0 : index
    %c160_238 = arith.constant 160 : index
    %368 = vector.load %arg9[%c0_237, %c160_238] : memref<48x256xbf16, #tpu.memory_space<vmem>>, vector<48x16xbf16>
    %cst_239 = arith.constant dense<0.000000e+00> : vector<48x16xf32>
    %369 = tpu.matmul %368, %297, %cst_239 {dimension_numbers = #tpu.dot_dimension_numbers<[1], [0], [0], [1], [0, 0, 1, 1], [], []>} : vector<48x16xbf16>, vector<16x16xbf16>, vector<48x16xf32> -> vector<48x16xf32>
    %cst_240 = arith.constant 1.000000e+00 : f32
    %370 = vector.broadcast %cst_240 : f32 to vector<48x16xf32>
    %371 = arith.subf %369, %370 : vector<48x16xf32>
    %c0_241 = arith.constant 0 : index
    %c0_242 = arith.constant 0 : index
    %c160_243 = arith.constant 160 : index
    %372 = vector.load %arg7[%c0_241, %c0_242, %c160_243] : memref<1x48x256xf32, #tpu.memory_space<vmem>>, vector<1x48x16xf32>
    %373 = vector.shape_cast %372 : vector<1x48x16xf32> to vector<48x16xf32>
    %374 = vector.shape_cast %371 : vector<48x16xf32> to vector<1x48x16xf32>
    tpu.vector_store %arg7[%c0_241, %c0_242, %c160_243], %374 {strides = array<i32>} : memref<1x48x256xf32, #tpu.memory_space<vmem>>, vector<1x48x16xf32>,
    %c0_244 = arith.constant 0 : index
    %c176_245 = arith.constant 176 : index
    %375 = vector.load %arg9[%c0_244, %c176_245] : memref<48x256xbf16, #tpu.memory_space<vmem>>, vector<48x16xbf16>
    %cst_246 = arith.constant dense<0.000000e+00> : vector<48x16xf32>
    %376 = tpu.matmul %375, %297, %cst_246 {dimension_numbers = #tpu.dot_dimension_numbers<[1], [0], [0], [1], [0, 0, 1, 1], [], []>} : vector<48x16xbf16>, vector<16x16xbf16>, vector<48x16xf32> -> vector<48x16xf32>
    %cst_247 = arith.constant 1.000000e+00 : f32
    %377 = vector.broadcast %cst_247 : f32 to vector<48x16xf32>
    %378 = arith.subf %376, %377 : vector<48x16xf32>
    %c0_248 = arith.constant 0 : index
    %c0_249 = arith.constant 0 : index
    %c176_250 = arith.constant 176 : index
    %379 = vector.load %arg7[%c0_248, %c0_249, %c176_250] : memref<1x48x256xf32, #tpu.memory_space<vmem>>, vector<1x48x16xf32>
    %380 = vector.shape_cast %379 : vector<1x48x16xf32> to vector<48x16xf32>
    %381 = vector.shape_cast %378 : vector<48x16xf32> to vector<1x48x16xf32>
    tpu.vector_store %arg7[%c0_248, %c0_249, %c176_250], %381 {strides = array<i32>} : memref<1x48x256xf32, #tpu.memory_space<vmem>>, vector<1x48x16xf32>,
    %c0_251 = arith.constant 0 : index
    %c192_252 = arith.constant 192 : index
    %382 = vector.load %arg9[%c0_251, %c192_252] : memref<48x256xbf16, #tpu.memory_space<vmem>>, vector<48x16xbf16>
    %cst_253 = arith.constant dense<0.000000e+00> : vector<48x16xf32>
    %383 = tpu.matmul %382, %297, %cst_253 {dimension_numbers = #tpu.dot_dimension_numbers<[1], [0], [0], [1], [0, 0, 1, 1], [], []>} : vector<48x16xbf16>, vector<16x16xbf16>, vector<48x16xf32> -> vector<48x16xf32>
    %cst_254 = arith.constant 1.000000e+00 : f32
    %384 = vector.broadcast %cst_254 : f32 to vector<48x16xf32>
    %385 = arith.subf %383, %384 : vector<48x16xf32>
    %c0_255 = arith.constant 0 : index
    %c0_256 = arith.constant 0 : index
    %c192_257 = arith.constant 192 : index
    %386 = vector.load %arg7[%c0_255, %c0_256, %c192_257] : memref<1x48x256xf32, #tpu.memory_space<vmem>>, vector<1x48x16xf32>
    %387 = vector.shape_cast %386 : vector<1x48x16xf32> to vector<48x16xf32>
    %388 = vector.shape_cast %385 : vector<48x16xf32> to vector<1x48x16xf32>
    tpu.vector_store %arg7[%c0_255, %c0_256, %c192_257], %388 {strides = array<i32>} : memref<1x48x256xf32, #tpu.memory_space<vmem>>, vector<1x48x16xf32>,
    %c0_258 = arith.constant 0 : index
    %c208_259 = arith.constant 208 : index
    %389 = vector.load %arg9[%c0_258, %c208_259] : memref<48x256xbf16, #tpu.memory_space<vmem>>, vector<48x16xbf16>
    %cst_260 = arith.constant dense<0.000000e+00> : vector<48x16xf32>
    %390 = tpu.matmul %389, %297, %cst_260 {dimension_numbers = #tpu.dot_dimension_numbers<[1], [0], [0], [1], [0, 0, 1, 1], [], []>} : vector<48x16xbf16>, vector<16x16xbf16>, vector<48x16xf32> -> vector<48x16xf32>
    %cst_261 = arith.constant 1.000000e+00 : f32
    %391 = vector.broadcast %cst_261 : f32 to vector<48x16xf32>
    %392 = arith.subf %390, %391 : vector<48x16xf32>
    %c0_262 = arith.constant 0 : index
    %c0_263 = arith.constant 0 : index
    %c208_264 = arith.constant 208 : index
    %393 = vector.load %arg7[%c0_262, %c0_263, %c208_264] : memref<1x48x256xf32, #tpu.memory_space<vmem>>, vector<1x48x16xf32>
    %394 = vector.shape_cast %393 : vector<1x48x16xf32> to vector<48x16xf32>
    %395 = vector.shape_cast %392 : vector<48x16xf32> to vector<1x48x16xf32>
    tpu.vector_store %arg7[%c0_262, %c0_263, %c208_264], %395 {strides = array<i32>} : memref<1x48x256xf32, #tpu.memory_space<vmem>>, vector<1x48x16xf32>,
    %c0_265 = arith.constant 0 : index
    %c224_266 = arith.constant 224 : index
    %396 = vector.load %arg9[%c0_265, %c224_266] : memref<48x256xbf16, #tpu.memory_space<vmem>>, vector<48x16xbf16>
    %cst_267 = arith.constant dense<0.000000e+00> : vector<48x16xf32>
    %397 = tpu.matmul %396, %297, %cst_267 {dimension_numbers = #tpu.dot_dimension_numbers<[1], [0], [0], [1], [0, 0, 1, 1], [], []>} : vector<48x16xbf16>, vector<16x16xbf16>, vector<48x16xf32> -> vector<48x16xf32>
    %cst_268 = arith.constant 1.000000e+00 : f32
    %398 = vector.broadcast %cst_268 : f32 to vector<48x16xf32>
    %399 = arith.subf %397, %398 : vector<48x16xf32>
    %c0_269 = arith.constant 0 : index
    %c0_270 = arith.constant 0 : index
    %c224_271 = arith.constant 224 : index
    %400 = vector.load %arg7[%c0_269, %c0_270, %c224_271] : memref<1x48x256xf32, #tpu.memory_space<vmem>>, vector<1x48x16xf32>
    %401 = vector.shape_cast %400 : vector<1x48x16xf32> to vector<48x16xf32>
    %402 = vector.shape_cast %399 : vector<48x16xf32> to vector<1x48x16xf32>
    tpu.vector_store %arg7[%c0_269, %c0_270, %c224_271], %402 {strides = array<i32>} : memref<1x48x256xf32, #tpu.memory_space<vmem>>, vector<1x48x16xf32>,
    %c0_272 = arith.constant 0 : index
    %c240_273 = arith.constant 240 : index
    %403 = vector.load %arg9[%c0_272, %c240_273] : memref<48x256xbf16, #tpu.memory_space<vmem>>, vector<48x16xbf16>
    %cst_274 = arith.constant dense<0.000000e+00> : vector<48x16xf32>
    %404 = tpu.matmul %403, %297, %cst_274 {dimension_numbers = #tpu.dot_dimension_numbers<[1], [0], [0], [1], [0, 0, 1, 1], [], []>} : vector<48x16xbf16>, vector<16x16xbf16>, vector<48x16xf32> -> vector<48x16xf32>
    %cst_275 = arith.constant 1.000000e+00 : f32
    %405 = vector.broadcast %cst_275 : f32 to vector<48x16xf32>
    %406 = arith.subf %404, %405 : vector<48x16xf32>
    %c0_276 = arith.constant 0 : index
    %c0_277 = arith.constant 0 : index
    %c240_278 = arith.constant 240 : index
    %407 = vector.load %arg7[%c0_276, %c0_277, %c240_278] : memref<1x48x256xf32, #tpu.memory_space<vmem>>, vector<1x48x16xf32>
    %408 = vector.shape_cast %407 : vector<1x48x16xf32> to vector<48x16xf32>
    %409 = vector.shape_cast %406 : vector<48x16xf32> to vector<1x48x16xf32>
    tpu.vector_store %arg7[%c0_276, %c0_277, %c240_278], %409 {strides = array<i32>} : memref<1x48x256xf32, #tpu.memory_space<vmem>>, vector<1x48x16xf32>,
    return
  }
  func.func @transform_0(%arg0: i32) -> (i32, i32, i32) {
    %c0_i32 = arith.constant 0 : i32
    %c0_i32_0 = arith.constant 0 : i32
    %c0_i32_1 = arith.constant 0 : i32
    return %arg0, %c0_i32, %c0_i32_0 : i32, i32, i32
  }
  func.func @transform_1(%arg0: i32) -> (i32, i32) {
    %c0_i32 = arith.constant 0 : i32
    %c0_i32_0 = arith.constant 0 : i32
    %c0_i32_1 = arith.constant 0 : i32
    return %c0_i32, %c0_i32_0 : i32, i32
  }
  func.func @transform_2(%arg0: i32) -> (i32, i32) {
    %c0_i32 = arith.constant 0 : i32
    %c0_i32_0 = arith.constant 0 : i32
    %c0_i32_1 = arith.constant 0 : i32
    return %c0_i32, %c0_i32_0 : i32, i32
  }
  func.func @transform_3(%arg0: i32) -> (i32, i32) {
    %c0_i32 = arith.constant 0 : i32
    %c0_i32_0 = arith.constant 0 : i32
    %c0_i32_1 = arith.constant 0 : i32
    return %c0_i32, %c0_i32_0 : i32, i32
  }
  func.func @transform_4(%arg0: i32) -> (i32, i32) {
    %c0_i32 = arith.constant 0 : i32
    %c0_i32_0 = arith.constant 0 : i32
    %c0_i32_1 = arith.constant 0 : i32
    return %c0_i32, %c0_i32_0 : i32, i32
  }
  func.func @transform_5(%arg0: i32) -> (i32, i32) {
    %c0_i32 = arith.constant 0 : i32
    %c0_i32_0 = arith.constant 0 : i32
    %c0_i32_1 = arith.constant 0 : i32
    return %c0_i32, %c0_i32_0 : i32, i32
  }
  func.func @transform_6(%arg0: i32) -> (i32, i32, i32) {
    %c0_i32 = arith.constant 0 : i32
    %c0_i32_0 = arith.constant 0 : i32
    %c0_i32_1 = arith.constant 0 : i32
    return %arg0, %c0_i32, %c0_i32_0 : i32, i32, i32
  }
}

</mosaic_0001>

<bundles_post_ra>
// kernel: tpu_custom_call.1
= control target key start
LH: loop header
LB: loop body
LE: loop exit
PB: predicated region body
PF: predicated region fallthrough
CT: control target
= control target key end

     0   :  { %11 = vsyncpa [#allocation5], 0  ;;  %s9001_s0 = inlined_call_operand.vmem [shape: bf16[32,96,32], index: 0, kind: input, shape index: {}]   ;;  %s9002_s1 = inlined_call_operand.vmem [shape: bf16[32,16], index: 1, kind: input, shape index: {}]   ;;  %s9003_s2 = inlined_call_operand.vmem [shape: bf16[16,32], index: 2, kind: input, shape index: {}]   ;;  %s9004_s3 = inlined_call_operand.vmem [shape: bf16[16,16], index: 3, kind: input, shape index: {}]   ;;  %s9005_s4 = inlined_call_operand.vmem [shape: bf16[16,16], index: 4, kind: input, shape index: {}]   ;;  %s9006_s5 = inlined_call_operand.vmem [shape: f32[256,256], index: 5, kind: input, shape index: {}]   ;;  %s9007_s6 = inlined_call_operand.hbm [shape: f32[2,48,256], index: 6, kind: output, shape index: {}]  }
   0x1   :  { %13 = vsyncpa [#allocation5 + $0x1], 0  ;;  %s7415_s21 = smov 0   ;;  %s7417_s22 = smov 0  }
   0x2   :  { %s7419_s23 = smov 0   ;;  %s7421_s24 = smov 0  }
   0x3 LB: > { %s7436_s25 = sadd.s32 4294967295, %s7365_s24   ;;  %s5854_s26 = sadd.s32 4294967294, %s7365_s24   ;;  %s7365_s24 = sphi %s7421_s24, %s9118_s24   ;;  %s7361_s23 = sphi %s7419_s23, %s9117_s23   ;;  %s7357_s22 = sphi %s7417_s22, %s9116_s22   ;;  %s7353_s21 = sphi %s7415_s21, %s9115_s21  }
   0x4   : > { %s7440_s27 = sadd.s32 1, %s7365_s24   ;;  %s157_s28 = sadd.s32 1, %s7361_s23 }
   0x5   : > { %s154_s29 = ssub.s32 %s7365_s24, %s7440_s27  ;;  %p167_p0 = scmp.ne.s32.totalorder %s7361_s23, %s7357_s22 }
   0x6   : > { %p155_p1 = scmp.eq.s32.totalorder %s154_s29, 0  ;;  %p168_p2 = scmp.eq.s32.totalorder %s7436_s25, 1 }
   0x7   : > { %p173_p3 = scmp.ne.s32.totalorder %s7357_s22, %s7353_s21  ;;  %p174_p4 = scmp.eq.s32.totalorder %s5854_s26, 1 }
   0x8   : > { %s7451_s30 = scalar_select %p155_p1, %s7361_s23, %s157_s28  }
   0x9   : > { %p7453_p5 = por %p168_p2, %p167_p0  ;;  %p7457_p6 = por %p174_p4, %p173_p3 }
   0xa   : > { %p5857_p7 = scmp.ge.s32.totalorder %s7365_s24, 1  ;;  %p217_p8 = scmp.lt.s32.totalorder %s7365_s24, 3 }
   0xc   : > { %p218_p9 = pnand %p5857_p7, %p217_p8 }
   0xd   : > { %v7466_v0 = vld [vmem:[%s9002_s1] sm:$0xff] (!%p218_p9)   ;;  %s5858_s11 = sshll.u32 (!%p218_p9), %s7436_s25, 4  ;;  %v7472_v1 = vld [vmem:[%s9002_s1 + $0x8] sm:$0xff] (!%p218_p9)   ;;  %vm314_vm0 = vcmask (!%p218_p9), 261120   ;;  %vm420_vm1 = vcmask (!%p218_p9), 130048   ;;  %s9008_s18 = smov (!%p218_p9), 16  }
   0xe   : > { %221 = sbr.rel (%p218_p9) target bundleno = 2004 (0x7d4), region = 44  ;;  %p249_p10 = scmp.lt.s32.totalorder (!%p218_p9), %s5858_s11, 31  ;;  %6582 = vmatprep.subr.bf16.mxu0 (!%p218_p9), %v7466_v0  ;;  %7126 = vmatprep.subr.bf16.mxu1 (!%p218_p9), %v7466_v0  ;;  %vm9018_vm2 = vcmask (!%p218_p9), 261248   ;;  %vm9017_vm3 = vcmask (!%p218_p9), 392448   ;;  %vm9016_vm4 = vcmask (!%p218_p9), 523648   ;;  %vm9015_vm5 = vcmask (!%p218_p9), 654848  }
   0xf   : > { %6583 = vmatpush3.bf16.msra.mxu0 (!%p218_p9), %v7466_v0  ;;  %7128 = vmatpush3.bf16.msra.mxu1 (!%p218_p9), %v7466_v0  ;;  %s9010_s19 = smov (!%p218_p9), 32   ;;  %s7369_s20 = smov (!%p218_p9), 48   ;;  %vm9014_vm6 = vcmask (!%p218_p9), 786048   ;;  %vm9013_vm7 = vcmask (!%p218_p9), 917248   ;;  %vm9012_vm8 = vcmask (!%p218_p9), 1048448   ;;  %vm7376_vm15 = vmmov (!%p218_p9), 1  }
  0x10   : > { %6584 = vmatprep.subr.bf16.mxu0 (!%p218_p9), %v7472_v1  ;;  %7127 = vmatprep.subr.bf16.mxu1 (!%p218_p9), %v7472_v1  ;;  %s7370_s26 = smov (!%p218_p9), 64   ;;  %s7371_s28 = smov (!%p218_p9), 80  }
  0x11   : > { %s7372_s29 = smov (!%p218_p9), 96   ;;  %s7373_s9 = smov (!%p218_p9), 112  }
  0x12   : > { %s245_s16 = sand.u32 (!%p218_p9), 1, %s7357_s22   ;;  %s7378_s12 = smov (!%p218_p9), [#allocation4]  }
  0x13   : > { %6585 = vmatpush3.bf16.msra.mxu0 (!%p218_p9), %v7472_v1  ;;  %7129 = vmatpush3.bf16.msra.mxu1 (!%p218_p9), %v7472_v1  ;;  %s7307_s13 = sshll.u32 (!%p218_p9), %s7378_s12, 4  ;;  %s7308_s13 = int_to_ptr.vmem [resolvable:$false] %s7307_s13 }
  0x14   : > { %6598 = vmatprep.subr.bf16.mxu1 (!%p218_p9), %v7466_v0  ;;  %6614 = vmatprep.subr.bf16.mxu0 (!%p218_p9), %v7466_v0 }
  0x15   : > { %s9120_s11 = smov (!%p249_p10, %s5858_s11), 31 }
  0x16   : > { %s7133_s14 = smul.u32 48, %s9120_s11  ;;  %s8959_s11 = scalar_lea.sflag [#allocation5], %s245_s16 }
  0x18   : > { %s7485_s17 = scalar_lea.vmem %s9001_s0, %s7133_s14  ;;  %s7309_s14 = scalar_lea.vmem %s7308_s13, 3072 }
  0x19   : > { %v7188_v2 = vld [vmem:[%s7485_s17] sm:$0xff]   ;;  %v7190_v4 = vld [vmem:[%s7485_s17 + $0x8] sm:$0xff]   ;;  %v7192_v6 = vld [vmem:[%s7485_s17 + $0x10] sm:$0xff]  }
  0x1a   : > { %v7189_v3 = vld [vmem:[%s7485_s17 + $0x20] sm:$0xff]   ;;  %6586 = vmatprep.mubr.msk.bf16.mxu0 %vm314_vm0, %v7188_v2  ;;  %v7191_v5 = vld [vmem:[%s7485_s17 + $0x28] sm:$0xff]   ;;  %v7193_v7 = vld [vmem:[%s7485_s17 + $0x30] sm:$0xff]  }
  0x1b   : > { %6594 = vmatprep.mubr.msk.bf16.mxu1 %vm314_vm0, %v7189_v3  ;;  %6587 = vmatmul.mubr.msk.bf16.vlgmr.msra.gmra.mrb[0].mxu0 %vm314_vm0, %v7190_v4  ;;  %v7194_v8 = vld [vmem:[%s7485_s17 + $0x18] sm:$0xff]   ;;  %v7197_v10 = vld [vmem:[%s7485_s17 + $0x60] sm:$0xff]   ;;  %v7198_v12 = vld [vmem:[%s7485_s17 + $0x48] sm:$0xff]  }
  0x1c   : > { %6595 = vmatmul.mubr.msk.bf16.vlgmr.msra.gmra.mrb[0].mxu1 %vm314_vm0, %v7191_v5  ;;  %6615 = vmatpush3.bf16.msra.mxu0 %v7466_v0  ;;  %v7195_v9 = vld [vmem:[%s7485_s17 + $0x38] sm:$0xff]   ;;  %v7196_v11 = vld [vmem:[%s7485_s17 + $0x40] sm:$0xff]   ;;  %v7199_v13 = vld [vmem:[%s7485_s17 + $0x68] sm:$0xff]  }
  0x1d   : > { %6599 = vmatpush3.bf16.msra.mxu1 %v7466_v0  ;;  %6590 = vmatprep.mubr.msk.bf16.mxu0 %vm314_vm0, %v7192_v6  ;;  %v7201_v14 = vld [vmem:[%s7485_s17 + $0x70] sm:$0xff]   ;;  %v7202_v16 = vld [vmem:[%s7485_s17 + $0x58] sm:$0xff]   ;;  %v7204_v18 = vld [vmem:[%s7485_s17 + $0x80] sm:$0xff]  }
  0x1e   : > { %6600 = vmatprep.subr.bf16.mxu1 %v7472_v1  ;;  %6602 = vmatprep.mubr.msk.bf16.mxu1 %vm314_vm0, %v7193_v7  ;;  %v7200_v15 = vld [vmem:[%s7485_s17 + $0x50] sm:$0xff]   ;;  %v7203_v17 = vld [vmem:[%s7485_s17 + $0x78] sm:$0xff]   ;;  %v7206_v20 = vld [vmem:[%s7485_s17 + $0x88] sm:$0xff]  }
  0x1f   : > { %6616 = vmatprep.subr.bf16.mxu0 %v7472_v1  ;;  %v7205_v19 = vld [vmem:[%s7485_s17 + $0x90] sm:$0xff]   ;;  %v7207_v21 = vld [vmem:[%s7485_s17 + $0x98] sm:$0xff]   ;;  %v7209_v22 = vld [vmem:[%s7485_s17 + $0xc0] sm:$0xff]  }
  0x20   : > { %6617 = vmatpush3.bf16.msra.mxu0 %v7472_v1  ;;  %v7208_v23 = vld [vmem:[%s7485_s17 + $0xa0] sm:$0xff]   ;;  %v7210_v24 = vld [vmem:[%s7485_s17 + $0xa8] sm:$0xff]   ;;  %v7213_v26 = vld [vmem:[%s7485_s17 + $0xd0] sm:$0xff]  }
  0x21   : > { %6601 = vmatpush3.bf16.msra.mxu1 %v7472_v1  ;;  %6646 = vmatprep.subr.bf16.mxu0 %v7466_v0  ;;  %v7211_v25 = vld [vmem:[%s7485_s17 + $0xc8] sm:$0xff]   ;;  %v7212_v27 = vld [vmem:[%s7485_s17 + $0xb0] sm:$0xff]   ;;  %v7214_v28 = vld [vmem:[%s7485_s17 + $0xb8] sm:$0xff]  }
  0x22   : > { %6630 = vmatprep.subr.bf16.mxu1 %v7466_v0  ;;  %v7215_v29 = vld [vmem:[%s7485_s17 + $0xd8] sm:$0xff]   ;;  %v7216_v30 = vld [vmem:[%s7485_s17 + $0xe0] sm:$0xff]   ;;  %v7217_v31 = vld [vmem:[%s7485_s17 + $0xf0] sm:$0xff]  }
  0x23   : > { %6591 = vmatmul.mubr.msk.bf16.gmra.mrb[4].mxu0 %vm314_vm0, %v7194_v8  ;;  %v7218_v32 = vld [vmem:[%s7485_s17 + $0xe8] sm:$0xff]   ;;  %v7219_v33 = vld [vmem:[%s7485_s17 + $0xf8] sm:$0xff]   ;;  %v7221_v34 = vld [vmem:[%s7485_s17 + $0x120] sm:$0xff]  }
  0x24   : > { %6603 = vmatmul.mubr.msk.bf16.vlgmr.msra.gmra.mrb[4].mxu1 %vm314_vm0, %v7195_v9  ;;  %6618 = vmatprep.mubr.msk.bf16.mxu0 %vm314_vm0, %v7197_v10  ;;  %v7220_v35 = vld [vmem:[%s7485_s17 + $0x100] sm:$0xff]   ;;  %v7222_v36 = vld [vmem:[%s7485_s17 + $0x108] sm:$0xff]   ;;  %v7225_v38 = vld [vmem:[%s7485_s17 + $0x130] sm:$0xff]  }
  0x25   : > { %6606 = vmatprep.mubr.msk.bf16.mxu1 %vm314_vm0, %v7196_v11  ;;  %6631 = vmatpush3.bf16.msra.mxu1 %v7466_v0  ;;  %v7223_v37 = vld [vmem:[%s7485_s17 + $0x128] sm:$0xff]   ;;  %v7224_v39 = vld [vmem:[%s7485_s17 + $0x110] sm:$0xff]   ;;  %v7226_v40 = vld [vmem:[%s7485_s17 + $0x118] sm:$0xff]  }
  0x26   : > { %6632 = vmatprep.subr.bf16.mxu1 %v7472_v1  ;;  %v7227_v41 = vld [vmem:[%s7485_s17 + $0x138] sm:$0xff]   ;;  %v7228_v42 = vld [vmem:[%s7485_s17 + $0x140] sm:$0xff]   ;;  %v7229_v43 = vld [vmem:[%s7485_s17 + $0x150] sm:$0xff]  }
  0x27   : > { %v7230_v44 = vld [vmem:[%s7485_s17 + $0x148] sm:$0xff]   ;;  %v7231_v45 = vld [vmem:[%s7485_s17 + $0x158] sm:$0xff]   ;;  %v7233_v46 = vld [vmem:[%s7485_s17 + $0x180] sm:$0xff]  }
  0x28   : > { %v7232_v47 = vld [vmem:[%s7485_s17 + $0x160] sm:$0xff]   ;;  %v7234_v48 = vld [vmem:[%s7485_s17 + $0x168] sm:$0xff]   ;;  %v7237_v50 = vld [vmem:[%s7485_s17 + $0x190] sm:$0xff]  }
  0x29   : > { %6633 = vmatpush3.bf16.msra.mxu1 %v7472_v1  ;;  %v7235_v49 = vld [vmem:[%s7485_s17 + $0x188] sm:$0xff]   ;;  %v7236_v51 = vld [vmem:[%s7485_s17 + $0x170] sm:$0xff]   ;;  %v7239_v52 = vld [vmem:[%s7485_s17 + $0x198] sm:$0xff]  }
  0x2a   : > { %6662 = vmatprep.subr.bf16.mxu1 %v7466_v0  ;;  %v7238_v53 = vld [vmem:[%s7485_s17 + $0x178] sm:$0xff]   ;;  %v7240_v54 = vld [vmem:[%s7485_s17 + $0x1a0] sm:$0xff]   ;;  %v7241_v55 = vld [vmem:[%s7485_s17 + $0x1b0] sm:$0xff]  }
  0x2b   : > { %6619 = vmatmul.mubr.msk.bf16.vlgmr.msra.gmra.mrb[8].mxu0 %vm314_vm0, %v7199_v13  ;;  %v7242_v56 = vld [vmem:[%s7485_s17 + $0x1a8] sm:$0xff]   ;;  %v7243_v57 = vld [vmem:[%s7485_s17 + $0x1b8] sm:$0xff]   ;;  %v7245_v58 = vld [vmem:[%s7485_s17 + $0x1e0] sm:$0xff]  }
  0x2c   : > { %6607 = vmatmul.mubr.msk.bf16.gmra.mrb[8].mxu1 %vm314_vm0, %v7198_v12  ;;  %6622 = vmatprep.mubr.msk.bf16.mxu0 %vm314_vm0, %v7201_v14  ;;  %v7244_v59 = vld [vmem:[%s7485_s17 + $0x1c0] sm:$0xff]   ;;  %v7247_v60 = vld [vmem:[%s7485_s17 + $0x1e8] sm:$0xff]   ;;  %v7249_v62 = vld [vmem:[%s7485_s17 + $0x1f0] sm:$0xff]  }
  0x2d   : > { %6610 = vmatprep.mubr.msk.bf16.mxu1 %vm314_vm0, %v7200_v15  ;;  %6647 = vmatpush3.bf16.msra.mxu0 %v7466_v0  ;;  %v7246_v61 = vld [vmem:[%s7485_s17 + $0x1c8] sm:$0xff]   ;;  %v7248_v63 = vld [vmem:[%s7485_s17 + $0x1d0] sm:$0xff]   ;;  %v7251_v2 = vld [vmem:[%s7485_s17 + $0x1f8] sm:$0xff]  }
  0x2e   : > { %6648 = vmatprep.subr.bf16.mxu0 %v7472_v1  ;;  %v7250_v3 = vld [vmem:[%s7485_s17 + $0x1d8] sm:$0xff]   ;;  %v7252_v4 = vld [vmem:[%s7485_s17 + $0x200] sm:$0xff]   ;;  %v7253_v5 = vld [vmem:[%s7485_s17 + $0x210] sm:$0xff]  }
  0x2f   : > { %v7254_v6 = vld [vmem:[%s7485_s17 + $0x208] sm:$0xff]   ;;  %v7255_v7 = vld [vmem:[%s7485_s17 + $0x218] sm:$0xff]   ;;  %v7257_v8 = vld [vmem:[%s7485_s17 + $0x240] sm:$0xff]  }
  0x30   : > { %v7256_v9 = vld [vmem:[%s7485_s17 + $0x220] sm:$0xff]   ;;  %v7259_v10 = vld [vmem:[%s7485_s17 + $0x248] sm:$0xff]   ;;  %v7262_v12 = vld [vmem:[%s7485_s17 + $0x250] sm:$0xff]  }
  0x31   : > { %6649 = vmatpush3.bf16.msra.mxu0 %v7472_v1  ;;  %v7258_v11 = vld [vmem:[%s7485_s17 + $0x228] sm:$0xff]   ;;  %v7260_v13 = vld [vmem:[%s7485_s17 + $0x230] sm:$0xff]   ;;  %v7263_v14 = vld [vmem:[%s7485_s17 + $0x258] sm:$0xff]  }
  0x32   : > { %6678 = vmatprep.subr.bf16.mxu0 %v7466_v0  ;;  %v7261_v15 = vld [vmem:[%s7485_s17 + $0x238] sm:$0xff]  }
  0x33   : > { %6623 = vmatmul.mubr.msk.bf16.gmra.mrb[12].mxu0 %vm314_vm0, %v7203_v17  ;;  %v7264_v17 = vld [vmem:[%s7485_s17 + $0x270] sm:$0xff]  }
  0x34   : > { %6611 = vmatmul.mubr.msk.bf16.gmra.mrb[12].mxu1 %vm314_vm0, %v7202_v16  ;;  %6626 = vmatprep.mubr.msk.bf16.mxu0 %vm314_vm0, %v7204_v18  ;;  %v7266_v16 = vld [vmem:[%s7485_s17 + $0x260] sm:$0xff]   ;;  %v7267_v18 = vld [vmem:[%s7485_s17 + $0x268] sm:$0xff]  }
  0x35   : > { %6634 = vmatprep.mubr.msk.bf16.mxu1 %vm314_vm0, %v7205_v19  ;;  %v7265_v19 = vld [vmem:[%s7485_s17 + $0x278] sm:$0xff]  }
  0x3b   : > { %6627 = vmatmul.mubr.msk.bf16.gmra.mrb[16].mxu0 %vm314_vm0, %v7206_v20  ;;  %v7270_v20 = vld [vmem:[%s7485_s17 + $0x2a0] sm:$0xff]  }
  0x3c   : > { %6635 = vmatmul.mubr.msk.bf16.vlgmr.msra.gmra.mrb[16].mxu1 %vm314_vm0, %v7207_v21  ;;  %6650 = vmatprep.mubr.msk.bf16.mxu0 %vm314_vm0, %v7209_v22  ;;  %v7268_v21 = vld [vmem:[%s7485_s17 + $0x280] sm:$0xff]   ;;  %v7271_v22 = vld [vmem:[%s7485_s17 + $0x2a8] sm:$0xff]  }
  0x3d   : > { %6638 = vmatprep.mubr.msk.bf16.mxu1 %vm314_vm0, %v7208_v23  ;;  %6663 = vmatpush3.bf16.msra.mxu1 %v7466_v0  ;;  %v7269_v23 = vld [vmem:[%s7485_s17 + $0x288] sm:$0xff]  }
  0x3e   : > { %6664 = vmatprep.subr.bf16.mxu1 %v7472_v1 }
  0x41   : > { %6665 = vmatpush3.bf16.msra.mxu1 %v7472_v1 }
  0x42   : > { %6694 = vmatprep.subr.bf16.mxu1 %v7466_v0 }
  0x43   : > { %6651 = vmatmul.mubr.msk.bf16.vlgmr.msra.gmra.mrb[20].mxu0 %vm314_vm0, %v7211_v25  ;;  %v7272_v25 = vld [vmem:[%s7485_s17 + $0x290] sm:$0xff]  }
  0x44   : > { %6639 = vmatmul.mubr.msk.bf16.gmra.mrb[20].mxu1 %vm314_vm0, %v7210_v24  ;;  %6654 = vmatprep.mubr.msk.bf16.mxu0 %vm314_vm0, %v7213_v26  ;;  %v7274_v24 = vld [vmem:[%s7485_s17 + $0x2b0] sm:$0xff]   ;;  %v7273_v26 = vld [vmem:[%s7485_s17 + $0x298] sm:$0xff]  }
  0x45   : > { %6642 = vmatprep.mubr.msk.bf16.mxu1 %vm314_vm0, %v7212_v27  ;;  %6679 = vmatpush3.bf16.msra.mxu0 %v7466_v0  ;;  %v7279_v27 = vld [vmem:[%s7485_s17 + $0x2c0] sm:$0xff]  }
  0x46   : > { %6680 = vmatprep.subr.bf16.mxu0 %v7472_v1 }
  0x49   : > { %6681 = vmatpush3.bf16.msra.mxu0 %v7472_v1 }
  0x4a   : > { %6710 = vmatprep.subr.bf16.mxu0 %v7466_v0 }
  0x4b   : > { %6655 = vmatmul.mubr.msk.bf16.gmra.mrb[24].mxu0 %vm314_vm0, %v7215_v29  ;;  %v7277_v29 = vld [vmem:[%s7485_s17 + $0x2d8] sm:$0xff]  }
  0x4c   : > { %6643 = vmatmul.mubr.msk.bf16.gmra.mrb[24].mxu1 %vm314_vm0, %v7214_v28  ;;  %6658 = vmatprep.mubr.msk.bf16.mxu0 %vm314_vm0, %v7216_v30  ;;  %v7275_v28 = vld [vmem:[%s7485_s17 + $0x2d0] sm:$0xff]   ;;  %v7278_v30 = vld [vmem:[%s7485_s17 + $0x2e0] sm:$0xff]  }
  0x4d   : > { %6666 = vmatprep.mubr.msk.bf16.mxu1 %vm314_vm0, %v7217_v31  ;;  %v7280_v31 = vld [vmem:[%s7485_s17 + $0x2e8] sm:$0xff]  }
  0x53   : > { %6659 = vmatmul.mubr.msk.bf16.gmra.mrb[28].mxu0 %vm314_vm0, %v7218_v32  ;;  %v7282_v32 = vld [vmem:[%s7485_s17 + $0x2f0] sm:$0xff]  }
  0x54   : > { %6667 = vmatmul.mubr.msk.bf16.vlgmr.msra.gmra.mrb[28].mxu1 %vm314_vm0, %v7219_v33  ;;  %6682 = vmatprep.mubr.msk.bf16.mxu0 %vm314_vm0, %v7221_v34  ;;  %v7283_v33 = vld [vmem:[%s7485_s17 + $0x2f8] sm:$0xff]  }
  0x55   : > { %6670 = vmatprep.mubr.msk.bf16.mxu1 %vm314_vm0, %v7220_v35  ;;  %6695 = vmatpush3.bf16.msra.mxu1 %v7466_v0 }
  0x56   : > { %6696 = vmatprep.subr.bf16.mxu1 %v7472_v1 }
  0x59   : > { %6697 = vmatpush3.bf16.msra.mxu1 %v7472_v1 }
  0x5a   : > { %6726 = vmatprep.subr.bf16.mxu1 %v7466_v0 }
  0x5b   : > { %6683 = vmatmul.mubr.msk.bf16.vlgmr.msra.gmra.mrb[32].mxu0 %vm314_vm0, %v7223_v37 }
  0x5c   : > { %6671 = vmatmul.mubr.msk.bf16.gmra.mrb[32].mxu1 %vm314_vm0, %v7222_v36  ;;  %6686 = vmatprep.mubr.msk.bf16.mxu0 %vm314_vm0, %v7225_v38 }
  0x5d   : > { %6674 = vmatprep.mubr.msk.bf16.mxu1 %vm314_vm0, %v7224_v39  ;;  %6711 = vmatpush3.bf16.msra.mxu0 %v7466_v0 }
  0x5e   : > { %6712 = vmatprep.subr.bf16.mxu0 %v7472_v1 }
  0x61   : > { %6713 = vmatpush3.bf16.msra.mxu0 %v7472_v1 }
  0x62   : > { %6742 = vmatprep.subr.bf16.mxu0 %v7466_v0 }
  0x63   : > { %6687 = vmatmul.mubr.msk.bf16.gmra.mrb[36].mxu0 %vm314_vm0, %v7227_v41 }
  0x64   : > { %6675 = vmatmul.mubr.msk.bf16.gmra.mrb[36].mxu1 %vm314_vm0, %v7226_v40  ;;  %6690 = vmatprep.mubr.msk.bf16.mxu0 %vm314_vm0, %v7228_v42 }
  0x65   : > { %6698 = vmatprep.mubr.msk.bf16.mxu1 %vm314_vm0, %v7229_v43 }
  0x6b   : > { %6691 = vmatmul.mubr.msk.bf16.gmra.mrb[40].mxu0 %vm314_vm0, %v7230_v44 }
  0x6c   : > { %6699 = vmatmul.mubr.msk.bf16.vlgmr.msra.gmra.mrb[40].mxu1 %vm314_vm0, %v7231_v45  ;;  %6714 = vmatprep.mubr.msk.bf16.mxu0 %vm314_vm0, %v7233_v46 }
  0x6d   : > { %6702 = vmatprep.mubr.msk.bf16.mxu1 %vm314_vm0, %v7232_v47  ;;  %6727 = vmatpush3.bf16.msra.mxu1 %v7466_v0 }
  0x6e   : > { %6728 = vmatprep.subr.bf16.mxu1 %v7472_v1 }
  0x71   : > { %6729 = vmatpush3.bf16.msra.mxu1 %v7472_v1 }
  0x72   : > { %6758 = vmatprep.subr.bf16.mxu1 %v7466_v0 }
  0x73   : > { %6715 = vmatmul.mubr.msk.bf16.vlgmr.msra.gmra.mrb[44].mxu0 %vm314_vm0, %v7235_v49 }
  0x74   : > { %6703 = vmatmul.mubr.msk.bf16.gmra.mrb[44].mxu1 %vm314_vm0, %v7234_v48  ;;  %6718 = vmatprep.mubr.msk.bf16.mxu0 %vm314_vm0, %v7237_v50 }
  0x75   : > { %6706 = vmatprep.mubr.msk.bf16.mxu1 %vm314_vm0, %v7236_v51  ;;  %6743 = vmatpush3.bf16.msra.mxu0 %v7466_v0 }
  0x76   : > { %6744 = vmatprep.subr.bf16.mxu0 %v7472_v1 }
  0x79   : > { %6745 = vmatpush3.bf16.msra.mxu0 %v7472_v1 }
  0x7a   : > { %6774 = vmatprep.subr.bf16.mxu0 %v7466_v0 }
  0x7b   : > { %6719 = vmatmul.mubr.msk.bf16.gmra.mrb[48].mxu0 %vm314_vm0, %v7239_v52 }
  0x7c   : > { %6707 = vmatmul.mubr.msk.bf16.gmra.mrb[48].mxu1 %vm314_vm0, %v7238_v53  ;;  %6722 = vmatprep.mubr.msk.bf16.mxu0 %vm314_vm0, %v7240_v54 }
  0x7d   : > { %6730 = vmatprep.mubr.msk.bf16.mxu1 %vm314_vm0, %v7241_v55 }
  0x83   : > { %6723 = vmatmul.mubr.msk.bf16.gmra.mrb[52].mxu0 %vm314_vm0, %v7242_v56 }
  0x84   : > { %6731 = vmatmul.mubr.msk.bf16.vlgmr.msra.gmra.mrb[52].mxu1 %vm314_vm0, %v7243_v57  ;;  %6746 = vmatprep.mubr.msk.bf16.mxu0 %vm314_vm0, %v7245_v58 }
  0x85   : > { %6734 = vmatprep.mubr.msk.bf16.mxu1 %vm314_vm0, %v7244_v59  ;;  %6759 = vmatpush3.bf16.msra.mxu1 %v7466_v0 }
  0x86   : > { %6760 = vmatprep.subr.bf16.mxu1 %v7472_v1 }
  0x89   : > { %6761 = vmatpush3.bf16.msra.mxu1 %v7472_v1 }
  0x8a   : > { %6790 = vmatprep.subr.bf16.mxu1 %v7466_v0 }
  0x8b   : > { %6747 = vmatmul.mubr.msk.bf16.vlgmr.msra.gmra.mrb[56].mxu0 %vm314_vm0, %v7247_v60 }
  0x8c   : > { %6735 = vmatmul.mubr.msk.bf16.gmra.mrb[56].mxu1 %vm314_vm0, %v7246_v61  ;;  %6750 = vmatprep.mubr.msk.bf16.mxu0 %vm314_vm0, %v7249_v62 }
  0x8d   : > { %6738 = vmatprep.mubr.msk.bf16.mxu1 %vm314_vm0, %v7248_v63  ;;  %6775 = vmatpush3.bf16.msra.mxu0 %v7466_v0 }
  0x8e   : > { %6776 = vmatprep.subr.bf16.mxu0 %v7472_v1 }
  0x91   : > { %6777 = vmatpush3.bf16.msra.mxu0 %v7472_v1 }
  0x92   : > { %6806 = vmatprep.subr.bf16.mxu0 %v7466_v0 }
  0x93   : > { %6751 = vmatmul.mubr.msk.bf16.gmra.mrb[60].mxu0 %vm314_vm0, %v7251_v2 }
  0x94   : > { %6739 = vmatmul.mubr.msk.bf16.gmra.mrb[60].mxu1 %vm314_vm0, %v7250_v3  ;;  %6754 = vmatprep.mubr.msk.bf16.mxu0 %vm314_vm0, %v7252_v4 }
  0x95   : > { %6762 = vmatprep.mubr.msk.bf16.mxu1 %vm314_vm0, %v7253_v5 }
  0x9b   : > { %6755 = vmatmul.mubr.msk.bf16.gmra.mrb[64].mxu0 %vm314_vm0, %v7254_v6 }
  0x9c   : > { %6763 = vmatmul.mubr.msk.bf16.vlgmr.msra.gmra.mrb[64].mxu1 %vm314_vm0, %v7255_v7  ;;  %6778 = vmatprep.mubr.msk.bf16.mxu0 %vm314_vm0, %v7257_v8 }
  0x9d   : > { %6766 = vmatprep.mubr.msk.bf16.mxu1 %vm314_vm0, %v7256_v9  ;;  %6791 = vmatpush3.bf16.msra.mxu1 %v7466_v0 }
  0x9e   : > { %6792 = vmatprep.subr.bf16.mxu1 %v7472_v1 }
  0xa1   : > { %6793 = vmatpush3.bf16.msra.mxu1 %v7472_v1 }
  0xa2   : > { %6822 = vmatprep.subr.bf16.mxu1 %v7466_v0 }
  0xa3   : > { %6779 = vmatmul.mubr.msk.bf16.vlgmr.msra.gmra.mrb[68].mxu0 %vm314_vm0, %v7259_v10 }
  0xa4   : > { %6767 = vmatmul.mubr.msk.bf16.gmra.mrb[68].mxu1 %vm314_vm0, %v7258_v11  ;;  %6782 = vmatprep.mubr.msk.bf16.mxu0 %vm314_vm0, %v7262_v12 }
  0xa5   : > { %6770 = vmatprep.mubr.msk.bf16.mxu1 %vm314_vm0, %v7260_v13  ;;  %6807 = vmatpush3.bf16.msra.mxu0 %v7466_v0 }
  0xa6   : > { %6808 = vmatprep.subr.bf16.mxu0 %v7472_v1 }
  0xa9   : > { %6809 = vmatpush3.bf16.msra.mxu0 %v7472_v1 }
  0xab   : > { %6783 = vmatmul.mubr.msk.bf16.gmra.mrb[72].mxu0 %vm314_vm0, %v7263_v14 }
  0xac   : > { %6771 = vmatmul.mubr.msk.bf16.gmra.mrb[72].mxu1 %vm314_vm0, %v7261_v15  ;;  %6786 = vmatprep.mubr.msk.bf16.mxu0 %vm314_vm0, %v7266_v16 }
  0xad   : > { %6794 = vmatprep.mubr.msk.bf16.mxu1 %vm314_vm0, %v7264_v17 }
  0xb3   : > { %6787 = vmatmul.mubr.msk.bf16.gmra.mrb[76].mxu0 %vm314_vm0, %v7267_v18 }
  0xb4   : > { %6795 = vmatmul.mubr.msk.bf16.vlgmr.msra.gmra.mrb[76].mxu1 %vm314_vm0, %v7265_v19  ;;  %6810 = vmatprep.mubr.msk.bf16.mxu0 %vm314_vm0, %v7270_v20 }
  0xb5   : > { %6798 = vmatprep.mubr.msk.bf16.mxu1 %vm314_vm0, %v7268_v21  ;;  %6823 = vmatpush3.bf16.msra.mxu1 %v7466_v0  ;;  %v7276_v0 = vld [vmem:[%s7485_s17 + $0x2b8] sm:$0xff]  }
  0xb6   : > { %6824 = vmatprep.subr.bf16.mxu1 %v7472_v1 }
  0xb9   : > { %6825 = vmatpush3.bf16.msra.mxu1 %v7472_v1  ;;  %v7281_v1 = vld [vmem:[%s7485_s17 + $0x2c8] sm:$0xff]   ;;  %s7132_s17 = smul.u32 96, %s245_s16 }
  0xbb   : > { %6811 = vmatmul.mubr.msk.bf16.vlgmr.msra.gmra.mrb[80].mxu0 %vm314_vm0, %v7271_v22  ;;  %s8599_s10 = scalar_lea.vmem [#allocation4], %s7132_s17 }
  0xbc   : > { %6799 = vmatmul.mubr.msk.bf16.gmra.mrb[80].mxu1 %vm314_vm0, %v7269_v23  ;;  %6814 = vmatprep.mubr.msk.bf16.mxu0 %vm314_vm0, %v7274_v24 }
  0xbd   : > { %6802 = vmatprep.mubr.msk.bf16.mxu1 %vm314_vm0, %v7272_v25 }
  0xc3   : > { %6815 = vmatmul.mubr.msk.bf16.gmra.mrb[84].mxu0 %vm314_vm0, %v7276_v0 }
  0xc4   : > { %6803 = vmatmul.mubr.msk.bf16.gmra.mrb[84].mxu1 %vm314_vm0, %v7273_v26  ;;  %6818 = vmatprep.mubr.msk.bf16.mxu0 %vm314_vm0, %v7279_v27 }
  0xc5   : > { %6826 = vmatprep.mubr.msk.bf16.mxu1 %vm314_vm0, %v7275_v28 }
  0xcb   : > { %6819 = vmatmul.mubr.msk.bf16.gmra.mrb[88].mxu0 %vm314_vm0, %v7281_v1 }
  0xcc   : > { %6827 = vmatmul.mubr.msk.bf16.vlgmr.msra.gmra.mrb[88].mxu1 %vm314_vm0, %v7277_v29 }
  0xcd   : > { %6830 = vmatprep.mubr.msk.bf16.mxu1 %vm314_vm0, %v7278_v30 }
  0xd4   : > { %6831 = vmatmul.mubr.msk.bf16.gmra.mrb[92].mxu1 %vm314_vm0, %v7280_v31 }
  0xd5   : > { %6834 = vmatprep.mubr.msk.bf16.mxu1 %vm314_vm0, %v7282_v32 }
  0xdc   : > { %6835 = vmatmul.mubr.msk.bf16.gmra.mrb[96].mxu1 %vm314_vm0, %v7283_v33 }
  0xee   : > { %v6588_v34 = vpop.f32.mrb[0].mxu0 }
  0xef   : > { %v6596_v35 = vpop.f32.mrb[0].mxu1  ;;  %v367_v36 = vpop.f32.mrb[1].mxu0 }
  0xf0   : > { %v399_v37 = vpop.f32.mrb[1].mxu1  ;;  %v6589_v38 = vpop.f32.mrb[2].mxu0 }
  0xf1   : > { %v415_v39 = vpack.c.bf16 %v6589_v38, %v6588_v34  ;;  %v6597_v40 = vpop.f32.mrb[2].mxu1  ;;  %v370_v41 = vpop.f32.mrb[3].mxu0 }
  0xf2   : > { %v419_v42 = vpack.c.bf16 %v6597_v40, %v6596_v35  ;;  %v414_v43 = vpack.c.bf16 %v370_v41, %v367_v36  ;;  %v402_v44 = vpop.f32.mrb[3].mxu1 }
  0xf3   : > { %422 = vst.msk [vmem:[#allocation2 + $0x10] sm:$0xff] %vm420_vm1, %v415_v39  ;;  %v418_v45 = vpack.c.bf16 %v402_v44, %v399_v37 }
  0xf4   : > { %426 = vst.msk [vmem:[#allocation2 + $0x50] sm:$0xff] %vm420_vm1, %v419_v42  ;;  %421 = vst.msk [vmem:[#allocation2] sm:$0xff] %vm420_vm1, %v414_v43 }
  0xf5   : > { %425 = vst.msk [vmem:[#allocation2 + $0x40] sm:$0xff] %vm420_vm1, %v418_v45 }
  0xf6   : > { %v6592_v46 = vpop.f32.mrb[4].mxu0 }
  0xf7   : > { %v6604_v47 = vpop.f32.mrb[4].mxu1  ;;  %v383_v48 = vpop.f32.mrb[5].mxu0 }
  0xf8   : > { %v522_v49 = vpop.f32.mrb[5].mxu1  ;;  %v6593_v50 = vpop.f32.mrb[6].mxu0 }
  0xf9   : > { %v417_v51 = vpack.c.bf16 %v6593_v50, %v6592_v46  ;;  %v6605_v52 = vpop.f32.mrb[6].mxu1  ;;  %v386_v53 = vpop.f32.mrb[7].mxu0 }
  0xfa   : > { %v570_v54 = vpack.c.bf16 %v6605_v52, %v6604_v47  ;;  %v416_v55 = vpack.c.bf16 %v386_v53, %v383_v48  ;;  %v525_v56 = vpop.f32.mrb[7].mxu1 }
  0xfb   : > { %424 = vst.msk [vmem:[#allocation2 + $0x30] sm:$0xff] %vm420_vm1, %v417_v51  ;;  %v569_v57 = vpack.c.bf16 %v525_v56, %v522_v49 }
  0xfc   : > { %423 = vst.msk [vmem:[#allocation2 + $0x20] sm:$0xff] %vm420_vm1, %v416_v55  ;;  %583 = vrot.lane.b32.xlu0 %v570_v54, %s9008_s18 }
  0xfe   : > { %v6620_v58 = vpop.f32.mrb[8].mxu0 }
  0xff   : > { %v6608_v59 = vpop.f32.mrb[8].mxu1  ;;  %v701_v60 = vpop.f32.mrb[9].mxu0 }
 0x100   : > { %581 = vrot.lane.b32.xlu0 %v569_v57, %s9008_s18  ;;  %v538_v61 = vpop.f32.mrb[9].mxu1  ;;  %v6621_v62 = vpop.f32.mrb[10].mxu0 }
 0x101   : > { %v6609_v63 = vpop.f32.mrb[10].mxu1  ;;  %v749_v2 = vpack.c.bf16 %v6621_v62, %v6620_v58  ;;  %v704_v3 = vpop.f32.mrb[11].mxu0 }
 0x102   : > { %v572_v4 = vpack.c.bf16 %v6609_v63, %v6608_v59  ;;  %v541_v5 = vpop.f32.mrb[11].mxu1  ;;  %v748_v6 = vpack.c.bf16 %v704_v3, %v701_v60 }
 0x103   : > { %v571_v7 = vpack.c.bf16 %v541_v5, %v538_v61 }
 0x104   : > { %762 = vrot.lane.b32.xlu0 %v749_v2, %s9010_s19  ;;  %760 = vrot.lane.b32.xlu1 %v748_v6, %s9010_s19 }
 0x106   : > { %v6624_v8 = vpop.f32.mrb[12].mxu0 }
 0x107   : > { %v6612_v9 = vpop.f32.mrb[12].mxu1  ;;  %v717_v10 = vpop.f32.mrb[13].mxu0 }
 0x108   : > { %v554_v11 = vpop.f32.mrb[13].mxu1  ;;  %587 = vrot.lane.b32.xlu0 %v572_v4, %s9008_s18  ;;  %585 = vrot.lane.b32.xlu1 %v571_v7, %s9008_s18  ;;  %v6625_v12 = vpop.f32.mrb[14].mxu0 }
 0x109   : > { %v6613_v13 = vpop.f32.mrb[14].mxu1  ;;  %v751_v14 = vpack.c.bf16 %v6625_v12, %v6624_v8  ;;  %v720_v15 = vpop.f32.mrb[15].mxu0 }
 0x10a   : > { %v574_v16 = vpack.c.bf16 %v6613_v13, %v6612_v9  ;;  %v557_v17 = vpop.f32.mrb[15].mxu1  ;;  %v750_v18 = vpack.c.bf16 %v720_v15, %v717_v10 }
 0x10b   : > { %v573_v19 = vpack.c.bf16 %v557_v17, %v554_v11 }
 0x10c   : > { %591 = vrot.lane.b32.xlu0 %v574_v16, %s9008_s18  ;;  %766 = vrot.lane.b32.xlu1 %v751_v14, %s9010_s19 }
 0x10e   : > { %v6628_v20 = vpop.f32.mrb[16].mxu0 }
 0x10f   : > { %v6636_v21 = vpop.f32.mrb[16].mxu1  ;;  %v733_v22 = vpop.f32.mrb[17].mxu0 }
 0x110   : > { %v880_v23 = vpop.f32.mrb[17].mxu1  ;;  %764 = vrot.lane.b32.xlu0 %v750_v18, %s9010_s19  ;;  %589 = vrot.lane.b32.xlu1 %v573_v19, %s9008_s18  ;;  %v6629_v24 = vpop.f32.mrb[18].mxu0 }
 0x111   : > { %v6637_v25 = vpop.f32.mrb[18].mxu1  ;;  %v753_v0 = vpack.c.bf16 %v6629_v24, %v6628_v20  ;;  %v736_v26 = vpop.f32.mrb[19].mxu0 }
 0x112   : > { %v928_v27 = vpack.c.bf16 %v6637_v25, %v6636_v21  ;;  %v752_v28 = vpack.c.bf16 %v736_v26, %v733_v22  ;;  %v883_v1 = vpop.f32.mrb[19].mxu1 }
 0x113   : > { %v927_v29 = vpack.c.bf16 %v883_v1, %v880_v23 }
 0x114   : > { %941 = vrot.lane.b32.xlu0 %v928_v27, %s7369_s20  ;;  %770 = vrot.lane.b32.xlu1 %v753_v0, %s9010_s19 }
 0x116   : > { %v6652_v30 = vpop.f32.mrb[20].mxu0 }
 0x117   : > { %v6640_v31 = vpop.f32.mrb[20].mxu1  ;;  %v1059_v32 = vpop.f32.mrb[21].mxu0 }
 0x118   : > { %v896_v33 = vpop.f32.mrb[21].mxu1  ;;  %939 = vrot.lane.b32.xlu1 %v927_v29, %s7369_s20  ;;  %v6653_v34 = vpop.f32.mrb[22].mxu0 }
 0x119   : > { %v6641_v35 = vpop.f32.mrb[22].mxu1  ;;  %v1107_v36 = vpack.c.bf16 %v6653_v34, %v6652_v30  ;;  %v1062_v37 = vpop.f32.mrb[23].mxu0 }
 0x11a   : > { %v930_v38 = vpack.c.bf16 %v6641_v35, %v6640_v31  ;;  %v899_v39 = vpop.f32.mrb[23].mxu1  ;;  %v1106_v40 = vpack.c.bf16 %v1062_v37, %v1059_v32 }
 0x11b   : > { %v929_v41 = vpack.c.bf16 %v899_v39, %v896_v33 }
 0x11c   : > { %768 = vrot.lane.b32.xlu1 %v752_v28, %s9010_s19 }
 0x11d   : > { %943 = vrot.lane.b32.xlu0 %v929_v41, %s7369_s20 }
 0x11e   : > { %v6656_v42 = vpop.f32.mrb[24].mxu0 }
 0x11f   : > { %v6644_v43 = vpop.f32.mrb[24].mxu1  ;;  %v1075_v44 = vpop.f32.mrb[25].mxu0 }
 0x120   : > { %v912_v45 = vpop.f32.mrb[25].mxu1  ;;  %v6657_v46 = vpop.f32.mrb[26].mxu0  ;;  %1120 = vrot.lane.b32.xlu1 %v1107_v36, %s7370_s26 }
 0x121   : > { %v6645_v47 = vpop.f32.mrb[26].mxu1  ;;  %v1109_v48 = vpack.c.bf16 %v6657_v46, %v6656_v42  ;;  %v1078_v49 = vpop.f32.mrb[27].mxu0 }
 0x122   : > { %v932_v50 = vpack.c.bf16 %v6645_v47, %v6644_v43  ;;  %v915_v51 = vpop.f32.mrb[27].mxu1  ;;  %v1108_v52 = vpack.c.bf16 %v1078_v49, %v1075_v44 }
 0x123   : > { %v931_v53 = vpack.c.bf16 %v915_v51, %v912_v45  ;;  %1124 = vrot.lane.b32.xlu0 %v1109_v48, %s7370_s26 }
 0x124   : > { %945 = vrot.lane.b32.xlu1 %v930_v38, %s7369_s20 }
 0x126   : > { %v6660_v54 = vpop.f32.mrb[28].mxu0 }
 0x127   : > { %v6668_v55 = vpop.f32.mrb[28].mxu1  ;;  %1122 = vrot.lane.b32.xlu0 %v1108_v52, %s7370_s26  ;;  %v1091_v56 = vpop.f32.mrb[29].mxu0 }
 0x128   : > { %v1238_v57 = vpop.f32.mrb[29].mxu1  ;;  %v6661_v58 = vpop.f32.mrb[30].mxu0  ;;  %1118 = vrot.lane.b32.xlu1 %v1106_v40, %s7370_s26 }
 0x129   : > { %v1111_v59 = vpack.c.bf16 %v6661_v58, %v6660_v54  ;;  %v6669_v60 = vpop.f32.mrb[30].mxu1  ;;  %v1094_v61 = vpop.f32.mrb[31].mxu0 }
 0x12a   : > { %v1286_v62 = vpack.c.bf16 %v6669_v60, %v6668_v55  ;;  %v1110_v63 = vpack.c.bf16 %v1094_v61, %v1091_v56  ;;  %v1241_v2 = vpop.f32.mrb[31].mxu1 }
 0x12b   : > { %v1285_v3 = vpack.c.bf16 %v1241_v2, %v1238_v57  ;;  %1128 = vrot.lane.b32.xlu0 %v1111_v59, %s7370_s26 }
 0x12c   : > { %949 = vrot.lane.b32.xlu1 %v932_v50, %s7369_s20 }
 0x12e   : > { %v6684_v4 = vpop.f32.mrb[32].mxu0 }
 0x12f   : > { %v6672_v5 = vpop.f32.mrb[32].mxu1  ;;  %v1417_v6 = vpop.f32.mrb[33].mxu0  ;;  %1126 = vrot.lane.b32.xlu0 %v1110_v63, %s7370_s26 }
 0x130   : > { %v1254_v7 = vpop.f32.mrb[33].mxu1  ;;  %v6685_v8 = vpop.f32.mrb[34].mxu0  ;;  %947 = vrot.lane.b32.xlu1 %v931_v53, %s7369_s20 }
 0x131   : > { %v6673_v9 = vpop.f32.mrb[34].mxu1  ;;  %v1465_v10 = vpack.c.bf16 %v6685_v8, %v6684_v4  ;;  %v1420_v11 = vpop.f32.mrb[35].mxu0 }
 0x132   : > { %v1288_v12 = vpack.c.bf16 %v6673_v9, %v6672_v5  ;;  %v1257_v13 = vpop.f32.mrb[35].mxu1  ;;  %v1464_v14 = vpack.c.bf16 %v1420_v11, %v1417_v6 }
 0x133   : > { %v1287_v15 = vpack.c.bf16 %v1257_v13, %v1254_v7 }
 0x134   : > { %1303 = vrot.lane.b32.xlu0 %v1288_v12, %s7371_s28  ;;  %1299 = vrot.lane.b32.xlu1 %v1286_v62, %s7371_s28 }
 0x136   : > { %v6688_v16 = vpop.f32.mrb[36].mxu0 }
 0x137   : > { %v6676_v17 = vpop.f32.mrb[36].mxu1  ;;  %v1433_v18 = vpop.f32.mrb[37].mxu0 }
 0x138   : > { %v1270_v19 = vpop.f32.mrb[37].mxu1  ;;  %1301 = vrot.lane.b32.xlu0 %v1287_v15, %s7371_s28  ;;  %v6689_v20 = vpop.f32.mrb[38].mxu0  ;;  %1297 = vrot.lane.b32.xlu1 %v1285_v3, %s7371_s28 }
 0x139   : > { %v6677_v21 = vpop.f32.mrb[38].mxu1  ;;  %v1467_v22 = vpack.c.bf16 %v6689_v20, %v6688_v16  ;;  %v1436_v23 = vpop.f32.mrb[39].mxu0 }
 0x13a   : > { %v1290_v24 = vpack.c.bf16 %v6677_v21, %v6676_v17  ;;  %v1273_v25 = vpop.f32.mrb[39].mxu1  ;;  %v1466_v0 = vpack.c.bf16 %v1436_v23, %v1433_v18 }
 0x13b   : > { %v1289_v26 = vpack.c.bf16 %v1273_v25, %v1270_v19 }
 0x13c   : > { %1307 = vrot.lane.b32.xlu0 %v1290_v24, %s7371_s28  ;;  %1478 = vrot.lane.b32.xlu1 %v1465_v10, %s7372_s29 }
 0x13e   : > { %v7775_v27 = vpop.f32.mrb[40].mxu0 }
 0x13f   : > { %v6700_v28 = vpop.f32.mrb[40].mxu1  ;;  %v1449_v1 = vpop.f32.mrb[41].mxu0 }
 0x140   : > { %v1596_v29 = vpop.f32.mrb[41].mxu1  ;;  %1305 = vrot.lane.b32.xlu0 %v1289_v26, %s7371_s28  ;;  %v7778_v30 = vpop.f32.mrb[42].mxu0  ;;  %1476 = vrot.lane.b32.xlu1 %v1464_v14, %s7372_s29 }
 0x141   : > { %v1469_v31 = vpack.c.bf16 %v7778_v30, %v7775_v27  ;;  %v6701_v32 = vpop.f32.mrb[42].mxu1  ;;  %v1452_v33 = vpop.f32.mrb[43].mxu0 }
 0x142   : > { %v1644_v34 = vpack.c.bf16 %v6701_v32, %v6700_v28  ;;  %v1468_v35 = vpack.c.bf16 %v1452_v33, %v1449_v1  ;;  %v1599_v36 = vpop.f32.mrb[43].mxu1 }
 0x143   : > { %v1643_v37 = vpack.c.bf16 %v1599_v36, %v1596_v29 }
 0x144   : > { %1482 = vrot.lane.b32.xlu1 %v1467_v22, %s7372_s29 }
 0x146   : > { %v6716_v38 = vpop.f32.mrb[44].mxu0 }
 0x147   : > { %v6704_v39 = vpop.f32.mrb[44].mxu1  ;;  %v1775_v40 = vpop.f32.mrb[45].mxu0 }
 0x148   : > { %v1612_v41 = vpop.f32.mrb[45].mxu1  ;;  %v6717_v42 = vpop.f32.mrb[46].mxu0  ;;  %1480 = vrot.lane.b32.xlu1 %v1466_v0, %s7372_s29 }
 0x149   : > { %v6705_v43 = vpop.f32.mrb[46].mxu1  ;;  %v1823_v44 = vpack.c.bf16 %v6717_v42, %v6716_v38  ;;  %v1778_v45 = vpop.f32.mrb[47].mxu0 }
 0x14a   : > { %v1646_v46 = vpack.c.bf16 %v6705_v43, %v6704_v39  ;;  %v1615_v47 = vpop.f32.mrb[47].mxu1  ;;  %v1822_v48 = vpack.c.bf16 %v1778_v45, %v1775_v40 }
 0x14b   : > { %1829 = vst.msk [vmem:[#allocation2 + $0x18] sm:$0xff] %vm420_vm1, %v1823_v44  ;;  %v1645_v49 = vpack.c.bf16 %v1615_v47, %v1612_v41 }
 0x14c   : > { %1828 = vst.msk [vmem:[#allocation2 + $0x8] sm:$0xff] %vm420_vm1, %v1822_v48  ;;  %1657 = vrot.lane.b32.xlu1 %v1644_v34, %s7373_s9 }
 0x14e   : > { %v6720_v50 = vpop.f32.mrb[48].mxu0 }
 0x14f   : > { %v7788_v51 = vpop.f32.mrb[48].mxu1  ;;  %v1791_v52 = vpop.f32.mrb[49].mxu0 }
 0x150   : > { %v1628_v53 = vpop.f32.mrb[49].mxu1  ;;  %v6721_v54 = vpop.f32.mrb[50].mxu0  ;;  %1655 = vrot.lane.b32.xlu1 %v1643_v37, %s7373_s9 }
 0x151   : > { %v7791_v55 = vpop.f32.mrb[50].mxu1  ;;  %v1825_v56 = vpack.c.bf16 %v6721_v54, %v6720_v50  ;;  %v1794_v57 = vpop.f32.mrb[51].mxu0 }
 0x152   : > { %v1648_v58 = vpack.c.bf16 %v7791_v55, %v7788_v51  ;;  %v1631_v59 = vpop.f32.mrb[51].mxu1  ;;  %v1824_v60 = vpack.c.bf16 %v1794_v57, %v1791_v52 }
 0x153   : > { %1831 = vst.msk [vmem:[#allocation2 + $0x38] sm:$0xff] %vm420_vm1, %v1825_v56  ;;  %v1647_v61 = vpack.c.bf16 %v1631_v59, %v1628_v53 }
 0x154   : > { %1830 = vst.msk [vmem:[#allocation2 + $0x28] sm:$0xff] %vm420_vm1, %v1824_v60  ;;  %1484 = vrot.lane.b32.xlu1 %v1468_v35, %s7372_s29 }
 0x156   : > { %v6724_v62 = vpop.f32.mrb[52].mxu0 }
 0x157   : > { %v6732_v63 = vpop.f32.mrb[52].mxu1  ;;  %v1807_v2 = vpop.f32.mrb[53].mxu0 }
 0x158   : > { %v1929_v3 = vpop.f32.mrb[53].mxu1  ;;  %v6725_v4 = vpop.f32.mrb[54].mxu0  ;;  %1661 = vrot.lane.b32.xlu1 %v1646_v46, %s7373_s9 }
 0x159   : > { %v1827_v5 = vpack.c.bf16 %v6725_v4, %v6724_v62  ;;  %v6733_v6 = vpop.f32.mrb[54].mxu1  ;;  %v1810_v7 = vpop.f32.mrb[55].mxu0 }
 0x15a   : > { %v1977_v8 = vpack.c.bf16 %v6733_v6, %v6732_v63  ;;  %v1826_v9 = vpack.c.bf16 %v1810_v7, %v1807_v2  ;;  %v1932_v10 = vpop.f32.mrb[55].mxu1 }
 0x15b   : > { %1833 = vst.msk [vmem:[#allocation2 + $0x58] sm:$0xff] %vm420_vm1, %v1827_v5  ;;  %v1976_v11 = vpack.c.bf16 %v1932_v10, %v1929_v3 }
 0x15c   : > { %1832 = vst.msk [vmem:[#allocation2 + $0x48] sm:$0xff] %vm420_vm1, %v1826_v9  ;;  %1990 = vrot.lane.b32.xlu0 %v1977_v8, %s9008_s18  ;;  %1659 = vrot.lane.b32.xlu1 %v1645_v49, %s7373_s9 }
 0x15e   : > { %v6748_v12 = vpop.f32.mrb[56].mxu0 }
 0x15f   : > { %v6736_v13 = vpop.f32.mrb[56].mxu1  ;;  %v2107_v14 = vpop.f32.mrb[57].mxu0 }
 0x160   : > { %1988 = vrot.lane.b32.xlu0 %v1976_v11, %s9008_s18  ;;  %v1945_v15 = vpop.f32.mrb[57].mxu1  ;;  %v6749_v16 = vpop.f32.mrb[58].mxu0  ;;  %1663 = vrot.lane.b32.xlu1 %v1647_v61, %s7373_s9 }
 0x161   : > { %v2155_v17 = vpack.c.bf16 %v6749_v16, %v6748_v12  ;;  %v6737_v18 = vpop.f32.mrb[58].mxu1  ;;  %v2110_v19 = vpop.f32.mrb[59].mxu0 }
 0x162   : > { %v1979_v20 = vpack.c.bf16 %v6737_v18, %v6736_v13  ;;  %v2154_v21 = vpack.c.bf16 %v2110_v19, %v2107_v14  ;;  %v1948_v22 = vpop.f32.mrb[59].mxu1 }
 0x163   : > { %v1978_v23 = vpack.c.bf16 %v1948_v22, %v1945_v15 }
 0x164   : > { %2168 = vrot.lane.b32.xlu0 %v2155_v17, %s9010_s19  ;;  %2166 = vrot.lane.b32.xlu1 %v2154_v21, %s9010_s19 }
 0x166   : > { %v6752_v24 = vpop.f32.mrb[60].mxu0 }
 0x167   : > { %v2123_v25 = vpop.f32.mrb[61].mxu0  ;;  %v6740_v0 = vpop.f32.mrb[60].mxu1 }
 0x168   : > { %1994 = vrot.lane.b32.xlu0 %v1979_v20, %s9008_s18  ;;  %v6753_v26 = vpop.f32.mrb[62].mxu0  ;;  %v1961_v28 = vpop.f32.mrb[61].mxu1 }
 0x169   : > { %v2157_v1 = vpack.c.bf16 %v6753_v26, %v6752_v24  ;;  %v2126_v29 = vpop.f32.mrb[63].mxu0  ;;  %v6741_v32 = vpop.f32.mrb[62].mxu1 }
 0x16a   : > { %v2156_v33 = vpack.c.bf16 %v2126_v29, %v2123_v25  ;;  %v1981_v34 = vpack.c.bf16 %v6741_v32, %v6740_v0  ;;  %v1964_v35 = vpop.f32.mrb[63].mxu1 }
 0x16b   : > { %v1980_v36 = vpack.c.bf16 %v1964_v35, %v1961_v28 }
 0x16c   : > { %1992 = vrot.lane.b32.xlu0 %v1978_v23, %s9008_s18 }
 0x16e   : > { %v584_v37 = vpop.permute.xlu0 %583  ;;  %v6756_v38 = vpop.f32.mrb[64].mxu0 }
 0x16f   : > { %601 = vst.msk [vmem:[#allocation2 + $0x10] sm:$0xff] %vm9018_vm2, %v584_v37  ;;  %v6764_v39 = vpop.f32.mrb[64].mxu1  ;;  %v7810_v40 = vpop.f32.mrb[65].mxu0 }
 0x170   : > { %2172 = vrot.lane.b32.xlu0 %v2157_v1, %s9010_s19  ;;  %v2285_v41 = vpop.f32.mrb[65].mxu1  ;;  %v6757_v42 = vpop.f32.mrb[66].mxu0 }
 0x171   : > { %v2159_v43 = vpack.c.bf16 %v6757_v42, %v6756_v38  ;;  %v6765_v44 = vpop.f32.mrb[66].mxu1  ;;  %v7813_v45 = vpop.f32.mrb[67].mxu0 }
 0x172   : > { %v582_v46 = vpop.permute.xlu0 %581  ;;  %v2333_v47 = vpack.c.bf16 %v6765_v44, %v6764_v39  ;;  %v2158_v48 = vpack.c.bf16 %v7813_v45, %v7810_v40  ;;  %v2288_v49 = vpop.f32.mrb[67].mxu1 }
 0x173   : > { %600 = vst.msk [vmem:[#allocation2] sm:$0xff] %vm9018_vm2, %v582_v46  ;;  %v2332_v50 = vpack.c.bf16 %v2288_v49, %v2285_v41 }
 0x174   : > { %1998 = vrot.lane.b32.xlu0 %v1981_v34, %s9008_s18  ;;  %2346 = vrot.lane.b32.xlu1 %v2333_v47, %s7369_s20 }
 0x176   : > { %v763_v52 = vpop.permute.xlu0 %762  ;;  %v761_v53 = vpop.permute.xlu1 %760 }
 0x177   : > { %780 = vst.msk [vmem:[#allocation2 + $0x10] sm:$0xff] %vm9017_vm3, %v763_v52  ;;  %779 = vst.msk [vmem:[#allocation2] sm:$0xff] %vm9017_vm3, %v761_v53  ;;  %v6780_v54 = vpop.f32.mrb[68].mxu0  ;;  %v6768_v56 = vpop.f32.mrb[68].mxu1 }
 0x178   : > { %v2463_v57 = vpop.f32.mrb[69].mxu0  ;;  %2170 = vrot.lane.b32.xlu0 %v2156_v33, %s9010_s19  ;;  %v2301_v59 = vpop.f32.mrb[69].mxu1 }
 0x179   : > { %v6781_v60 = vpop.f32.mrb[70].mxu0  ;;  %v6769_v61 = vpop.f32.mrb[70].mxu1 }
 0x17a   : > { %v2511_v62 = vpack.c.bf16 %v6781_v60, %v6780_v54  ;;  %v588_v63 = vpop.permute.xlu0 %587  ;;  %v586_v2 = vpop.permute.xlu1 %585  ;;  %v2335_v3 = vpack.c.bf16 %v6769_v61, %v6768_v56 }
 0x17b   : > { %603 = vst.msk [vmem:[#allocation2 + $0x30] sm:$0xff] %vm9018_vm2, %v588_v63  ;;  %602 = vst.msk [vmem:[#allocation2 + $0x20] sm:$0xff] %vm9018_vm2, %v586_v2  ;;  %v2304_v4 = vpop.f32.mrb[71].mxu1  ;;  %v2466_v5 = vpop.f32.mrb[71].mxu0 }
 0x17c   : > { %1996 = vrot.lane.b32.xlu0 %v1980_v36, %s9008_s18  ;;  %2524 = vrot.lane.b32.xlu1 %v2511_v62, %s7370_s26  ;;  %v2334_v6 = vpack.c.bf16 %v2304_v4, %v2301_v59  ;;  %v2510_v7 = vpack.c.bf16 %v2466_v5, %v2463_v57  ;;  %s9029_s18 = smov 32  }
 0x17e   : > { %v592_v8 = vpop.permute.xlu0 %591  ;;  %v767_v9 = vpop.permute.xlu1 %766 }
 0x17f   : > { %605 = vst.msk [vmem:[#allocation2 + $0x50] sm:$0xff] %vm9018_vm2, %v592_v8  ;;  %v6784_v10 = vpop.f32.mrb[72].mxu0  ;;  %v6772_v11 = vpop.f32.mrb[72].mxu1 }
 0x180   : > { %782 = vst.msk [vmem:[#allocation2 + $0x30] sm:$0xff] %vm9017_vm3, %v767_v9  ;;  %2176 = vrot.lane.b32.xlu0 %v2159_v43, %s9010_s19  ;;  %2350 = vrot.lane.b32.xlu1 %v2335_v3, %s7369_s20  ;;  %v2479_v12 = vpop.f32.mrb[73].mxu0  ;;  %v2317_v13 = vpop.f32.mrb[73].mxu1 }
 0x181   : > { %v6785_v14 = vpop.f32.mrb[74].mxu0  ;;  %v6773_v15 = vpop.f32.mrb[74].mxu1 }
 0x182   : > { %v765_v16 = vpop.permute.xlu0 %764  ;;  %v590_v17 = vpop.permute.xlu1 %589  ;;  %v2513_v18 = vpack.c.bf16 %v6785_v14, %v6784_v10  ;;  %v2337_v19 = vpack.c.bf16 %v6773_v15, %v6772_v11 }
 0x183   : > { %781 = vst.msk [vmem:[#allocation2 + $0x20] sm:$0xff] %vm9017_vm3, %v765_v16  ;;  %v2320_v20 = vpop.f32.mrb[75].mxu1  ;;  %v2482_v21 = vpop.f32.mrb[75].mxu0 }
 0x184   : > { %604 = vst.msk [vmem:[#allocation2 + $0x40] sm:$0xff] %vm9018_vm2, %v590_v17  ;;  %2344 = vrot.lane.b32.xlu0 %v2332_v50, %s7369_s20  ;;  %2348 = vrot.lane.b32.xlu1 %v2334_v6, %s7369_s20  ;;  %v2336_v22 = vpack.c.bf16 %v2320_v20, %v2317_v13  ;;  %v2512_v23 = vpack.c.bf16 %v2482_v21, %v2479_v12 }
 0x186   : > { %v942_v24 = vpop.permute.xlu0 %941  ;;  %v771_v25 = vpop.permute.xlu1 %770 }
 0x187   : > { %959 = vst.msk [vmem:[#allocation2 + $0x10] sm:$0xff] %vm9016_vm4, %v942_v24  ;;  %v6788_v0 = vpop.f32.mrb[76].mxu0  ;;  %v6796_v26 = vpop.f32.mrb[76].mxu1 }
 0x188   : > { %784 = vst.msk [vmem:[#allocation2 + $0x50] sm:$0xff] %vm9017_vm3, %v771_v25  ;;  %2174 = vrot.lane.b32.xlu0 %v2158_v48, %s9010_s19  ;;  %2528 = vrot.lane.b32.xlu1 %v2513_v18, %s7370_s26  ;;  %v2495_v28 = vpop.f32.mrb[77].mxu0  ;;  %v2641_v1 = vpop.f32.mrb[77].mxu1  ;;  %s9030_s19 = smov 16  }
 0x189   : > { %v6789_v29 = vpop.f32.mrb[78].mxu0  ;;  %v6797_v32 = vpop.f32.mrb[78].mxu1 }
 0x18a   : > { %v940_v33 = vpop.permute.xlu1 %939  ;;  %v2515_v34 = vpack.c.bf16 %v6789_v29, %v6788_v0  ;;  %v2689_v35 = vpack.c.bf16 %v6797_v32, %v6796_v26  ;;  %v2644_v36 = vpop.f32.mrb[79].mxu1 }
 0x18b   : > { %958 = vst.msk [vmem:[#allocation2] sm:$0xff] %vm9016_vm4, %v940_v33  ;;  %v2688_v37 = vpack.c.bf16 %v2644_v36, %v2641_v1  ;;  %v2498_v38 = vpop.f32.mrb[79].mxu0 }
 0x18c   : > { %2522 = vrot.lane.b32.xlu0 %v2510_v7, %s7370_s26  ;;  %2526 = vrot.lane.b32.xlu1 %v2512_v23, %s7370_s26  ;;  %v2514_v39 = vpack.c.bf16 %v2498_v38, %v2495_v28 }
 0x18e   : > { %v769_v40 = vpop.permute.xlu1 %768  ;;  %v6812_v41 = vpop.f32.mrb[80].mxu0 }
 0x18f   : > { %v944_v42 = vpop.permute.xlu0 %943  ;;  %783 = vst.msk [vmem:[#allocation2 + $0x40] sm:$0xff] %vm9017_vm3, %v769_v40  ;;  %v6800_v43 = vpop.f32.mrb[80].mxu1 }
 0x190   : > { %960 = vst.msk [vmem:[#allocation2 + $0x20] sm:$0xff] %vm9016_vm4, %v944_v42  ;;  %2354 = vrot.lane.b32.xlu0 %v2337_v19, %s7369_s20  ;;  %2352 = vrot.lane.b32.xlu1 %v2336_v22, %s7369_s20  ;;  %v2657_v44 = vpop.f32.mrb[81].mxu1  ;;  %v2819_v45 = vpop.f32.mrb[81].mxu0 }
 0x191   : > { %v6801_v46 = vpop.f32.mrb[82].mxu1  ;;  %v6813_v47 = vpop.f32.mrb[82].mxu0 }
 0x192   : > { %v1121_v48 = vpop.permute.xlu1 %1120  ;;  %v2691_v49 = vpack.c.bf16 %v6801_v46, %v6800_v43  ;;  %v2867_v50 = vpack.c.bf16 %v6813_v47, %v6812_v41  ;;  %v2660_v52 = vpop.f32.mrb[83].mxu1 }
 0x193   : > { %1138 = vst.msk [vmem:[#allocation2 + $0x10] sm:$0xff] %vm9015_vm5, %v1121_v48  ;;  %v2690_v53 = vpack.c.bf16 %v2660_v52, %v2657_v44  ;;  %v2822_v54 = vpop.f32.mrb[83].mxu0 }
 0x194   : > { %2702 = vrot.lane.b32.xlu0 %v2689_v35, %s7371_s28  ;;  %2700 = vrot.lane.b32.xlu1 %v2688_v37, %s7371_s28  ;;  %v2866_v56 = vpack.c.bf16 %v2822_v54, %v2819_v45 }
 0x195   : > { %v1125_v57 = vpop.permute.xlu0 %1124 }
 0x196   : > { %v946_v59 = vpop.permute.xlu1 %945  ;;  %v6816_v60 = vpop.f32.mrb[84].mxu0 }
 0x197   : > { %961 = vst.msk [vmem:[#allocation2 + $0x30] sm:$0xff] %vm9016_vm4, %v946_v59  ;;  %v6804_v61 = vpop.f32.mrb[84].mxu1  ;;  %v2835_v62 = vpop.f32.mrb[85].mxu0 }
 0x198   : > { %1140 = vst.msk [vmem:[#allocation2 + $0x30] sm:$0xff] %vm9015_vm5, %v1125_v57  ;;  %2532 = vrot.lane.b32.xlu0 %v2515_v34, %s7370_s26  ;;  %2530 = vrot.lane.b32.xlu1 %v2514_v39, %s7370_s26  ;;  %v2673_v63 = vpop.f32.mrb[85].mxu1  ;;  %v6817_v2 = vpop.f32.mrb[86].mxu0 }
 0x199   : > { %v1123_v3 = vpop.permute.xlu0 %1122  ;;  %v6805_v4 = vpop.f32.mrb[86].mxu1  ;;  %v2869_v5 = vpack.c.bf16 %v6817_v2, %v6816_v60 }
 0x19a   : > { %1139 = vst.msk [vmem:[#allocation2 + $0x20] sm:$0xff] %vm9015_vm5, %v1123_v3  ;;  %v1119_v6 = vpop.permute.xlu1 %1118  ;;  %v2693_v7 = vpack.c.bf16 %v6805_v4, %v6804_v61  ;;  %v2676_v8 = vpop.f32.mrb[87].mxu1 }
 0x19b   : > { %1137 = vst.msk [vmem:[#allocation2] sm:$0xff] %vm9015_vm5, %v1119_v6  ;;  %v2692_v9 = vpack.c.bf16 %v2676_v8, %v2673_v63  ;;  %v2838_v10 = vpop.f32.mrb[87].mxu0 }
 0x19c   : > { %2880 = vrot.lane.b32.xlu0 %v2867_v50, %s7372_s29  ;;  %2706 = vrot.lane.b32.xlu1 %v2691_v49, %s7371_s28  ;;  %v2868_v11 = vpack.c.bf16 %v2838_v10, %v2835_v62  ;;  %v7374_v49 = vmov 0  }
 0x19d   : > { %v1129_v12 = vpop.permute.xlu0 %1128  ;;  %3126 = vmatprep.mubr.bf16.mxu0 %v7374_v49  ;;  %3181 = vmatprep.mubr.bf16.mxu1 %v7374_v49 }
 0x19e   : > { %v950_v13 = vpop.permute.xlu1 %949  ;;  %v6820_v14 = vpop.f32.mrb[88].mxu0 }
 0x19f   : > { %963 = vst.msk [vmem:[#allocation2 + $0x50] sm:$0xff] %vm9016_vm4, %v950_v13  ;;  %v6828_v15 = vpop.f32.mrb[88].mxu1  ;;  %v2851_v16 = vpop.f32.mrb[89].mxu0 }
 0x1a0   : > { %1142 = vst.msk [vmem:[#allocation2 + $0x50] sm:$0xff] %vm9015_vm5, %v1129_v12  ;;  %2704 = vrot.lane.b32.xlu0 %v2690_v53, %s7371_s28  ;;  %2878 = vrot.lane.b32.xlu1 %v2866_v56, %s7372_s29  ;;  %v2997_v17 = vpop.f32.mrb[89].mxu1  ;;  %v6821_v18 = vpop.f32.mrb[90].mxu0 }
 0x1a1   : > { %v1127_v19 = vpop.permute.xlu0 %1126  ;;  %v6829_v20 = vpop.f32.mrb[90].mxu1  ;;  %v2871_v21 = vpack.c.bf16 %v6821_v18, %v6820_v14 }
 0x1a2   : > { %v948_v22 = vpop.permute.xlu1 %947  ;;  %v3045_v23 = vpack.c.bf16 %v6829_v20, %v6828_v15  ;;  %v3000_v24 = vpop.f32.mrb[91].mxu1 }
 0x1a3   : > { %962 = vst.msk [vmem:[#allocation2 + $0x40] sm:$0xff] %vm9016_vm4, %v948_v22  ;;  %v3044_v25 = vpack.c.bf16 %v3000_v24, %v2997_v17  ;;  %v2854_v0 = vpop.f32.mrb[91].mxu0 }
 0x1a4   : > { %1141 = vst.msk [vmem:[#allocation2 + $0x40] sm:$0xff] %vm9015_vm5, %v1127_v19  ;;  %2710 = vrot.lane.b32.xlu0 %v2693_v7, %s7371_s28  ;;  %2884 = vrot.lane.b32.xlu1 %v2869_v5, %s7372_s29  ;;  %v2870_v26 = vpack.c.bf16 %v2854_v0, %v2851_v16 }
 0x1a6   : > { %v1304_v28 = vpop.permute.xlu0 %1303  ;;  %v1300_v1 = vpop.permute.xlu1 %1299 }
 0x1a7   : > { %1319 = vst.msk [vmem:[#allocation2 + $0x30] sm:$0xff] %vm9014_vm6, %v1304_v28  ;;  %v6832_v29 = vpop.f32.mrb[92].mxu1  ;;  %1317 = vst.msk [vmem:[#allocation2 + $0x10] sm:$0xff] %vm9014_vm6, %v1300_v1 }
 0x1a8   : > { %v3013_v32 = vpop.f32.mrb[93].mxu1  ;;  %2882 = vrot.lane.b32.xlu0 %v2868_v11, %s7372_s29  ;;  %3058 = vrot.lane.b32.xlu1 %v3045_v23, %s7373_s9 }
 0x1a9   : > { %v6833_v33 = vpop.f32.mrb[94].mxu1 }
 0x1aa   : > { %v3047_v34 = vpack.c.bf16 %v6833_v33, %v6832_v29  ;;  %v1302_v35 = vpop.permute.xlu0 %1301  ;;  %v1298_v36 = vpop.permute.xlu1 %1297 }
 0x1ab   : > { %1318 = vst.msk [vmem:[#allocation2 + $0x20] sm:$0xff] %vm9014_vm6, %v1302_v35  ;;  %1316 = vst.msk [vmem:[#allocation2] sm:$0xff] %vm9014_vm6, %v1298_v36  ;;  %v3016_v37 = vpop.f32.mrb[95].mxu1 }
 0x1ac   : > { %2708 = vrot.lane.b32.xlu0 %v2692_v9, %s7371_s28  ;;  %3062 = vrot.lane.b32.xlu1 %v3047_v34, %s7373_s9  ;;  %v3046_v38 = vpack.c.bf16 %v3016_v37, %v3013_v32  ;;  %v3276_v34 = vld [vmem:[%s9006_s5 + $0x8] sm:$0xff] }
 0x1ae   : > { %v1308_v39 = vpop.permute.xlu0 %1307  ;;  %v1479_v40 = vpop.permute.xlu1 %1478 }
 0x1af   : > { %1321 = vst.msk [vmem:[#allocation2 + $0x50] sm:$0xff] %vm9014_vm6, %v1308_v39  ;;  %v6836_v41 = vpop.f32.mrb[96].mxu1  ;;  %v3278_v39 = vld [vmem:[%s9006_s5 + $0x18] sm:$0xff] }
 0x1b0   : > { %1496 = vst.msk [vmem:[#allocation2 + $0x10] sm:$0xff] %vm9013_vm7, %v1479_v40  ;;  %2888 = vrot.lane.b32.xlu0 %v2871_v21, %s7372_s29  ;;  %3060 = vrot.lane.b32.xlu1 %v3046_v38, %s7373_s9  ;;  %v3029_v42 = vpop.f32.mrb[97].mxu1 }
 0x1b1   : > { %v6837_v43 = vpop.f32.mrb[98].mxu1 }
 0x1b2   : > { %v1306_v44 = vpop.permute.xlu0 %1305  ;;  %v1477_v45 = vpop.permute.xlu1 %1476  ;;  %v3049_v46 = vpack.c.bf16 %v6837_v43, %v6836_v41  ;;  %v7062_v41 = vpack.c.bf16 %v3278_v39, %v3276_v34  ;;  %v3277_v43 = vld [vmem:[%s9006_s5 + $0x10] sm:$0xff]  ;;  %v3307_v39 = vld [vmem:[%s9006_s5 + $0x100] sm:$0xff] }
 0x1b3   : > { %1320 = vst.msk [vmem:[#allocation2 + $0x40] sm:$0xff] %vm9014_vm6, %v1306_v44  ;;  %v3032_v47 = vpop.f32.mrb[99].mxu1  ;;  %v3305_v34 = vld [vmem:[%s9006_s5 + $0xf0] sm:$0xff] }
 0x1b4   : > { %1495 = vst.msk [vmem:[#allocation2] sm:$0xff] %vm9013_vm7, %v1477_v45  ;;  %3056 = vrot.lane.b32.xlu0 %v3044_v25, %s7373_s9  ;;  %1486 = vrot.lane.b32.xlu1 %v1469_v31, %s7372_s29  ;;  %v3048_v48 = vpack.c.bf16 %v3032_v47, %v3029_v42  ;;  %v3275_v42 = vld [vmem:[%s9006_s5] sm:$0xff]  ;;  %v3282_v47 = vld [vmem:[%s9006_s5 + $0x38] sm:$0xff] }
 0x1b6   : > { %v1483_v50 = vpop.permute.xlu1 %1482 }
 0x1b7   : > { %1498 = vst.msk [vmem:[#allocation2 + $0x30] sm:$0xff] %vm9013_vm7, %v1483_v50 }
 0x1b8   : > { %2886 = vrot.lane.b32.xlu0 %v2870_v26, %s7372_s29  ;;  %1665 = vrot.lane.b32.xlu1 %v1648_v58, %s7373_s9 }
 0x1ba   : > { %v1481_v52 = vpop.permute.xlu1 %1480 }
 0x1bb   : > { %1497 = vst.msk [vmem:[#allocation2 + $0x20] sm:$0xff] %vm9013_vm7, %v1481_v52  ;;  %v7284_v52 = vld [vmem:[%s9003_s2] sm:$0xff]  }
 0x1bc   : > { %3064 = vrot.lane.b32.xlu0 %v3048_v48, %s7373_s9 }
 0x1be   : > { %v1658_v27 = vpop.permute.xlu1 %1657 }
 0x1bf   : > { %1675 = vst.msk [vmem:[#allocation2 + $0x10] sm:$0xff] %vm9012_vm8, %v1658_v27 }
 0x1c0   : > { %3066 = vrot.lane.b32.xlu0 %v3049_v46, %s7373_s9  ;;  %v3280_v46 = vld [vmem:[%s9006_s5 + $0x28] sm:$0xff] }
 0x1c2   : > { %v1656_v30 = vpop.permute.xlu1 %1655 }
 0x1c3   : > { %1674 = vst.msk [vmem:[#allocation2] sm:$0xff] %vm9012_vm8, %v1656_v30  ;;  %v7064_v30 = vpack.c.bf16 %v3277_v43, %v3275_v42  ;;  %v3314_v42 = vld [vmem:[%s9006_s5 + $0x138] sm:$0xff] }
 0x1c6   : > { %v1485_v31 = vpop.permute.xlu1 %1484 }
 0x1c7   : > { %1499 = vst.msk [vmem:[#allocation2 + $0x40] sm:$0xff] %vm9013_vm7, %v1485_v31  ;;  %v7066_v31 = vpack.c.bf16 %v3282_v47, %v3280_v46  ;;  %v3313_v46 = vld [vmem:[%s9006_s5 + $0x130] sm:$0xff]  ;;  %v3316_v47 = vld [vmem:[%s9006_s5 + $0x148] sm:$0xff] }
 0x1ca   : > { %v1662_v53 = vpop.permute.xlu1 %1661  ;;  %v3082_v48 = vld [vmem:[#allocation2] sm:$0xff] }
 0x1cb   : > { %1677 = vst.msk [vmem:[#allocation2 + $0x30] sm:$0xff] %vm9012_vm8, %v1662_v53 }
 0x1ce   : > { %v1991_v51 = vpop.permute.xlu0 %1990  ;;  %v1660_v55 = vpop.permute.xlu1 %1659 }
 0x1cf   : > { %2007 = vst.msk [vmem:[#allocation2 + $0x18] sm:$0xff] %vm9018_vm2, %v1991_v51  ;;  %v3279_v51 = vld [vmem:[%s9006_s5 + $0x20] sm:$0xff] }
 0x1d0   : > { %1676 = vst.msk [vmem:[#allocation2 + $0x20] sm:$0xff] %vm9012_vm8, %v1660_v55  ;;  %v3281_v55 = vld [vmem:[%s9006_s5 + $0x30] sm:$0xff] }
 0x1d2   : > { %v1989_v58 = vpop.permute.xlu0 %1988  ;;  %v1664_v54 = vpop.permute.xlu1 %1663  ;;  %v3147_v50 = vld [vmem:[#allocation2 + $0x30] sm:$0xff] }
 0x1d3   : > { %2006 = vst.msk [vmem:[#allocation2 + $0x8] sm:$0xff] %vm9018_vm2, %v1989_v58  ;;  %v3084_v58 = vld [vmem:[#allocation2 + $0x10] sm:$0xff] }
 0x1d4   : > { %1678 = vst.msk [vmem:[#allocation2 + $0x40] sm:$0xff] %vm9012_vm8, %v1664_v54  ;;  %v3284_v54 = vld [vmem:[%s9006_s5 + $0x48] sm:$0xff] }
 0x1d6   : > { %v2169_v56 = vpop.permute.xlu0 %2168  ;;  %v2167_v57 = vpop.permute.xlu1 %2166 }
 0x1d7   : > { %2185 = vst.msk [vmem:[#allocation2 + $0x18] sm:$0xff] %vm9017_vm3, %v2169_v56  ;;  %2184 = vst.msk [vmem:[#allocation2 + $0x8] sm:$0xff] %vm9017_vm3, %v2167_v57  ;;  %v3145_v40 = vld [vmem:[#allocation2 + $0x20] sm:$0xff]  ;;  %v3286_v56 = vld [vmem:[%s9006_s5 + $0x58] sm:$0xff]  ;;  %v7068_v57 = vpack.c.bf16 %v3281_v55, %v3279_v51 }
 0x1da   : > { %v1995_v59 = vpop.permute.xlu0 %1994 }
 0x1db   : > { %2009 = vst.msk [vmem:[#allocation2 + $0x38] sm:$0xff] %vm9018_vm2, %v1995_v59 }
 0x1de   : > { %v1993_v60 = vpop.permute.xlu0 %1992 }
 0x1df   : > { %2008 = vst.msk [vmem:[#allocation2 + $0x28] sm:$0xff] %vm9018_vm2, %v1993_v60  ;;  %v7070_v60 = vpack.c.bf16 %v3286_v56, %v3284_v54  ;;  %v3321_v54 = vld [vmem:[%s9006_s5 + $0x170] sm:$0xff]  ;;  %v3324_v56 = vld [vmem:[%s9006_s5 + $0x188] sm:$0xff] }
 0x1e2   : > { %v2173_v61 = vpop.permute.xlu0 %2172 }
 0x1e3   : > { %2187 = vst.msk [vmem:[#allocation2 + $0x38] sm:$0xff] %vm9017_vm3, %v2173_v61  ;;  %v3283_v61 = vld [vmem:[%s9006_s5 + $0x40] sm:$0xff] }
 0x1e6   : > { %v1999_v62 = vpop.permute.xlu0 %1998  ;;  %v2347_v63 = vpop.permute.xlu1 %2346 }
 0x1e7   : > { %2011 = vst.msk [vmem:[#allocation2 + $0x58] sm:$0xff] %vm9018_vm2, %v1999_v62  ;;  %v3285_v62 = vld [vmem:[%s9006_s5 + $0x50] sm:$0xff] }
 0x1e8   : > { %2363 = vst.msk [vmem:[#allocation2 + $0x18] sm:$0xff] %vm9016_vm4, %v2347_v63  ;;  %v3200_v63 = vld [vmem:[#allocation2 + $0x40] sm:$0xff] }
 0x1ea   : > { %v2171_v2 = vpop.permute.xlu0 %2170 }
 0x1eb   : > { %2186 = vst.msk [vmem:[#allocation2 + $0x28] sm:$0xff] %vm9017_vm3, %v2171_v2  ;;  %v3288_v2 = vld [vmem:[%s9006_s5 + $0x68] sm:$0xff] }
 0x1ee   : > { %v1997_v3 = vpop.permute.xlu0 %1996  ;;  %v2525_v4 = vpop.permute.xlu1 %2524 }
 0x1ef   : > { %2010 = vst.msk [vmem:[#allocation2 + $0x48] sm:$0xff] %vm9018_vm2, %v1997_v3  ;;  %v3290_v3 = vld [vmem:[%s9006_s5 + $0x78] sm:$0xff] }
 0x1f0   : > { %2541 = vst.msk [vmem:[#allocation2 + $0x18] sm:$0xff] %vm9015_vm5, %v2525_v4  ;;  %v7072_v4 = vpack.c.bf16 %v3285_v62, %v3283_v61  ;;  %v3323_v61 = vld [vmem:[%s9006_s5 + $0x180] sm:$0xff]  ;;  %v3325_v62 = vld [vmem:[%s9006_s5 + $0x190] sm:$0xff] }
 0x1f2   : > { %v2177_v5 = vpop.permute.xlu0 %2176  ;;  %v2351_v6 = vpop.permute.xlu1 %2350 }
 0x1f3   : > { %2189 = vst.msk [vmem:[#allocation2 + $0x58] sm:$0xff] %vm9017_vm3, %v2177_v5 }
 0x1f4   : > { %2365 = vst.msk [vmem:[#allocation2 + $0x38] sm:$0xff] %vm9016_vm4, %v2351_v6  ;;  %v7074_v6 = vpack.c.bf16 %v3290_v3, %v3288_v2  ;;  %v3328_v2 = vld [vmem:[%s9006_s5 + $0x1a8] sm:$0xff]  ;;  %v3330_v3 = vld [vmem:[%s9006_s5 + $0x1b8] sm:$0xff] }
 0x1f6   : > { %v2345_v7 = vpop.permute.xlu0 %2344  ;;  %v2349_v8 = vpop.permute.xlu1 %2348 }
 0x1f7   : > { %2362 = vst.msk [vmem:[#allocation2 + $0x8] sm:$0xff] %vm9016_vm4, %v2345_v7  ;;  %2364 = vst.msk [vmem:[#allocation2 + $0x28] sm:$0xff] %vm9016_vm4, %v2349_v8  ;;  %v3287_v7 = vld [vmem:[%s9006_s5 + $0x60] sm:$0xff]  ;;  %v3289_v8 = vld [vmem:[%s9006_s5 + $0x70] sm:$0xff] }
 0x1fa   : > { %v2175_v9 = vpop.permute.xlu0 %2174  ;;  %v2529_v10 = vpop.permute.xlu1 %2528 }
 0x1fb   : > { %2188 = vst.msk [vmem:[#allocation2 + $0x48] sm:$0xff] %vm9017_vm3, %v2175_v9 }
 0x1fc   : > { %2543 = vst.msk [vmem:[#allocation2 + $0x38] sm:$0xff] %vm9015_vm5, %v2529_v10  ;;  %v3292_v10 = vld [vmem:[%s9006_s5 + $0x88] sm:$0xff] }
 0x1fe   : > { %v2523_v11 = vpop.permute.xlu0 %2522  ;;  %v2527_v12 = vpop.permute.xlu1 %2526 }
 0x1ff   : > { %2540 = vst.msk [vmem:[#allocation2 + $0x8] sm:$0xff] %vm9015_vm5, %v2523_v11  ;;  %2542 = vst.msk [vmem:[#allocation2 + $0x28] sm:$0xff] %vm9015_vm5, %v2527_v12  ;;  %v3294_v11 = vld [vmem:[%s9006_s5 + $0x98] sm:$0xff]  ;;  %v7076_v12 = vpack.c.bf16 %v3289_v8, %v3287_v7  ;;  %v3332_v8 = vld [vmem:[%s9006_s5 + $0x1c8] sm:$0xff] }
 0x202   : > { %v2355_v13 = vpop.permute.xlu0 %2354  ;;  %v2353_v14 = vpop.permute.xlu1 %2352 }
 0x203   : > { %2367 = vst.msk [vmem:[#allocation2 + $0x58] sm:$0xff] %vm9016_vm4, %v2355_v13  ;;  %2366 = vst.msk [vmem:[#allocation2 + $0x48] sm:$0xff] %vm9016_vm4, %v2353_v14  ;;  %v7078_v13 = vpack.c.bf16 %v3294_v11, %v3292_v10  ;;  %v3291_v14 = vld [vmem:[%s9006_s5 + $0x80] sm:$0xff] }
 0x204   : > { %v3331_v11 = vld [vmem:[%s9006_s5 + $0x1c0] sm:$0xff] }
 0x206   : > { %v2703_v15 = vpop.permute.xlu0 %2702  ;;  %v2701_v16 = vpop.permute.xlu1 %2700 }
 0x207   : > { %2719 = vst.msk [vmem:[#allocation2 + $0x18] sm:$0xff] %vm9014_vm6, %v2703_v15  ;;  %2718 = vst.msk [vmem:[#allocation2 + $0x8] sm:$0xff] %vm9014_vm6, %v2701_v16  ;;  %v3293_v15 = vld [vmem:[%s9006_s5 + $0x90] sm:$0xff]  ;;  %v3296_v16 = vld [vmem:[%s9006_s5 + $0xa8] sm:$0xff] }
 0x20a   : > { %v2533_v17 = vpop.permute.xlu0 %2532  ;;  %v2531_v18 = vpop.permute.xlu1 %2530 }
 0x20b   : > { %2545 = vst.msk [vmem:[#allocation2 + $0x58] sm:$0xff] %vm9015_vm5, %v2533_v17  ;;  %2544 = vst.msk [vmem:[#allocation2 + $0x48] sm:$0xff] %vm9015_vm5, %v2531_v18  ;;  %v3298_v17 = vld [vmem:[%s9006_s5 + $0xb8] sm:$0xff]  ;;  %v7080_v18 = vpack.c.bf16 %v3293_v15, %v3291_v14  ;;  %v3336_v14 = vld [vmem:[%s9006_s5 + $0x1e8] sm:$0xff] }
 0x20c   : > { %v3338_v15 = vld [vmem:[%s9006_s5 + $0x1f8] sm:$0xff] }
 0x20e   : > { %v2881_v19 = vpop.permute.xlu0 %2880  ;;  %v2707_v20 = vpop.permute.xlu1 %2706 }
 0x20f   : > { %2897 = vst.msk [vmem:[#allocation2 + $0x18] sm:$0xff] %vm9013_vm7, %v2881_v19  ;;  %v7082_v19 = vpack.c.bf16 %v3298_v17, %v3296_v16  ;;  %v7122_v16 = vpack.c.bf16 %v3338_v15, %v3336_v14  ;;  %v3335_v17 = vld [vmem:[%s9006_s5 + $0x1e0] sm:$0xff] }
 0x210   : > { %2721 = vst.msk [vmem:[#allocation2 + $0x38] sm:$0xff] %vm9014_vm6, %v2707_v20  ;;  %v3295_v20 = vld [vmem:[%s9006_s5 + $0xa0] sm:$0xff] }
 0x212   : > { %v2705_v21 = vpop.permute.xlu0 %2704  ;;  %v2879_v22 = vpop.permute.xlu1 %2878 }
 0x213   : > { %2720 = vst.msk [vmem:[#allocation2 + $0x28] sm:$0xff] %vm9014_vm6, %v2705_v21  ;;  %v3297_v21 = vld [vmem:[%s9006_s5 + $0xb0] sm:$0xff] }
 0x214   : > { %2896 = vst.msk [vmem:[#allocation2 + $0x8] sm:$0xff] %vm9013_vm7, %v2879_v22  ;;  %v3300_v22 = vld [vmem:[%s9006_s5 + $0xc8] sm:$0xff] }
 0x216   : > { %v2711_v23 = vpop.permute.xlu0 %2710  ;;  %v2885_v24 = vpop.permute.xlu1 %2884 }
 0x217   : > { %2723 = vst.msk [vmem:[#allocation2 + $0x58] sm:$0xff] %vm9014_vm6, %v2711_v23  ;;  %v3302_v23 = vld [vmem:[%s9006_s5 + $0xd8] sm:$0xff] }
 0x218   : > { %2899 = vst.msk [vmem:[#allocation2 + $0x38] sm:$0xff] %vm9013_vm7, %v2885_v24  ;;  %v7084_v24 = vpack.c.bf16 %v3297_v21, %v3295_v20 }
 0x21a   : > { %v2883_v25 = vpop.permute.xlu0 %2882  ;;  %v3059_v0 = vpop.permute.xlu1 %3058 }
 0x21b   : > { %2898 = vst.msk [vmem:[#allocation2 + $0x28] sm:$0xff] %vm9013_vm7, %v2883_v25  ;;  %v7086_v25 = vpack.c.bf16 %v3302_v23, %v3300_v22 }
 0x21c   : > { %3075 = vst.msk [vmem:[#allocation2 + $0x18] sm:$0xff] %vm9012_vm8, %v3059_v0  ;;  %v3299_v0 = vld [vmem:[%s9006_s5 + $0xc0] sm:$0xff] }
 0x21e   : > { %v2709_v26 = vpop.permute.xlu0 %2708  ;;  %v3063_v28 = vpop.permute.xlu1 %3062 }
 0x21f   : > { %2722 = vst.msk [vmem:[#allocation2 + $0x48] sm:$0xff] %vm9014_vm6, %v2709_v26  ;;  %v3301_v26 = vld [vmem:[%s9006_s5 + $0xd0] sm:$0xff] }
 0x220   : > { %3077 = vst.msk [vmem:[#allocation2 + $0x38] sm:$0xff] %vm9012_vm8, %v3063_v28  ;;  %v3304_v28 = vld [vmem:[%s9006_s5 + $0xe8] sm:$0xff] }
 0x222   : > { %v2889_v1 = vpop.permute.xlu0 %2888  ;;  %v3061_v29 = vpop.permute.xlu1 %3060 }
 0x223   : > { %2901 = vst.msk [vmem:[#allocation2 + $0x58] sm:$0xff] %vm9013_vm7, %v2889_v1  ;;  %v3085_v27 = vld [vmem:[#allocation2 + $0x18] sm:$0xff] }
 0x224   : > { %3076 = vst.msk [vmem:[#allocation2 + $0x28] sm:$0xff] %vm9012_vm8, %v3061_v29  ;;  %v3306_v1 = vld [vmem:[%s9006_s5 + $0xf8] sm:$0xff]  ;;  %v7088_v29 = vpack.c.bf16 %v3301_v26, %v3299_v0 }
 0x226   : > { %v3057_v32 = vpop.permute.xlu0 %3056  ;;  %v1487_v33 = vpop.permute.xlu1 %1486 }
 0x227   : > { %3074 = vst.msk [vmem:[#allocation2 + $0x8] sm:$0xff] %vm9012_vm8, %v3057_v32  ;;  %v3148_v38 = vld [vmem:[#allocation2 + $0x38] sm:$0xff]  ;;  %v7090_v32 = vpack.c.bf16 %v3306_v1, %v3304_v28 }
 0x228   : > { %1500 = vst.msk [vmem:[#allocation2 + $0x50] sm:$0xff] %vm9013_vm7, %v1487_v33  ;;  %v3303_v33 = vld [vmem:[%s9006_s5 + $0xe0] sm:$0xff] }
 0x22a   : > { %v2887_v35 = vpop.permute.xlu0 %2886  ;;  %v1666_v36 = vpop.permute.xlu1 %1665 }
 0x22b   : > { %v3146_v37 = vld [vmem:[#allocation2 + $0x28] sm:$0xff]  ;;  %2900 = vst.msk [vmem:[#allocation2 + $0x48] sm:$0xff] %vm9013_vm7, %v2887_v35 }
 0x22c   : > { %1679 = vst.msk [vmem:[#allocation2 + $0x50] sm:$0xff] %vm9012_vm8, %v1666_v36  ;;  %3149 = vmatprep.subr.bf16.mxu1 %v3146_v37  ;;  %v3308_v35 = vld [vmem:[%s9006_s5 + $0x108] sm:$0xff]  ;;  %v3310_v36 = vld [vmem:[%s9006_s5 + $0x118] sm:$0xff]  ;;  %v7092_v37 = vpack.c.bf16 %v3305_v34, %v3303_v33 }
 0x22d   : > { %3150 = vmatpush1.bf16.msra.mxu1 %v3145_v40  ;;  %v3309_v40 = vld [vmem:[%s9006_s5 + $0x110] sm:$0xff] }
 0x22e   : > { %3151 = vmatprep.subr.bf16.mxu1 %v3148_v38  ;;  %v3065_v44 = vpop.permute.xlu0 %3064  ;;  %v3083_v45 = vld [vmem:[#allocation2 + $0x8] sm:$0xff]  ;;  %v7094_v38 = vpack.c.bf16 %v3310_v36, %v3308_v35  ;;  %v7096_v43 = vpack.c.bf16 %v3309_v40, %v3307_v39 }
 0x22f   : > { %3078 = vst.msk [vmem:[#allocation2 + $0x48] sm:$0xff] %vm9012_vm8, %v3065_v44  ;;  %3094 = vmatprep.subr.bf16.mxu0 %v3083_v45  ;;  %v3311_v45 = vld [vmem:[%s9006_s5 + $0x120] sm:$0xff] }
 0x230   : > { %3095 = vmatpush1.bf16.msra.mxu0 %v3082_v48  ;;  %v3318_v48 = vld [vmem:[%s9006_s5 + $0x158] sm:$0xff] }
 0x231   : > { %3152 = vmatpush1.bf16.msra.mxu1 %v3147_v50  ;;  %3096 = vmatprep.subr.bf16.mxu0 %v3085_v27  ;;  %v7100_v50 = vpack.c.bf16 %v3313_v46, %v3311_v45  ;;  %v3315_v27 = vld [vmem:[%s9006_s5 + $0x140] sm:$0xff] }
 0x232   : > { %7063 = vmatprep.subr.bf16.mxu1 %v7062_v41  ;;  %v3067_v53 = vpop.permute.xlu0 %3066  ;;  %v3312_v41 = vld [vmem:[%s9006_s5 + $0x128] sm:$0xff] }
 0x233   : > { %3079 = vst.msk [vmem:[#allocation2 + $0x58] sm:$0xff] %vm9012_vm8, %v3067_v53  ;;  %v3202_v9 = vld [vmem:[#allocation2 + $0x50] sm:$0xff]  ;;  %v7098_v44 = vpack.c.bf16 %v3314_v42, %v3312_v41  ;;  %v3322_v53 = vld [vmem:[%s9006_s5 + $0x178] sm:$0xff] }
 0x234   : > { %6236 = vmatmul.mubr.msk.bf16.vlgmr.msra.gmra.mrb[100].mxu1 %vm314_vm0, %v7284_v52  ;;  %3097 = vmatpush1.bf16.msra.mxu0 %v3084_v58  ;;  %v3319_v58 = vld [vmem:[%s9006_s5 + $0x160] sm:$0xff] }
 0x235   : > { %7065 = vmatpush1.bf16.msra.mxu1 %v7064_v30  ;;  %v3317_v30 = vld [vmem:[%s9006_s5 + $0x150] sm:$0xff] }
 0x236   : > { %7067 = vmatprep.subr.bf16.mxu1 %v7066_v31  ;;  %v3201_v59 = vld [vmem:[#allocation2 + $0x48] sm:$0xff]  ;;  %v7104_v51 = vpack.c.bf16 %v3317_v30, %v3315_v27 }
 0x237   : > { %6235 = vmatmul.mubr.msk.bf16.vlgmr.msra.gmra.mrb[92].mxu0 %vm314_vm0, %v7284_v52  ;;  %3204 = vmatprep.subr.bf16.mxu0 %v3201_v59  ;;  %v3320_v31 = vld [vmem:[%s9006_s5 + $0x168] sm:$0xff]  ;;  %v7108_v59 = vpack.c.bf16 %v3321_v54, %v3319_v58 }
 0x238   : > { %3205 = vmatpush1.bf16.msra.mxu0 %v3200_v63  ;;  %3236 = vmatprep.mubr.bf16.mxu0 %v7374_v49  ;;  %v7106_v55 = vpack.c.bf16 %v3322_v53, %v3320_v31  ;;  %v7112_v63 = vpack.c.bf16 %v3325_v62, %v3323_v61 }
 0x239   : > { %7069 = vmatpush1.bf16.msra.mxu1 %v7068_v57  ;;  %v3326_v57 = vld [vmem:[%s9006_s5 + $0x198] sm:$0xff] }
 0x23a   : > { %v3203_v5 = vld [vmem:[#allocation2 + $0x58] sm:$0xff]  ;;  %7071 = vmatprep.subr.bf16.mxu1 %v7070_v60  ;;  %v7110_v60 = vpack.c.bf16 %v3326_v57, %v3324_v56 }
 0x23b   : > { %3206 = vmatprep.subr.bf16.mxu0 %v3203_v5  ;;  %v3327_v5 = vld [vmem:[%s9006_s5 + $0x1a0] sm:$0xff] }
 0x23c   : > { %3207 = vmatpush1.bf16.msra.mxu0 %v3202_v9  ;;  %v3334_v9 = vld [vmem:[%s9006_s5 + $0x1d8] sm:$0xff] }
 0x23d   : > { %7073 = vmatpush1.bf16.msra.mxu1 %v7072_v4  ;;  %v7114_v4 = vpack.c.bf16 %v3330_v3, %v3328_v2  ;;  %v7118_v10 = vpack.c.bf16 %v3334_v9, %v3332_v8 }
 0x23e   : > { %7075 = vmatprep.subr.bf16.mxu1 %v7074_v6  ;;  %v3329_v6 = vld [vmem:[%s9006_s5 + $0x1b0] sm:$0xff] }
 0x23f   : > { %6237 = vmatmul.mubr.msk.bf16.vlgmr.msra.gmra.mrb[96].mxu0 %vm314_vm0, %v7284_v52  ;;  %v7102_v52 = vpack.c.bf16 %v3318_v48, %v3316_v47  ;;  %v7116_v7 = vpack.c.bf16 %v3329_v6, %v3327_v5 }
 0x240   : > { %3899 = vmatprep.mubr.bf16.mxu0 %v7374_v49 }
 0x241   : > { %7077 = vmatpush1.bf16.msra.mxu1 %v7076_v12  ;;  %v3333_v12 = vld [vmem:[%s9006_s5 + $0x1d0] sm:$0xff] }
 0x242   : > { %7079 = vmatprep.subr.bf16.mxu1 %v7078_v13  ;;  %v7120_v13 = vpack.c.bf16 %v3333_v12, %v3331_v11 }
 0x245   : > { %7081 = vmatpush1.bf16.msra.mxu1 %v7080_v18  ;;  %v3337_v18 = vld [vmem:[%s9006_s5 + $0x1f0] sm:$0xff] }
 0x246   : > { %7083 = vmatprep.subr.bf16.mxu1 %v7082_v19  ;;  %v7124_v19 = vpack.c.bf16 %v3337_v18, %v3335_v17 }
 0x249   : > { %7085 = vmatpush1.bf16.msra.mxu1 %v7084_v24 }
 0x24a   : > { %7087 = vmatprep.subr.bf16.mxu1 %v7086_v25 }
 0x24d   : > { %7089 = vmatpush1.bf16.msra.mxu1 %v7088_v29 }
 0x24e   : > { %7091 = vmatprep.subr.bf16.mxu1 %v7090_v32 }
 0x251   : > { %7093 = vmatpush1.bf16.msra.mxu1 %v7092_v37 }
 0x252   : > { %7095 = vmatprep.subr.bf16.mxu1 %v7094_v38 }
 0x255   : > { %7097 = vmatpush1.bf16.msra.mxu1 %v7096_v43 }
 0x256   : > { %7099 = vmatprep.subr.bf16.mxu1 %v7098_v44 }
 0x259   : > { %7101 = vmatpush1.bf16.msra.mxu1 %v7100_v50 }
 0x25a   : > { %7103 = vmatprep.subr.bf16.mxu1 %v7102_v52 }
 0x25d   : > { %7105 = vmatpush1.bf16.msra.mxu1 %v7104_v51 }
 0x25e   : > { %7107 = vmatprep.subr.bf16.mxu1 %v7106_v55 }
 0x261   : > { %7109 = vmatpush1.bf16.msra.mxu1 %v7108_v59 }
 0x262   : > { %7111 = vmatprep.subr.bf16.mxu1 %v7110_v60 }
 0x265   : > { %7113 = vmatpush1.bf16.msra.mxu1 %v7112_v63 }
 0x266   : > { %7115 = vmatprep.subr.bf16.mxu1 %v7114_v4 }
 0x269   : > { %7117 = vmatpush1.bf16.msra.mxu1 %v7116_v7 }
 0x26a   : > { %7119 = vmatprep.subr.bf16.mxu1 %v7118_v10 }
 0x26d   : > { %7121 = vmatpush1.bf16.msra.mxu1 %v7120_v13  ;;  %v7375_v13 = vmov 0.0  }
 0x26e   : > { %7123 = vmatprep.subr.bf16.mxu1 %v7122_v16 }
 0x271   : > { %7125 = vmatpush1.bf16.msra.mxu1 %v7124_v19 }
 0x272   : > { %6866 = vmatprep.subr.bf16.mxu1 %v7375_v13 }
 0x307   : > { %v3183_v20 = vpop.f32.mrb[100].mxu1 }
 0x308   : > { %v3192_v21 = vmax.f32 %v3183_v20, 0.0  ;;  %v3185_v22 = vpop.f32.mrb[101].mxu1 }
 0x309   : > { %v3193_v23 = vmax.f32 %v3185_v22, 0.0  ;;  %v3187_v24 = vpop.f32.mrb[102].mxu1 }
 0x30a   : > { %v8145_v25 = vmin.f32 %v3192_v21, 1.0  ;;  %v3194_v0 = vmax.f32 %v3187_v24, 0.0  ;;  %v3189_v26 = vpop.f32.mrb[103].mxu1  ;;  %v3128_v28 = vpop.f32.mrb[92].mxu0 }
 0x30b   : > { %v8147_v1 = vmin.f32 %v3193_v23, 1.0  ;;  %v3137_v29 = vmax.f32 %v3128_v28, 0.0  ;;  %v3130_v32 = vpop.f32.mrb[93].mxu0  ;;  %v3195_v33 = vmax.f32 %v3189_v26, 0.0 }
 0x30c   : > { %v3138_v34 = vmax.f32 %v3130_v32, 0.0  ;;  %v3132_v35 = vpop.f32.mrb[94].mxu0  ;;  %v3259_v38 = vmul.f32 0.587, %v8145_v25  ;;  %v8150_v40 = vmin.f32 %v3194_v0, 1.0 }
 0x30d   : > { %v3141_v36 = vmin.f32 %v3137_v29, 1.0  ;;  %v3139_v37 = vmax.f32 %v3132_v35, 0.0  ;;  %v3134_v39 = vpop.f32.mrb[95].mxu0  ;;  %v3260_v43 = vmul.f32 0.587, %v8147_v1  ;;  %v3199_v46 = vmin.f32 %v3195_v33, 1.0 }
 0x30e   : > { %v3142_v41 = vmin.f32 %v3138_v34, 1.0  ;;  %v3140_v42 = vmax.f32 %v3134_v39, 0.0  ;;  %v3261_v27 = vmul.f32 0.587, %v8150_v40  ;;  %v3451_v26 = vmul.f32 0.97, %v8145_v25 }
 0x30f   : > { %v3255_v44 = vmul.f32 0.299, %v3141_v36  ;;  %v3143_v45 = vmin.f32 %v3139_v37, 1.0  ;;  %v3262_v54 = vmul.f32 0.587, %v3199_v46 }
 0x310   : > { %v3256_v47 = vmul.f32 0.299, %v3142_v41  ;;  %v3144_v48 = vmin.f32 %v3140_v42, 1.0  ;;  %v3435_v29 = vmul.f32 0.97, %v3141_v36 }
 0x311   : > { %v3257_v50 = vmul.f32 0.299, %v3143_v45  ;;  %v3263_v52 = vadd.f32 %v3259_v38, %v3255_v44  ;;  %v3436_v32 = vmul.f32 0.97, %v3142_v41  ;;  %v3452_v33 = vmul.f32 0.97, %v8147_v1 }
 0x312   : > { %v3258_v30 = vmul.f32 0.299, %v3144_v48  ;;  %v3264_v31 = vadd.f32 %v3260_v43, %v3256_v47  ;;  %v3238_v53 = vpop.f32.mrb[96].mxu0  ;;  %v3437_v35 = vmul.f32 0.97, %v3143_v45 }
 0x313   : > { %v3247_v51 = vmax.f32 %v3238_v53, 0.0  ;;  %v3240_v55 = vpop.f32.mrb[97].mxu0  ;;  %v3265_v58 = vadd.f32 %v3261_v27, %v3257_v50  ;;  %v3438_v37 = vmul.f32 0.97, %v3144_v48  ;;  %v3453_v39 = vmul.f32 0.97, %v8150_v40 }
 0x314   : > { %v3248_v56 = vmax.f32 %v3240_v55, 0.0  ;;  %v3242_v57 = vpop.f32.mrb[98].mxu0  ;;  %v3266_v60 = vadd.f32 %v3262_v54, %v3258_v30  ;;  %v3454_v42 = vmul.f32 0.97, %v3199_v46 }
 0x315   : > { %v3251_v59 = vmin.f32 %v3247_v51, 1.0  ;;  %v3249_v61 = vmax.f32 %v3242_v57, 0.0  ;;  %v3244_v62 = vpop.f32.mrb[99].mxu0 }
 0x316   : > { %v3252_v63 = vmin.f32 %v3248_v56, 1.0  ;;  %v3250_v2 = vmax.f32 %v3244_v62, 0.0 }
 0x317   : > { %v3267_v3 = vmul.f32 0.114, %v3251_v59  ;;  %v3253_v4 = vmin.f32 %v3249_v61, 1.0  ;;  %v3467_v44 = vmul.f32 0.97, %v3251_v59 }
 0x318   : > { %v3268_v5 = vmul.f32 0.114, %v3252_v63  ;;  %v3254_v6 = vmin.f32 %v3250_v2, 1.0  ;;  %v3468_v47 = vmul.f32 0.97, %v3252_v63 }
 0x319   : > { %v3271_v7 = vadd.f32 %v3267_v3, %v3263_v52  ;;  %v3269_v8 = vmul.f32 0.114, %v3253_v4  ;;  %v3469_v52 = vmul.f32 0.97, %v3253_v4 }
 0x31a   : > { %v3270_v9 = vmul.f32 0.114, %v3254_v6  ;;  %v3272_v10 = vadd.f32 %v3268_v5, %v3264_v31  ;;  %v3470_v27 = vmul.f32 0.97, %v3254_v6 }
 0x31b   : > { %v3273_v11 = vadd.f32 %v3269_v8, %v3265_v58 }
 0x31c   : > { %3403 = vmatprep.mubr.f32.mxu1 %v3272_v10  ;;  %v3274_v12 = vadd.f32 %v3270_v9, %v3266_v60 }
 0x31d   : > { %3404 = vmatmul.mubr.f32.vlgmr.msra.gmra.mrb[104].mxu1 %v3271_v7 }
 0x31e   : > { %3409 = vmatprep.mubr.f32.mxu1 %v3274_v12 }
 0x325   : > { %3410 = vmatmul.mubr.f32.gmra.mrb[104].mxu1 %v3273_v11 }
 0x3f8   : > { %v3411_v14 = vpop.f32.mrb[104].mxu1 }
 0x3f9   : > { %v3417_v15 = vrot.slane %v3411_v14, 4  ;;  %v3413_v16 = vpop.f32.mrb[105].mxu1 }
 0x3fa   : > { %v3424_v17 = vrot.slane %v3413_v16, 4 }
 0x3fb   : > { %v3418_v18 = vadd.f32 %v3417_v15, %v3411_v14 }
 0x3fc   : > { %v3425_v19 = vadd.f32 %v3424_v17, %v3413_v16 }
 0x3fd   : > { %v3419_v20 = vrot.slane %v3418_v18, 2 }
 0x3fe   : > { %v3426_v21 = vrot.slane %v3425_v19, 2 }
 0x3ff   : > { %v3420_v22 = vadd.f32 %v3419_v20, %v3418_v18 }
 0x400   : > { %v3427_v23 = vadd.f32 %v3426_v21, %v3425_v19 }
 0x401   : > { %v3421_v24 = vrot.slane %v3420_v22, 1 }
 0x402   : > { %v3428_v0 = vrot.slane %v3427_v23, 1 }
 0x403   : > { %v3422_v28 = vadd.f32 %v3421_v24, %v3420_v22 }
 0x404   : > { %v3429_v34 = vadd.f32 %v3428_v0, %v3427_v23 }
 0x405   : > { %v3431_v38 = vmul.f32 0.0625, %v3422_v28 }
 0x406   : > { %v3432_v43 = vmul.f32 0.0625, %v3429_v34 }
 0x407   : > { %v3433_v50 = vmul.f32 0.03, %v3431_v38 }
 0x408   : > { %v3434_v30 = vmul.f32 0.03, %v3432_v43 }
 0x409   : > { %v3439_v25 = vadd.f32 %v3435_v29, %v3433_v50  ;;  %v3441_v31 = vadd.f32 %v3437_v35, %v3433_v50  ;;  %v3455_v36 = vadd.f32 %v3451_v26, %v3433_v50  ;;  %v3457_v41 = vadd.f32 %v3453_v39, %v3433_v50 }
 0x40a   : > { %v3471_v53 = vadd.f32 %v3467_v44, %v3433_v50  ;;  %v3473_v1 = vadd.f32 %v3469_v52, %v3433_v50  ;;  %v3440_v51 = vadd.f32 %v3436_v32, %v3434_v30  ;;  %v3442_v45 = vadd.f32 %v3438_v37, %v3434_v30 }
 0x40b   : > { %v3443_v48 = vmax.f32 %v3439_v25, 0.0  ;;  %v3445_v55 = vmax.f32 %v3441_v31, 0.0  ;;  %v3459_v58 = vmax.f32 %v3455_v36, 0.0  ;;  %v3461_v40 = vmax.f32 %v3457_v41, 0.0 }
 0x40c   : > { %v3475_v46 = vmax.f32 %v3471_v53, 0.0  ;;  %v3477_v54 = vmax.f32 %v3473_v1, 0.0  ;;  %v3444_v56 = vmax.f32 %v3440_v51, 0.0  ;;  %v3446_v57 = vmax.f32 %v3442_v45, 0.0 }
 0x40d   : > { %v3447_v59 = vmin.f32 %v3443_v48, 1.0  ;;  %v3449_v60 = vmin.f32 %v3445_v55, 1.0  ;;  %v3463_v61 = vmin.f32 %v3459_v58, 1.0  ;;  %v3465_v62 = vmin.f32 %v3461_v40, 1.0 }
 0x40e   : > { %v3479_v63 = vmin.f32 %v3475_v46, 1.0  ;;  %v3481_v2 = vmin.f32 %v3477_v54, 1.0  ;;  %v3448_v3 = vmin.f32 %v3444_v56, 1.0  ;;  %v3450_v4 = vmin.f32 %v3446_v57, 1.0 }
 0x40f   : > { %v3483_v5 = vmul.f32 0.299, %v3447_v59  ;;  %v3485_v6 = vmul.f32 0.299, %v3449_v60  ;;  %v3487_v7 = vmul.f32 0.587, %v3463_v61  ;;  %v3456_v8 = vadd.f32 %v3452_v33, %v3434_v30 }
 0x410   : > { %v3489_v9 = vmul.f32 0.587, %v3465_v62  ;;  %v3495_v10 = vmul.f32 0.114, %v3479_v63  ;;  %v3497_v11 = vmul.f32 0.114, %v3481_v2  ;;  %v3458_v12 = vadd.f32 %v3454_v42, %v3434_v30 }
 0x411   : > { %v3491_v14 = vadd.f32 %v3487_v7, %v3483_v5  ;;  %v3507_v15 = vmul.f32 1.02, %v3447_v59  ;;  %v3509_v16 = vmul.f32 1.02, %v3449_v60  ;;  %v3523_v17 = vmul.f32 1.02, %v3463_v61 }
 0x412   : > { %v3493_v18 = vadd.f32 %v3489_v9, %v3485_v6  ;;  %v3525_v19 = vmul.f32 1.02, %v3465_v62  ;;  %v3539_v20 = vmul.f32 1.02, %v3479_v63  ;;  %v3541_v21 = vmul.f32 1.02, %v3481_v2 }
 0x413   : > { %v3499_v22 = vadd.f32 %v3495_v10, %v3491_v14  ;;  %v3460_v23 = vmax.f32 %v3456_v8, 0.0  ;;  %v3462_v24 = vmax.f32 %v3458_v12, 0.0  ;;  %v3472_v0 = vadd.f32 %v3468_v47, %v3434_v30 }
 0x414   : > { %v3501_v26 = vadd.f32 %v3497_v11, %v3493_v18  ;;  %v3474_v28 = vadd.f32 %v3470_v27, %v3434_v30  ;;  %v3484_v29 = vmul.f32 0.299, %v3448_v3  ;;  %v3486_v32 = vmul.f32 0.299, %v3450_v4 }
 0x415   : > { %v3503_v33 = vmul.f32 -0.02, %v3499_v22  ;;  %v3464_v34 = vmin.f32 %v3460_v23, 1.0  ;;  %v3466_v35 = vmin.f32 %v3462_v24, 1.0  ;;  %v3476_v37 = vmax.f32 %v3472_v0, 0.0 }
 0x416   : > { %v3505_v38 = vmul.f32 -0.02, %v3501_v26  ;;  %v3478_v39 = vmax.f32 %v3474_v28, 0.0  ;;  %v3508_v42 = vmul.f32 1.02, %v3448_v3 }
 0x417   : > { %v3511_v43 = vadd.f32 %v3507_v15, %v3503_v33  ;;  %v3527_v44 = vadd.f32 %v3523_v17, %v3503_v33  ;;  %v3480_v50 = vmin.f32 %v3476_v37, 1.0  ;;  %v3488_v52 = vmul.f32 0.587, %v3464_v34 }
 0x418   : > { %v3513_v25 = vadd.f32 %v3509_v16, %v3505_v38  ;;  %v3529_v31 = vadd.f32 %v3525_v19, %v3505_v38  ;;  %v3482_v36 = vmin.f32 %v3478_v39, 1.0  ;;  %v3490_v41 = vmul.f32 0.587, %v3466_v35 }
 0x419   : > { %v3515_v47 = vmax.f32 %v3511_v43, 0.0  ;;  %v3531_v53 = vmax.f32 %v3527_v44, 0.0  ;;  %v3492_v27 = vadd.f32 %v3488_v52, %v3484_v29  ;;  %v3496_v30 = vmul.f32 0.114, %v3480_v50 }
 0x41a   : > { %v3517_v1 = vmax.f32 %v3513_v25, 0.0  ;;  %v3533_v51 = vmax.f32 %v3529_v31, 0.0  ;;  %v3494_v45 = vadd.f32 %v3490_v41, %v3486_v32  ;;  %v3498_v48 = vmul.f32 0.114, %v3482_v36 }
 0x41b   : > { %v8158_v55 = vmin.f32 %v3515_v47, 1.0  ;;  %v8160_v58 = vmin.f32 %v3531_v53, 1.0  ;;  %v3500_v40 = vadd.f32 %v3496_v30, %v3492_v27  ;;  %v3510_v46 = vmul.f32 1.02, %v3450_v4 }
 0x41c   : > { %v8162_v54 = vmin.f32 %v3517_v1, 1.0  ;;  %v8164_v56 = vmin.f32 %v3533_v51, 1.0  ;;  %v3502_v57 = vadd.f32 %v3498_v48, %v3494_v45  ;;  %v3524_v59 = vmul.f32 1.02, %v3464_v34 }
 0x41d   : > { %v3504_v60 = vmul.f32 -0.02, %v3500_v40  ;;  %v3526_v61 = vmul.f32 1.02, %v3466_v35  ;;  %v3540_v62 = vmul.f32 1.02, %v3480_v50  ;;  %v3543_v63 = vadd.f32 %v3539_v20, %v3503_v33 }
 0x41e   : > { %v3506_v2 = vmul.f32 -0.02, %v3502_v57  ;;  %v3542_v3 = vmul.f32 1.02, %v3482_v36  ;;  %v3545_v5 = vadd.f32 %v3541_v21, %v3505_v38  ;;  %v3555_v6 = vmax.f32 %v8158_v55, %v8160_v58 }
 0x41f   : > { %v3512_v7 = vadd.f32 %v3508_v42, %v3504_v60  ;;  %v3528_v8 = vadd.f32 %v3524_v59, %v3504_v60  ;;  %v3544_v9 = vadd.f32 %v3540_v62, %v3504_v60  ;;  %v3547_v4 = vmax.f32 %v3543_v63, 0.0 }
 0x420   : > { %v3514_v10 = vadd.f32 %v3510_v46, %v3506_v2  ;;  %v3530_v11 = vadd.f32 %v3526_v61, %v3506_v2  ;;  %v3546_v12 = vadd.f32 %v3542_v3, %v3506_v2  ;;  %v3549_v14 = vmax.f32 %v3545_v5, 0.0 }
 0x421   : > { %v3516_v15 = vmax.f32 %v3512_v7, 0.0  ;;  %v3532_v16 = vmax.f32 %v3528_v8, 0.0  ;;  %v3548_v17 = vmax.f32 %v3544_v9, 0.0  ;;  %v8168_v22 = vmin.f32 %v3547_v4, 1.0 }
 0x422   : > { %v3518_v18 = vmax.f32 %v3514_v10, 0.0  ;;  %v3534_v19 = vmax.f32 %v3530_v11, 0.0  ;;  %v3550_v20 = vmax.f32 %v3546_v12, 0.0  ;;  %v8174_v24 = vmin.f32 %v3549_v14, 1.0 }
 0x423   : > { %v8170_v21 = vmin.f32 %v3516_v15, 1.0  ;;  %v8172_v23 = vmin.f32 %v3532_v16, 1.0  ;;  %v3557_v0 = vmax.f32 %v8162_v54, %v8164_v56  ;;  %v8182_v29 = vmin.f32 %v3548_v17, 1.0 }
 0x424   : > { %v8178_v26 = vmin.f32 %v3518_v18, 1.0  ;;  %v8180_v28 = vmin.f32 %v3534_v19, 1.0  ;;  %v8185_v32 = vmax.f32 %v3555_v6, %v8168_v22  ;;  %v3563_v37 = vmin.f32 %v8158_v55, %v8160_v58 }
 0x425   : > { %v3556_v33 = vmax.f32 %v8170_v21, %v8172_v23  ;;  %v3564_v34 = vmin.f32 %v8170_v21, %v8172_v23  ;;  %v8192_v35 = vmax.f32 %v3557_v0, %v8174_v24  ;;  %v8196_v38 = vmin.f32 %v3550_v20, 1.0 }
 0x426   : > { %v3558_v39 = vmax.f32 %v8178_v26, %v8180_v28  ;;  %v3566_v42 = vmin.f32 %v8178_v26, %v8180_v28  ;;  %v3565_v43 = vmin.f32 %v8162_v54, %v8164_v56  ;;  %v3567_v52 = vmin.f32 %v3563_v37, %v8168_v22 }
 0x427   : > { %v8205_v44 = vmax.f32 %v3556_v33, %v8182_v29  ;;  %v3568_v50 = vmin.f32 %v3564_v34, %v8182_v29  ;;  %vm3587_vm3 = vcmp.le.f32.partialorder %v8185_v32, 0.0  ;;  %v3603_v19 = vsub.f32 %v8185_v32, %v8158_v55 }
 0x428   : > { %v8210_v25 = vmax.f32 %v3558_v39, %v8196_v38  ;;  %v3570_v31 = vmin.f32 %v3566_v42, %v8196_v38  ;;  %v3569_v36 = vmin.f32 %v3565_v43, %v8174_v24  ;;  %v8242_v30 = vsub.f32 %v8185_v32, %v3567_v52 }
 0x429   : > { %v8215_v41 = vsub.f32 %v8205_v44, %v3568_v50  ;;  %vm3628_vm11 = vcmp.eq.f32.partialorder %v8170_v21, %v8205_v44  ;;  %vm3632_vm13 = vcmp.eq.f32.partialorder %v8172_v23, %v8205_v44  ;;  %v3591_v59 = vsel %vm3587_vm3, 1.0, %v8185_v32 }
 0x42a   : > { %v8218_v47 = vsub.f32 %v8210_v25, %v3570_v31  ;;  %vm3630_vm12 = vcmp.eq.f32.partialorder %v8178_v26, %v8210_v25  ;;  %vm3634_vm14 = vcmp.eq.f32.partialorder %v8180_v28, %v8210_v25  ;;  %vm3636_vm0 = vmxor %vm3628_vm11, %vm7376_vm15  ;;  %v8245_v1 = vsub.f32 %v8192_v35, %v3569_v36 }
 0x42b   : > { %vm3576_vm9 = vcmp.le.f32.partialorder %v8215_v41, 0.0  ;;  %vm8247_vm8 = vmand %vm3632_vm13, %vm3636_vm0  ;;  %vm3590_vm7 = vcmp.le.f32.partialorder %v8210_v25, 0.0  ;;  %vm3575_vm5 = vcmp.le.f32.partialorder %v8242_v30, 0.0  ;;  %vm3627_vm13 = vcmp.eq.f32.partialorder %v8158_v55, %v8185_v32 }
 0x42c   : > { %vm3578_vm10 = vcmp.le.f32.partialorder %v8218_v47, 0.0  ;;  %v3580_v53 = vsel %vm3576_vm9, 1.0, %v8215_v41  ;;  %vm3588_vm9 = vcmp.le.f32.partialorder %v8205_v44, 0.0  ;;  %vm3577_vm4 = vcmp.le.f32.partialorder %v8245_v1, 0.0 }
 0x42d   : > { %v3582_v27 = vsel %vm3578_vm10, 1.0, %v8218_v47  ;;  %7287 = vrcp.f32 %v3580_v53  ;;  %vm3638_vm10 = vmxor %vm3630_vm12, %vm7376_vm15  ;;  %v3592_v48 = vsel %vm3588_vm9, 1.0, %v8205_v44  ;;  %v3579_v40 = vsel %vm3575_vm5, 1.0, %v8242_v30 }
 0x42e   : > { %7289 = vrcp.f32 %v3582_v27  ;;  %vm8252_vm6 = vmand %vm3634_vm14, %vm3638_vm10  ;;  %v3581_v46 = vsel %vm3577_vm4, 1.0, %v8245_v1  ;;  %vm3629_vm14 = vcmp.eq.f32.partialorder %v8162_v54, %v8192_v35  ;;  %vm3631_vm0 = vcmp.eq.f32.partialorder %v8160_v58, %v8185_v32 }
 0x42f   : > { %7291 = vrcp.f32 %v3579_v40  ;;  %vm3633_vm10 = vcmp.eq.f32.partialorder %v8164_v56, %v8192_v35  ;;  %vm3635_vm5 = vmxor %vm3627_vm13, %vm7376_vm15  ;;  %v3594_v57 = vsel %vm3590_vm7, 1.0, %v8210_v25  ;;  %vm3589_vm9 = vcmp.le.f32.partialorder %v8192_v35, 0.0 }
 0x430   : > { %7293 = vrcp.f32 %v3581_v46  ;;  %vm3637_vm4 = vmxor %vm3629_vm14, %vm7376_vm15  ;;  %v3604_v61 = vsub.f32 %v8205_v44, %v8170_v21  ;;  %v3612_v62 = vsub.f32 %v8205_v44, %v8172_v23  ;;  %v3620_v63 = vsub.f32 %v8205_v44, %v8182_v29 }
 0x431   : > { %vm8281_vm2 = vmand %vm3631_vm0, %vm3635_vm5  ;;  %7295 = vrcp.f32 %v3592_v48  ;;  %v3606_v5 = vsub.f32 %v8210_v25, %v8178_v26  ;;  %v3614_v6 = vsub.f32 %v8210_v25, %v8180_v28  ;;  %v3622_v7 = vsub.f32 %v8210_v25, %v8196_v38 }
 0x432   : > { %vm8291_vm7 = vmand %vm3633_vm10, %vm3637_vm4  ;;  %7297 = vrcp.f32 %v3594_v57  ;;  %v3593_v11 = vsel %vm3589_vm9, 1.0, %v8192_v35  ;;  %v3605_v28 = vsub.f32 %v8192_v35, %v8162_v54  ;;  %v3611_v34 = vsub.f32 %v8185_v32, %v8160_v58 }
 0x433   : > { %7299 = vrcp.f32 %v3591_v59  ;;  %v3619_v37 = vsub.f32 %v8185_v32, %v8168_v22  ;;  %v3613_v43 = vsub.f32 %v8192_v35, %v8164_v56  ;;  %v3621_v50 = vsub.f32 %v8192_v35, %v8174_v24 }
 0x434   : > { %7301 = vrcp.f32 %v3593_v11  ;;  %vm7377_vm4 = vmmov 0  }
 0x435   : > { %6868 = vmatprep.mubr.msk.bf16.mxu1 %vm7377_vm4, %v7375_v13 }
 0x437   : > { %v7288_v3 = vpop.eup %7287 }
 0x438   : > { %v7290_v8 = vpop.eup %7289  ;;  %v3608_v9 = vmul.f32 %v7288_v3, %v3604_v61  ;;  %v3616_v4 = vmul.f32 %v7288_v3, %v3612_v62  ;;  %v3624_v10 = vmul.f32 %v7288_v3, %v3620_v63 }
 0x439   : > { %v3610_v12 = vmul.f32 %v7290_v8, %v3606_v5  ;;  %v3618_v14 = vmul.f32 %v7290_v8, %v3614_v6  ;;  %v3626_v15 = vmul.f32 %v7290_v8, %v3622_v7  ;;  %v7292_v38 = vpop.eup %7291 }
 0x43a   : > { %v3644_v16 = vsub.f32 %v3624_v10, %v3616_v4  ;;  %v3648_v17 = vadd.f32 2.0, %v3608_v9  ;;  %v3656_v18 = vadd.f32 4.0, %v3616_v4  ;;  %v7294_v52 = vpop.eup %7293  ;;  %v3607_v36 = vmul.f32 %v7292_v38, %v3603_v19 }
 0x43b   : > { %v3646_v20 = vsub.f32 %v3626_v15, %v3618_v14  ;;  %v3650_v23 = vadd.f32 2.0, %v3610_v12  ;;  %v3658_v0 = vadd.f32 4.0, %v3618_v14  ;;  %v3615_v53 = vmul.f32 %v7292_v38, %v3611_v34  ;;  %v7296_v56 = vpop.eup %7295 }
 0x43c   : > { %v3652_v29 = vsub.f32 %v3648_v17, %v3624_v10  ;;  %v3660_v33 = vsub.f32 %v3656_v18, %v3608_v9  ;;  %v3623_v27 = vmul.f32 %v7292_v38, %v3619_v37  ;;  %v3609_v48 = vmul.f32 %v7294_v52, %v3605_v28  ;;  %v7298_v59 = vpop.eup %7297 }
 0x43d   : > { %v3654_v39 = vsub.f32 %v3650_v23, %v3626_v15  ;;  %v3662_v42 = vsub.f32 %v3658_v0, %v3610_v12  ;;  %v3617_v40 = vmul.f32 %v7294_v52, %v3613_v43  ;;  %v3625_v51 = vmul.f32 %v7294_v52, %v3621_v50  ;;  %v7300_v6 = vpop.eup %7299 }
 0x43e   : > { %v3664_v31 = vsel %vm8247_vm8, %v3652_v29, %v3660_v33  ;;  %v3643_v57 = vsub.f32 %v3623_v27, %v3615_v53  ;;  %v3647_v62 = vadd.f32 2.0, %v3607_v36  ;;  %v3649_v63 = vadd.f32 2.0, %v3609_v48  ;;  %v7302_v2 = vpop.eup %7301 }
 0x43f   : > { %v3666_v58 = vsel %vm8252_vm6, %v3654_v39, %v3662_v42  ;;  %v3668_v22 = vsel %vm3628_vm11, %v3644_v16, %v3664_v31  ;;  %v3655_v45 = vadd.f32 4.0, %v3615_v53  ;;  %v3645_v5 = vsub.f32 %v3625_v51, %v3617_v40 }
 0x440   : > { %v3670_v24 = vsel %vm3630_vm12, %v3646_v20, %v3666_v58  ;;  %v3672_v46 = vmul.f32 0.16666667, %v3668_v22  ;;  %v3657_v21 = vadd.f32 4.0, %v3617_v40  ;;  %v3651_v8 = vsub.f32 %v3647_v62, %v3623_v27 }
 0x441   : > { %v3674_v61 = vmul.f32 0.16666667, %v3670_v24  ;;  %v3653_v9 = vsub.f32 %v3649_v63, %v3625_v51  ;;  %v3659_v4 = vsub.f32 %v3655_v45, %v3607_v36  ;;  %v8337_v55 = vmul.f32 %v7296_v56, %v8215_v41 }
 0x442   : > { %v3676_v3 = vfloor.f32 %v3672_v46  ;;  %v3661_v26 = vsub.f32 %v3657_v21, %v3609_v48  ;;  %v8340_v39 = vmul.f32 %v7298_v59, %v8218_v47  ;;  %v8343_v50 = vmul.f32 %v7300_v6, %v8242_v30 }
 0x443   : > { %v3678_v7 = vfloor.f32 %v3674_v61  ;;  %v3663_v14 = vsel %vm8281_vm2, %v3651_v8, %v3659_v4  ;;  %v8346_v53 = vmul.f32 %v7302_v2, %v8245_v1 }
 0x444   : > { %v3680_v10 = vsub.f32 %v3672_v46, %v3676_v3  ;;  %v3665_v16 = vsel %vm8291_vm7, %v3653_v9, %v3661_v26  ;;  %v3667_v11 = vsel %vm3627_vm13, %v3643_v57, %v3663_v14  ;;  %vm9033_vm7 = vcmask 392448  }
 0x445   : > { %v3682_v12 = vsub.f32 %v3674_v61, %v3678_v7  ;;  %v3669_v18 = vsel %vm3629_vm14, %v3645_v5, %v3665_v16  ;;  %v3671_v19 = vmul.f32 0.16666667, %v3667_v11 }
 0x446   : > { %v3684_v15 = vadd.f32 0.01, %v3680_v10  ;;  %v3673_v23 = vmul.f32 0.16666667, %v3669_v18 }
 0x447   : > { %v3686_v17 = vadd.f32 0.01, %v3682_v12  ;;  %v3675_v28 = vfloor.f32 %v3671_v19 }
 0x448   : > { %v3688_v20 = vfloor.f32 %v3684_v15  ;;  %v3677_v29 = vfloor.f32 %v3673_v23 }
 0x449   : > { %v3690_v0 = vfloor.f32 %v3686_v17  ;;  %v3679_v34 = vsub.f32 %v3671_v19, %v3675_v28 }
 0x44a   : > { %v3692_v60 = vsub.f32 %v3684_v15, %v3688_v20  ;;  %v3681_v38 = vsub.f32 %v3673_v23, %v3677_v29 }
 0x44b   : > { %v3694_v33 = vsub.f32 %v3686_v17, %v3690_v0  ;;  %v3683_v42 = vadd.f32 0.01, %v3679_v34 }
 0x44c   : > { %v3696_v37 = vmul.f32 6.0, %v3692_v60  ;;  %v3685_v52 = vadd.f32 0.01, %v3681_v38 }
 0x44d   : > { %v3698_v54 = vmul.f32 6.0, %v3694_v33  ;;  %v3687_v27 = vfloor.f32 %v3683_v42 }
 0x44e   : > { %v3700_v43 = vadd.f32 5.0, %v3696_v37  ;;  %v3752_v31 = vadd.f32 3.0, %v3696_v37  ;;  %v3689_v41 = vfloor.f32 %v3685_v52  ;;  %v8348_v22 = vadd.f32 1.0, %v3696_v37 }
 0x44f   : > { %v3702_v36 = vadd.f32 5.0, %v3698_v54  ;;  %v3754_v58 = vadd.f32 3.0, %v3698_v54  ;;  %v3691_v48 = vsub.f32 %v3683_v42, %v3687_v27  ;;  %v8358_v63 = vadd.f32 1.0, %v3698_v54 }
 0x450   : > { %vm3704_vm2 = vcmp.ge.f32.partialorder %v3700_v43, 6.0  ;;  %vm3756_vm3 = vcmp.ge.f32.partialorder %v3752_v31, 6.0  ;;  %v3693_v56 = vsub.f32 %v3685_v52, %v3689_v41  ;;  %vm3808_vm14 = vcmp.ge.f32.partialorder %v8348_v22, 6.0 }
 0x451   : > { %vm3706_vm6 = vcmp.ge.f32.partialorder %v3702_v36, 6.0  ;;  %v3708_v47 = vsel %vm3704_vm2, 6.0, %v7375_v13  ;;  %vm3758_vm8 = vcmp.ge.f32.partialorder %v3754_v58, 6.0  ;;  %v3760_v24 = vsel %vm3756_vm3, 6.0, %v7375_v13  ;;  %vm9034_vm2 = vmmov %vm9033_vm7 }
 0x452   : > { %v3710_v30 = vsel %vm3706_vm6, 6.0, %v7375_v13  ;;  %v3712_v40 = vsub.f32 %v3700_v43, %v3708_v47  ;;  %v8353_v46 = vmul.f32 6.0, %v3691_v48  ;;  %v3762_v51 = vsel %vm3758_vm8, 6.0, %v7375_v13  ;;  %vm9037_vm8 = vmmov %vm9034_vm2 }
 0x453   : > { %v3714_v1 = vsub.f32 %v3702_v36, %v3710_v30  ;;  %v3764_v57 = vsub.f32 %v3752_v31, %v3760_v24  ;;  %v8356_v61 = vmul.f32 6.0, %v3693_v56  ;;  %v3766_v62 = vsub.f32 %v3754_v58, %v3762_v51 }
 0x454   : > { %v3716_v59 = vsub.f32 4.0, %v3712_v40  ;;  %v3699_v3 = vadd.f32 5.0, %v8353_v46  ;;  %v3751_v21 = vadd.f32 3.0, %v8353_v46  ;;  %vm3810_vm0 = vcmp.ge.f32.partialorder %v8358_v63, 6.0 }
 0x455   : > { %v3718_v45 = vsub.f32 4.0, %v3714_v1  ;;  %v3768_v5 = vsub.f32 4.0, %v3764_v57  ;;  %v3701_v7 = vadd.f32 5.0, %v8356_v61  ;;  %v3770_v8 = vsub.f32 4.0, %v3766_v62 }
 0x456   : > { %v3720_v6 = vmin.f32 %v3712_v40, %v3716_v59  ;;  %v3753_v9 = vadd.f32 3.0, %v8356_v61  ;;  %vm3703_vm11 = vcmp.ge.f32.partialorder %v3699_v3, 6.0  ;;  %vm3755_vm12 = vcmp.ge.f32.partialorder %v3751_v21, 6.0 }
 0x457   : > { %v3722_v4 = vmin.f32 %v3714_v1, %v3718_v45  ;;  %v3772_v10 = vmin.f32 %v3764_v57, %v3768_v5  ;;  %vm3705_vm15 = vcmp.ge.f32.partialorder %v3701_v7, 6.0  ;;  %v3707_v12 = vsel %vm3703_vm11, 6.0, %v7375_v13  ;;  %vm9038_vm11 = vmmov %vm9034_vm2 }
 0x458   : > { %v3724_v26 = vmin.f32 %v3720_v6, 1.0  ;;  %v3774_v14 = vmin.f32 %v3766_v62, %v3770_v8  ;;  %v3709_v16 = vsel %vm3705_vm15, 6.0, %v7375_v13  ;;  %v3711_v11 = vsub.f32 %v3699_v3, %v3707_v12 }
 0x459   : > { %v3726_v15 = vmin.f32 %v3722_v4, 1.0  ;;  %v3776_v17 = vmin.f32 %v3772_v10, 1.0  ;;  %v3713_v19 = vsub.f32 %v3701_v7, %v3709_v16  ;;  %vm3757_vm13 = vcmp.ge.f32.partialorder %v3753_v9, 6.0 }
 0x45a   : > { %v3728_v18 = vmax.f32 %v3724_v26, 0.0  ;;  %v3778_v20 = vmin.f32 %v3774_v14, 1.0  ;;  %v3715_v0 = vsub.f32 4.0, %v3711_v11  ;;  %v3759_v60 = vsel %vm3755_vm12, 6.0, %v7375_v13 }
 0x45b   : > { %v3730_v23 = vmax.f32 %v3726_v15, 0.0  ;;  %v3780_v28 = vmax.f32 %v3776_v17, 0.0  ;;  %v3717_v33 = vsub.f32 4.0, %v3713_v19  ;;  %v3761_v2 = vsel %vm3757_vm13, 6.0, %v7375_v13  ;;  %vm9041_vm13 = vmmov %vm9034_vm2 }
 0x45c   : > { %v3732_v29 = vmul.f32 %v3728_v18, %v8337_v55  ;;  %v3782_v34 = vmax.f32 %v3778_v20, 0.0  ;;  %v3719_v38 = vmin.f32 %v3711_v11, %v3715_v0  ;;  %v3763_v42 = vsub.f32 %v3751_v21, %v3759_v60 }
 0x45d   : > { %v3734_v37 = vmul.f32 %v3730_v23, %v8340_v39  ;;  %v3784_v54 = vmul.f32 %v3780_v28, %v8337_v55  ;;  %v3721_v52 = vmin.f32 %v3713_v19, %v3717_v33  ;;  %v3765_v36 = vsub.f32 %v3753_v9, %v3761_v2 }
 0x45e   : > { %v3736_v43 = vsub.f32 1.0, %v3732_v29  ;;  %v3786_v31 = vmul.f32 %v3782_v34, %v8340_v39  ;;  %v3723_v58 = vmin.f32 %v3719_v38, 1.0  ;;  %v3767_v47 = vsub.f32 4.0, %v3763_v42 }
 0x45f   : > { %v3738_v27 = vsub.f32 1.0, %v3734_v37  ;;  %v3788_v41 = vsub.f32 1.0, %v3784_v54  ;;  %v3725_v30 = vmin.f32 %v3721_v52, 1.0  ;;  %v3769_v56 = vsub.f32 4.0, %v3765_v36 }
 0x460   : > { %v3740_v48 = vmul.f32 %v3736_v43, %v8205_v44  ;;  %v3790_v40 = vsub.f32 1.0, %v3786_v31  ;;  %v3727_v1 = vmax.f32 %v3723_v58, 0.0  ;;  %v3771_v57 = vmin.f32 %v3763_v42, %v3767_v47 }
 0x461   : > { %v3742_v24 = vmul.f32 %v3738_v27, %v8210_v25  ;;  %v3792_v51 = vmul.f32 %v3788_v41, %v8205_v44  ;;  %v3729_v62 = vmax.f32 %v3725_v30, 0.0  ;;  %v3773_v3 = vmin.f32 %v3765_v36, %v3769_v56 }
 0x462   : > { %v3744_v59 = vmax.f32 %v3740_v48, 0.0  ;;  %v3794_v45 = vmul.f32 %v3790_v40, %v8210_v25  ;;  %v3731_v21 = vmul.f32 %v3727_v1, %v8343_v50  ;;  %v3775_v7 = vmin.f32 %v3771_v57, 1.0 }
 0x463   : > { %v3746_v5 = vmax.f32 %v3742_v24, 0.0  ;;  %v3796_v6 = vmax.f32 %v3792_v51, 0.0  ;;  %v3733_v9 = vmul.f32 %v3729_v62, %v8346_v53  ;;  %v3777_v10 = vmin.f32 %v3773_v3, 1.0  ;;  %v7285_v24 = vld [vmem:[%s9004_s3] sm:$0xff]  }
 0x464   : > { %v3748_v8 = vmin.f32 %v3744_v59, 1.0  ;;  %v3798_v4 = vmax.f32 %v3794_v45, 0.0  ;;  %v3735_v12 = vsub.f32 1.0, %v3731_v21  ;;  %v3779_v15 = vmax.f32 %v3775_v7, 0.0 }
 0x465   : > { %v3750_v26 = vmin.f32 %v3746_v5, 1.0  ;;  %v3800_v14 = vmin.f32 %v3796_v6, 1.0  ;;  %v3737_v16 = vsub.f32 1.0, %v3733_v9  ;;  %v3781_v17 = vmax.f32 %v3777_v10, 0.0 }
 0x466   : > { %v3802_v11 = vmin.f32 %v3798_v4, 1.0  ;;  %v3812_v18 = vsel %vm3808_vm14, 6.0, %v7375_v13  ;;  %v3739_v20 = vmul.f32 %v3735_v12, %v8185_v32  ;;  %v3783_v23 = vmul.f32 %v3779_v15, %v8343_v50  ;;  %vm9042_vm14 = vmmov %vm9034_vm2 }
 0x467   : > { %v3858_v19 = vpack.c.bf16 %v3750_v26, %v3748_v8  ;;  %v3814_v0 = vsel %vm3810_vm0, 6.0, %v7375_v13  ;;  %v3741_v28 = vmul.f32 %v3737_v16, %v8192_v35  ;;  %v3785_v29 = vmul.f32 %v3781_v17, %v8346_v53 }
 0x468   : > { %v3915_v60 = vpack.c.bf16 %v3802_v11, %v3800_v14  ;;  %v3816_v33 = vsub.f32 %v8348_v22, %v3812_v18  ;;  %v3743_v34 = vmax.f32 %v3739_v20, 0.0  ;;  %v3787_v2 = vsub.f32 1.0, %v3783_v23 }
 0x469   : > { %3867 = vmatprep.subr.bf16.mxu0 %v3858_v19  ;;  %v3818_v37 = vsub.f32 %v8358_v63, %v3814_v0  ;;  %v3803_v38 = vadd.f32 1.0, %v8353_v46  ;;  %v3745_v54 = vmax.f32 %v3741_v28, 0.0  ;;  %v3789_v42 = vsub.f32 1.0, %v3785_v29 }
 0x46a   : > { %v3820_v43 = vsub.f32 4.0, %v3816_v33  ;;  %v3805_v52 = vadd.f32 1.0, %v8356_v61  ;;  %v3747_v31 = vmin.f32 %v3743_v34, 1.0  ;;  %v3791_v36 = vmul.f32 %v3787_v2, %v8185_v32 }
 0x46b   : > { %v3822_v27 = vsub.f32 4.0, %v3818_v37  ;;  %vm3807_vm10 = vcmp.ge.f32.partialorder %v3803_v38, 6.0  ;;  %v3749_v58 = vmin.f32 %v3745_v54, 1.0  ;;  %v3793_v22 = vmul.f32 %v3789_v42, %v8192_v35 }
 0x46c   : > { %v3824_v41 = vmin.f32 %v3816_v33, %v3820_v43  ;;  %vm3809_vm5 = vcmp.ge.f32.partialorder %v3805_v52, 6.0  ;;  %v3795_v47 = vmax.f32 %v3791_v36, 0.0  ;;  %v3811_v63 = vsel %vm3807_vm10, 6.0, %v7375_v13 }
 0x46d   : > { %v3826_v48 = vmin.f32 %v3818_v37, %v3822_v27  ;;  %v3813_v46 = vsel %vm3809_vm5, 6.0, %v7375_v13  ;;  %v3857_v30 = vpack.c.bf16 %v3749_v58, %v3747_v31  ;;  %v3797_v40 = vmax.f32 %v3793_v22, 0.0 }
 0x46e   : > { %v3828_v56 = vmin.f32 %v3824_v41, 1.0  ;;  %v3815_v61 = vsub.f32 %v3803_v38, %v3811_v63  ;;  %v3799_v1 = vmin.f32 %v3795_v47, 1.0  ;;  %v3817_v57 = vsub.f32 %v3805_v52, %v3813_v46 }
 0x46f   : > { %v3830_v51 = vmin.f32 %v3826_v48, 1.0  ;;  %3868 = vmatpush1.bf16.msra.mxu0 %v3857_v30  ;;  %v3801_v59 = vmin.f32 %v3797_v40, 1.0  ;;  %vm9043_vm0 = vcmask 523648   ;;  %vm9045_vm5 = vcmask 654848  }
 0x470   : > { %v3832_v62 = vmax.f32 %v3828_v56, 0.0  ;;  %v3819_v45 = vsub.f32 4.0, %v3815_v61  ;;  %3916 = vmatprep.subr.bf16.mxu0 %v3915_v60  ;;  %v3821_v5 = vsub.f32 4.0, %v3817_v57  ;;  %vm9044_vm10 = vmmov %vm9043_vm0 }
 0x471   : > { %v3834_v3 = vmax.f32 %v3830_v51, 0.0  ;;  %v3914_v21 = vpack.c.bf16 %v3801_v59, %v3799_v1 }
 0x472   : > { %v3836_v6 = vmul.f32 %v3832_v62, %v8337_v55  ;;  %v3823_v7 = vmin.f32 %v3815_v61, %v3819_v45  ;;  %6239 = vmatmul.mubr.msk.bf16.vlgmr.msra.gmra.mrb[100].mxu0 %vm420_vm1, %v7285_v24  ;;  %v3825_v9 = vmin.f32 %v3817_v57, %v3821_v5 }
 0x473   : > { %v3838_v8 = vmul.f32 %v3834_v3, %v8340_v39  ;;  %3917 = vmatpush1.bf16.msra.mxu0 %v3914_v21  ;;  %3948 = vmatprep.mubr.bf16.mxu0 %v7374_v49 }
 0x474   : > { %v3840_v4 = vsub.f32 1.0, %v3836_v6  ;;  %v3827_v10 = vmin.f32 %v3823_v7, 1.0  ;;  %v3829_v12 = vmin.f32 %v3825_v9, 1.0 }
 0x475   : > { %v3842_v26 = vsub.f32 1.0, %v3838_v8 }
 0x476   : > { %v3844_v14 = vmul.f32 %v3840_v4, %v8205_v44  ;;  %v3831_v15 = vmax.f32 %v3827_v10, 0.0  ;;  %v3833_v11 = vmax.f32 %v3829_v12, 0.0 }
 0x477   : > { %v3846_v16 = vmul.f32 %v3842_v26, %v8210_v25 }
 0x478   : > { %v3848_v55 = vmax.f32 %v3844_v14, 0.0  ;;  %v3835_v17 = vmul.f32 %v3831_v15, %v8343_v50  ;;  %v3837_v39 = vmul.f32 %v3833_v11, %v8346_v53 }
 0x479   : > { %v3850_v18 = vmax.f32 %v3846_v16, 0.0 }
 0x47a   : > { %v3852_v19 = vmin.f32 %v3848_v55, 1.0  ;;  %v3839_v20 = vsub.f32 1.0, %v3835_v17  ;;  %6240 = vmatmul.mubr.msk.bf16.vlgmr.msra.gmra.mrb[104].mxu0 %vm420_vm1, %v7285_v24  ;;  %v3841_v0 = vsub.f32 1.0, %v3837_v39 }
 0x47b   : > { %v3854_v23 = vmin.f32 %v3850_v18, 1.0  ;;  %3997 = vmatprep.mubr.bf16.mxu0 %v7374_v49 }
 0x47c   : > { %v3843_v28 = vmul.f32 %v3839_v20, %v8185_v32  ;;  %v3845_v25 = vmul.f32 %v3841_v0, %v8192_v35  ;;  %v8419_v32 = vld [vmem:[%s9005_s4] sm:$0xff]  }
 0x47d   : > { %v3964_v44 = vpack.c.bf16 %v3854_v23, %v3852_v19  ;;  %6867 = vmatpush3.bf16.msra.mxu1 %v8419_v32 }
 0x47e   : > { %v3847_v60 = vmax.f32 %v3843_v28, 0.0  ;;  %v3849_v29 = vmax.f32 %v3845_v25, 0.0  ;;  %6894 = vmatprep.subr.bf16.mxu1 %v7375_v13 }
 0x47f   : > { %3965 = vmatprep.subr.bf16.mxu0 %v3964_v44 }
 0x480   : > { %v3851_v50 = vmin.f32 %v3847_v60, 1.0  ;;  %v3853_v33 = vmin.f32 %v3849_v29, 1.0 }
 0x482   : > { %v3963_v34 = vpack.c.bf16 %v3853_v33, %v3851_v50 }
 0x484   : > { %3966 = vmatpush1.bf16.msra.mxu0 %v3963_v34 }
 0x485   : > { %6838 = vmatprep.subr.bf16.mxu0 %v7375_v13 }
 0x487   : > { %6241 = vmatmul.mubr.msk.bf16.vlgmr.msra.gmra.mrb[108].mxu0 %vm420_vm1, %v7285_v24 }
 0x488   : > { %6839 = vmatpush3.bf16.msra.mxu0 %v8419_v32  ;;  %6840 = vmatprep.mubr.msk.bf16.mxu0 %vm7377_vm4, %v7375_v13 }
 0x489   : > { %6852 = vmatprep.subr.bf16.mxu0 %v7375_v13 }
 0x545   : > { %v3901_v49 = vpop.f32.mrb[100].mxu0 }
 0x546   : > { %v3903_v35 = vpop.f32.mrb[101].mxu0 }
 0x547   : > { %v3905_v53 = vpop.f32.mrb[102].mxu0 }
 0x548   : > { %v3910_v2 = vpack.c.bf16 %v3905_v53, %v3901_v49  ;;  %v3907_v37 = vpop.f32.mrb[103].mxu0 }
 0x549   : > { %v8429_v38 = vpack.c.bf16 %v3907_v37, %v3903_v35 }
 0x54a   : > { %4107 = vrot.lane.b32.xlu0 %v3910_v2, %s7373_s9  ;;  %6841 = vmatmul.mubr.msk.bf16.vlgmr.msra.gmra.mrb[112].mxu0 %vm420_vm1, %v3910_v2 }
 0x54b   : > { %6844 = vmatprep.mubr.msk.bf16.mxu0 %vm7377_vm4, %v7375_v13  ;;  %6853 = vmatpush3.bf16.msra.mxu0 %v8419_v32 }
 0x54c   : > { %6880 = vmatprep.subr.bf16.mxu0 %v7375_v13 }
 0x54d   : > { %v3950_v54 = vpop.f32.mrb[104].mxu0 }
 0x54e   : > { %v3952_v42 = vpop.f32.mrb[105].mxu0 }
 0x54f   : > { %v3954_v43 = vpop.f32.mrb[106].mxu0 }
 0x550   : > { %v3959_v52 = vpack.c.bf16 %v3954_v43, %v3950_v54  ;;  %v3956_v31 = vpop.f32.mrb[107].mxu0 }
 0x551   : > { %v8437_v36 = vpack.c.bf16 %v3956_v31, %v3952_v42 }
 0x552   : > { %4109 = vrot.lane.b32.xlu1 %v3959_v52, %s7373_s9  ;;  %6845 = vmatmul.mubr.msk.bf16.gmra.mrb[116].mxu0 %vm420_vm1, %v3959_v52 }
 0x553   : > { %6848 = vmatprep.mubr.msk.bf16.mxu0 %vm7377_vm4, %v7375_v13 }
 0x556   : > { %4221 = vrot.lane.b32.xlu1 %v3910_v2, %s7372_s29 }
 0x55a   : > { %v3999_v27 = vpop.f32.mrb[108].mxu0  ;;  %4223 = vrot.lane.b32.xlu1 %v3959_v52, %s7372_s29 }
 0x55b   : > { %v4001_v58 = vpop.f32.mrb[109].mxu0 }
 0x55c   : > { %v4003_v22 = vpop.f32.mrb[110].mxu0 }
 0x55d   : > { %v4008_v41 = vpack.c.bf16 %v4003_v22, %v3999_v27  ;;  %v4005_v47 = vpop.f32.mrb[111].mxu0 }
 0x55e   : > { %v8445_v48 = vpack.c.bf16 %v4005_v47, %v4001_v58 }
 0x55f   : > { %4111 = vrot.lane.b32.xlu0 %v4008_v41, %s7373_s9  ;;  %4225 = vrot.lane.b32.xlu1 %v4008_v41, %s7372_s29 }
 0x560   : > { %6849 = vmatmul.mubr.msk.bf16.gmra.mrb[120].mxu0 %vm420_vm1, %v4008_v41 }
 0x561   : > { %6854 = vmatprep.mubr.msk.bf16.mxu0 %vm7377_vm4, %v7375_v13 }
 0x563   : > { %4335 = vrot.lane.b32.xlu0 %v3910_v2, %s7371_s28  ;;  %4449 = vrot.lane.b32.xlu1 %v3910_v2, %s7370_s26 }
 0x567   : > { %4337 = vrot.lane.b32.xlu0 %v3959_v52, %s7371_s28  ;;  %4451 = vrot.lane.b32.xlu1 %v3959_v52, %s7370_s26 }
 0x56b   : > { %4339 = vrot.lane.b32.xlu0 %v4008_v41, %s7371_s28  ;;  %4453 = vrot.lane.b32.xlu1 %v4008_v41, %s7370_s26 }
 0x56f   : > { %4563 = vrot.lane.b32.xlu0 %v3910_v2, %s7369_s20  ;;  %4677 = vrot.lane.b32.xlu1 %v3910_v2, %s9029_s18 }
 0x573   : > { %4565 = vrot.lane.b32.xlu0 %v3959_v52, %s7369_s20  ;;  %4679 = vrot.lane.b32.xlu1 %v3959_v52, %s9029_s18 }
 0x577   : > { %4567 = vrot.lane.b32.xlu0 %v4008_v41, %s7369_s20  ;;  %4681 = vrot.lane.b32.xlu1 %v4008_v41, %s9029_s18 }
 0x57b   : > { %4791 = vrot.lane.b32.xlu0 %v3910_v2, %s9030_s19  ;;  %4986 = vrot.lane.b32.xlu1 %v8429_v38, %s7373_s9 }
 0x57f   : > { %4793 = vrot.lane.b32.xlu0 %v3959_v52, %s9030_s19  ;;  %4990 = vrot.lane.b32.xlu1 %v8445_v48, %s7373_s9 }
 0x583   : > { %4795 = vrot.lane.b32.xlu0 %v4008_v41, %s9030_s19  ;;  %5214 = vrot.lane.b32.xlu1 %v8429_v38, %s7371_s28 }
 0x587   : > { %4988 = vrot.lane.b32.xlu0 %v8437_v36, %s7373_s9  ;;  %5216 = vrot.lane.b32.xlu1 %v8437_v36, %s7371_s28 }
 0x58b   : > { %5100 = vrot.lane.b32.xlu0 %v8429_v38, %s7372_s29  ;;  %5218 = vrot.lane.b32.xlu1 %v8445_v48, %s7371_s28 }
 0x58f   : > { %5102 = vrot.lane.b32.xlu0 %v8437_v36, %s7372_s29  ;;  %5442 = vrot.lane.b32.xlu1 %v8429_v38, %s7369_s20 }
 0x593   : > { %5104 = vrot.lane.b32.xlu0 %v8445_v48, %s7372_s29  ;;  %5444 = vrot.lane.b32.xlu1 %v8437_v36, %s7369_s20 }
 0x597   : > { %5328 = vrot.lane.b32.xlu0 %v8429_v38, %s7370_s26  ;;  %5446 = vrot.lane.b32.xlu1 %v8445_v48, %s7369_s20 }
 0x59b   : > { %5330 = vrot.lane.b32.xlu0 %v8437_v36, %s7370_s26  ;;  %5670 = vrot.lane.b32.xlu1 %v8429_v38, %s9030_s19 }
 0x59f   : > { %5332 = vrot.lane.b32.xlu0 %v8445_v48, %s7370_s26  ;;  %5672 = vrot.lane.b32.xlu1 %v8437_v36, %s9030_s19 }
 0x5a3   : > { %5556 = vrot.lane.b32.xlu0 %v8429_v38, %s9029_s18  ;;  %5674 = vrot.lane.b32.xlu1 %v8445_v48, %s9030_s19 }
 0x5a7   : > { %5558 = vrot.lane.b32.xlu0 %v8437_v36, %s9029_s18 }
 0x5ab   : > { %5560 = vrot.lane.b32.xlu0 %v8445_v48, %s9029_s18 }
 0x5bc   : > { %v4108_v63 = vpop.permute.xlu0 %4107 }
 0x5bd   : > { %6855 = vmatmul.mubr.msk.bf16.vlgmr.msra.gmra.mrb[124].mxu0 %vm420_vm1, %v4108_v63 }
 0x5be   : > { %6858 = vmatprep.mubr.msk.bf16.mxu0 %vm7377_vm4, %v7375_v13  ;;  %6881 = vmatpush3.bf16.msra.mxu0 %v8419_v32 }
 0x5bf   : > { %6908 = vmatprep.subr.bf16.mxu0 %v7375_v13 }
 0x5c4   : > { %v4110_v46 = vpop.permute.xlu1 %4109 }
 0x5c5   : > { %6859 = vmatmul.mubr.msk.bf16.gmra.mrb[128].mxu0 %vm420_vm1, %v4110_v46 }
 0x5c6   : > { %6862 = vmatprep.mubr.msk.bf16.mxu0 %vm7377_vm4, %v7375_v13 }
 0x5c8   : > { %v4222_v30 = vpop.permute.xlu1 %4221 }
 0x5c9   : > { %6869 = vmatmul.mubr.msk.bf16.vlgmr.msra.gmra.mrb[108].mxu1 %vm420_vm1, %v4222_v30 }
 0x5ca   : > { %6872 = vmatprep.mubr.msk.bf16.mxu1 %vm7377_vm4, %v7375_v13  ;;  %6895 = vmatpush3.bf16.msra.mxu1 %v8419_v32 }
 0x5cb   : > { %6922 = vmatprep.subr.bf16.mxu1 %v7375_v13 }
 0x5cc   : > { %v4224_v40 = vpop.permute.xlu1 %4223 }
 0x5d1   : > { %v4112_v56 = vpop.permute.xlu0 %4111  ;;  %6873 = vmatmul.mubr.msk.bf16.gmra.mrb[112].mxu1 %vm420_vm1, %v4224_v40  ;;  %v4226_v61 = vpop.permute.xlu1 %4225 }
 0x5d2   : > { %6863 = vmatmul.mubr.msk.bf16.gmra.mrb[132].mxu0 %vm420_vm1, %v4112_v56  ;;  %6876 = vmatprep.mubr.msk.bf16.mxu1 %vm7377_vm4, %v7375_v13 }
 0x5d3   : > { %6882 = vmatprep.mubr.msk.bf16.mxu0 %vm7377_vm4, %v7375_v13 }
 0x5d5   : > { %v4336_v24 = vpop.permute.xlu0 %4335  ;;  %v4450_v1 = vpop.permute.xlu1 %4449 }
 0x5d9   : > { %6877 = vmatmul.mubr.msk.bf16.gmra.mrb[116].mxu1 %vm420_vm1, %v4226_v61  ;;  %v4338_v51 = vpop.permute.xlu0 %4337  ;;  %v4452_v57 = vpop.permute.xlu1 %4451 }
 0x5da   : > { %6883 = vmatmul.mubr.msk.bf16.vlgmr.msra.gmra.mrb[136].mxu0 %vm420_vm1, %v4336_v24  ;;  %6896 = vmatprep.mubr.msk.bf16.mxu1 %vm7377_vm4, %v7375_v13 }
 0x5db   : > { %6886 = vmatprep.mubr.msk.bf16.mxu0 %vm7377_vm4, %v7375_v13  ;;  %6909 = vmatpush3.bf16.msra.mxu0 %v8419_v32 }
 0x5dc   : > { %6936 = vmatprep.subr.bf16.mxu0 %v7375_v13 }
 0x5dd   : > { %v4340_v59 = vpop.permute.xlu0 %4339  ;;  %v4454_v62 = vpop.permute.xlu1 %4453 }
 0x5e1   : > { %6897 = vmatmul.mubr.msk.bf16.vlgmr.msra.gmra.mrb[120].mxu1 %vm420_vm1, %v4450_v1  ;;  %v4564_v45 = vpop.permute.xlu0 %4563  ;;  %v4678_v3 = vpop.permute.xlu1 %4677 }
 0x5e2   : > { %6887 = vmatmul.mubr.msk.bf16.gmra.mrb[140].mxu0 %vm420_vm1, %v4338_v51  ;;  %6900 = vmatprep.mubr.msk.bf16.mxu1 %vm7377_vm4, %v7375_v13 }
 0x5e3   : > { %6890 = vmatprep.mubr.msk.bf16.mxu0 %vm7377_vm4, %v7375_v13  ;;  %6923 = vmatpush3.bf16.msra.mxu1 %v8419_v32 }
 0x5e4   : > { %6950 = vmatprep.subr.bf16.mxu1 %v7375_v13 }
 0x5e5   : > { %v4566_v5 = vpop.permute.xlu0 %4565  ;;  %v4680_v21 = vpop.permute.xlu1 %4679 }
 0x5e9   : > { %6901 = vmatmul.mubr.msk.bf16.gmra.mrb[124].mxu1 %vm420_vm1, %v4452_v57  ;;  %v4568_v6 = vpop.permute.xlu0 %4567  ;;  %v4682_v7 = vpop.permute.xlu1 %4681 }
 0x5ea   : > { %6891 = vmatmul.mubr.msk.bf16.gmra.mrb[144].mxu0 %vm420_vm1, %v4340_v59  ;;  %6904 = vmatprep.mubr.msk.bf16.mxu1 %vm7377_vm4, %v7375_v13 }
 0x5eb   : > { %6910 = vmatprep.mubr.msk.bf16.mxu0 %vm7377_vm4, %v7375_v13 }
 0x5ed   : > { %v4792_v8 = vpop.permute.xlu0 %4791  ;;  %v4987_v11 = vpop.permute.xlu1 %4986 }
 0x5f1   : > { %6905 = vmatmul.mubr.msk.bf16.gmra.mrb[128].mxu1 %vm420_vm1, %v4454_v62  ;;  %v4794_v9 = vpop.permute.xlu0 %4793  ;;  %v4991_v44 = vpop.permute.xlu1 %4990 }
 0x5f2   : > { %6911 = vmatmul.mubr.msk.bf16.vlgmr.msra.gmra.mrb[148].mxu0 %vm420_vm1, %v4564_v45  ;;  %6924 = vmatprep.mubr.msk.bf16.mxu1 %vm7377_vm4, %v7375_v13 }
 0x5f3   : > { %6914 = vmatprep.mubr.msk.bf16.mxu0 %vm7377_vm4, %v7375_v13  ;;  %6937 = vmatpush3.bf16.msra.mxu0 %v8419_v32 }
 0x5f4   : > { %6964 = vmatprep.subr.bf16.mxu0 %v7375_v13 }
 0x5f5   : > { %v4796_v4 = vpop.permute.xlu0 %4795  ;;  %v5215_v35 = vpop.permute.xlu1 %5214 }
 0x5f9   : > { %6925 = vmatmul.mubr.msk.bf16.vlgmr.msra.gmra.mrb[132].mxu1 %vm420_vm1, %v4678_v3  ;;  %v4989_v55 = vpop.permute.xlu0 %4988  ;;  %v5217_v2 = vpop.permute.xlu1 %5216 }
 0x5fa   : > { %6915 = vmatmul.mubr.msk.bf16.gmra.mrb[152].mxu0 %vm420_vm1, %v4566_v5  ;;  %6928 = vmatprep.mubr.msk.bf16.mxu1 %vm7377_vm4, %v7375_v13 }
 0x5fb   : > { %6918 = vmatprep.mubr.msk.bf16.mxu0 %vm7377_vm4, %v7375_v13  ;;  %6951 = vmatpush3.bf16.msra.mxu1 %v8419_v32 }
 0x5fc   : > { %6978 = vmatprep.subr.bf16.mxu1 %v7375_v13 }
 0x5fd   : > { %v5101_v20 = vpop.permute.xlu0 %5100 }
 0x601   : > { %6929 = vmatmul.mubr.msk.bf16.gmra.mrb[136].mxu1 %vm420_vm1, %v4680_v21  ;;  %v5103_v28 = vpop.permute.xlu0 %5102 }
 0x602   : > { %6919 = vmatmul.mubr.msk.bf16.gmra.mrb[156].mxu0 %vm420_vm1, %v4568_v6  ;;  %6932 = vmatprep.mubr.msk.bf16.mxu1 %vm7377_vm4, %v7375_v13 }
 0x603   : > { %6938 = vmatprep.mubr.msk.bf16.mxu0 %vm7377_vm4, %v7375_v13 }
 0x605   : > { %v5105_v49 = vpop.permute.xlu0 %5104 }
 0x609   : > { %6933 = vmatmul.mubr.msk.bf16.gmra.mrb[140].mxu1 %vm420_vm1, %v4682_v7  ;;  %v5329_v53 = vpop.permute.xlu0 %5328 }
 0x60a   : > { %6939 = vmatmul.mubr.msk.bf16.vlgmr.msra.gmra.mrb[160].mxu0 %vm420_vm1, %v4792_v8  ;;  %6952 = vmatprep.mubr.msk.bf16.mxu1 %vm7377_vm4, %v7375_v13 }
 0x60b   : > { %6942 = vmatprep.mubr.msk.bf16.mxu0 %vm7377_vm4, %v7375_v13  ;;  %6965 = vmatpush3.bf16.msra.mxu0 %v8419_v32 }
 0x60c   : > { %6992 = vmatprep.subr.bf16.mxu0 %v7375_v13 }
 0x60d   : > { %v5331_v37 = vpop.permute.xlu0 %5330 }
 0x611   : > { %6953 = vmatmul.mubr.msk.bf16.vlgmr.msra.gmra.mrb[144].mxu1 %vm420_vm1, %v8429_v38  ;;  %v5219_v38 = vpop.permute.xlu1 %5218  ;;  %v5333_v54 = vpop.permute.xlu0 %5332 }
 0x612   : > { %6943 = vmatmul.mubr.msk.bf16.gmra.mrb[164].mxu0 %vm420_vm1, %v4794_v9  ;;  %6956 = vmatprep.mubr.msk.bf16.mxu1 %vm7377_vm4, %v7375_v13 }
 0x613   : > { %6946 = vmatprep.mubr.msk.bf16.mxu0 %vm7377_vm4, %v7375_v13  ;;  %6979 = vmatpush3.bf16.msra.mxu1 %v8419_v32 }
 0x614   : > { %7006 = vmatprep.subr.bf16.mxu1 %v7375_v13 }
 0x615   : > { %v5443_v42 = vpop.permute.xlu1 %5442  ;;  %v5557_v43 = vpop.permute.xlu0 %5556 }
 0x619   : > { %6957 = vmatmul.mubr.msk.bf16.gmra.mrb[148].mxu1 %vm420_vm1, %v8437_v36  ;;  %v5445_v52 = vpop.permute.xlu1 %5444  ;;  %v5559_v31 = vpop.permute.xlu0 %5558 }
 0x61a   : > { %6947 = vmatmul.mubr.msk.bf16.gmra.mrb[168].mxu0 %vm420_vm1, %v4796_v4  ;;  %6960 = vmatprep.mubr.msk.bf16.mxu1 %vm7377_vm4, %v7375_v13 }
 0x61b   : > { %6966 = vmatprep.mubr.msk.bf16.mxu0 %vm7377_vm4, %v7375_v13 }
 0x61d   : > { %v4066_v10 = vpop.f32.mrb[112].mxu0  ;;  %v5447_v36 = vpop.permute.xlu1 %5446 }
 0x61e   : > { %v6246_v26 = vadd.f32 -1.0, %v4066_v10  ;;  %v6842_v12 = vpop.f32.mrb[113].mxu0 }
 0x61f   : > { %v4069_v14 = vpop.f32.mrb[114].mxu0 }
 0x620   : > { %4095 = vst.msk [vmem:[%s8599_s10] sm:$0xff] %vm420_vm1, %v6246_v26  ;;  %v6247_v15 = vadd.f32 -1.0, %v4069_v14  ;;  %v6843_v16 = vpop.f32.mrb[115].mxu0 }
 0x621   : > { %6961 = vmatmul.mubr.msk.bf16.gmra.mrb[152].mxu1 %vm420_vm1, %v8445_v48  ;;  %v5671_v27 = vpop.permute.xlu1 %5670 }
 0x622   : > { %6967 = vmatmul.mubr.msk.bf16.vlgmr.msra.gmra.mrb[172].mxu0 %vm420_vm1, %v4987_v11  ;;  %6980 = vmatprep.mubr.msk.bf16.mxu1 %vm7377_vm4, %v7375_v13  ;;  %4096 = vst.msk [vmem:[%s8599_s10 + $0x10] sm:$0xff] %vm420_vm1, %v6247_v15 }
 0x623   : > { %6970 = vmatprep.mubr.msk.bf16.mxu0 %vm7377_vm4, %v7375_v13  ;;  %6993 = vmatpush3.bf16.msra.mxu0 %v8419_v32 }
 0x624   : > { %7020 = vmatprep.subr.bf16.mxu0 %v7375_v13 }
 0x625   : > { %v4074_v17 = vpop.f32.mrb[116].mxu0  ;;  %v5673_v58 = vpop.permute.xlu1 %5672 }
 0x626   : > { %v6248_v18 = vadd.f32 -1.0, %v4074_v17  ;;  %v6846_v39 = vpop.f32.mrb[117].mxu0 }
 0x627   : > { %v4077_v19 = vpop.f32.mrb[118].mxu0 }
 0x628   : > { %4097 = vst.msk [vmem:[%s8599_s10 + $0x20] sm:$0xff] %vm420_vm1, %v6248_v18  ;;  %v6249_v23 = vadd.f32 -1.0, %v4077_v19  ;;  %v6847_v0 = vpop.f32.mrb[119].mxu0 }
 0x629   : > { %6981 = vmatmul.mubr.msk.bf16.vlgmr.msra.gmra.mrb[156].mxu1 %vm420_vm1, %v5101_v20  ;;  %v5675_v22 = vpop.permute.xlu1 %5674 }
 0x62a   : > { %6971 = vmatmul.mubr.msk.bf16.gmra.mrb[176].mxu0 %vm420_vm1, %v4989_v55  ;;  %6984 = vmatprep.mubr.msk.bf16.mxu1 %vm7377_vm4, %v7375_v13  ;;  %4098 = vst.msk [vmem:[%s8599_s10 + $0x30] sm:$0xff] %vm420_vm1, %v6249_v23 }
 0x62b   : > { %6974 = vmatprep.mubr.msk.bf16.mxu0 %vm7377_vm4, %v7375_v13  ;;  %7007 = vmatpush3.bf16.msra.mxu1 %v8419_v32 }
 0x62c   : > { %7034 = vmatprep.subr.bf16.mxu1 %v7375_v13 }
 0x631   : > { %6985 = vmatmul.mubr.msk.bf16.gmra.mrb[160].mxu1 %vm420_vm1, %v5103_v28 }
 0x632   : > { %6975 = vmatmul.mubr.msk.bf16.gmra.mrb[180].mxu0 %vm420_vm1, %v4991_v44  ;;  %6988 = vmatprep.mubr.msk.bf16.mxu1 %vm7377_vm4, %v7375_v13 }
 0x633   : > { %6994 = vmatprep.mubr.msk.bf16.mxu0 %vm7377_vm4, %v7375_v13  ;;  %v4082_v25 = vpop.f32.mrb[120].mxu0 }
 0x634   : > { %v6250_v60 = vadd.f32 -1.0, %v4082_v25  ;;  %v6850_v29 = vpop.f32.mrb[121].mxu0 }
 0x635   : > { %v4085_v50 = vpop.f32.mrb[122].mxu0 }
 0x636   : > { %4099 = vst.msk [vmem:[%s8599_s10 + $0x40] sm:$0xff] %vm420_vm1, %v6250_v60  ;;  %v6251_v33 = vadd.f32 -1.0, %v4085_v50  ;;  %v6851_v34 = vpop.f32.mrb[123].mxu0 }
 0x638   : > { %4100 = vst.msk [vmem:[%s8599_s10 + $0x50] sm:$0xff] %vm420_vm1, %v6251_v33 }
 0x639   : > { %6989 = vmatmul.mubr.msk.bf16.gmra.mrb[164].mxu1 %vm420_vm1, %v5105_v49 }
 0x63a   : > { %6995 = vmatmul.mubr.msk.bf16.vlgmr.msra.gmra.mrb[184].mxu0 %vm420_vm1, %v5215_v35  ;;  %7008 = vmatprep.mubr.msk.bf16.mxu1 %vm7377_vm4, %v7375_v13 }
 0x63b   : > { %6998 = vmatprep.mubr.msk.bf16.mxu0 %vm7377_vm4, %v7375_v13  ;;  %7021 = vmatpush3.bf16.msra.mxu0 %v8419_v32 }
 0x63c   : > { %7048 = vmatprep.subr.bf16.mxu0 %v7375_v13 }
 0x641   : > { %7009 = vmatmul.mubr.msk.bf16.vlgmr.msra.gmra.mrb[168].mxu1 %vm420_vm1, %v5329_v53 }
 0x642   : > { %6999 = vmatmul.mubr.msk.bf16.gmra.mrb[188].mxu0 %vm420_vm1, %v5217_v2  ;;  %7012 = vmatprep.mubr.msk.bf16.mxu1 %vm7377_vm4, %v7375_v13 }
 0x643   : > { %7002 = vmatprep.mubr.msk.bf16.mxu0 %vm7377_vm4, %v7375_v13  ;;  %7035 = vmatpush3.bf16.msra.mxu1 %v8419_v32 }
 0x649   : > { %7013 = vmatmul.mubr.msk.bf16.gmra.mrb[172].mxu1 %vm420_vm1, %v5331_v37 }
 0x64a   : > { %7003 = vmatmul.mubr.msk.bf16.gmra.mrb[192].mxu0 %vm420_vm1, %v5219_v38  ;;  %7016 = vmatprep.mubr.msk.bf16.mxu1 %vm7377_vm4, %v7375_v13 }
 0x64b   : > { %7022 = vmatprep.mubr.msk.bf16.mxu0 %vm7377_vm4, %v7375_v13 }
 0x651   : > { %7017 = vmatmul.mubr.msk.bf16.gmra.mrb[176].mxu1 %vm420_vm1, %v5333_v54 }
 0x652   : > { %7023 = vmatmul.mubr.msk.bf16.vlgmr.msra.gmra.mrb[196].mxu0 %vm420_vm1, %v5443_v42  ;;  %7036 = vmatprep.mubr.msk.bf16.mxu1 %vm7377_vm4, %v7375_v13 }
 0x653   : > { %7026 = vmatprep.mubr.msk.bf16.mxu0 %vm7377_vm4, %v7375_v13  ;;  %7049 = vmatpush3.bf16.msra.mxu0 %v8419_v32  ;;  %v5561_v32 = vpop.permute.xlu0 %5560 }
 0x659   : > { %7037 = vmatmul.mubr.msk.bf16.vlgmr.msra.gmra.mrb[180].mxu1 %vm420_vm1, %v5557_v43 }
 0x65a   : > { %7027 = vmatmul.mubr.msk.bf16.gmra.mrb[200].mxu0 %vm420_vm1, %v5445_v52  ;;  %7040 = vmatprep.mubr.msk.bf16.mxu1 %vm7377_vm4, %v7375_v13 }
 0x65b   : > { %7030 = vmatprep.mubr.msk.bf16.mxu0 %vm7377_vm4, %v7375_v13 }
 0x661   : > { %7041 = vmatmul.mubr.msk.bf16.gmra.mrb[184].mxu1 %vm420_vm1, %v5559_v31 }
 0x662   : > { %7031 = vmatmul.mubr.msk.bf16.gmra.mrb[204].mxu0 %vm420_vm1, %v5447_v36  ;;  %7044 = vmatprep.mubr.msk.bf16.mxu1 %vm7377_vm4, %v7375_v13 }
 0x663   : > { %7050 = vmatprep.mubr.msk.bf16.mxu0 %vm7377_vm4, %v7375_v13 }
 0x669   : > { %7045 = vmatmul.mubr.msk.bf16.gmra.mrb[188].mxu1 %vm420_vm1, %v5561_v32 }
 0x66a   : > { %7051 = vmatmul.mubr.msk.bf16.vlgmr.msra.gmra.mrb[208].mxu0 %vm420_vm1, %v5671_v27 }
 0x66b   : > { %7054 = vmatprep.mubr.msk.bf16.mxu0 %vm7377_vm4, %v7375_v13 }
 0x672   : > { %7055 = vmatmul.mubr.msk.bf16.gmra.mrb[212].mxu0 %vm420_vm1, %v5673_v58 }
 0x673   : > { %7058 = vmatprep.mubr.msk.bf16.mxu0 %vm7377_vm4, %v7375_v13  ;;  %vm9046_vm4 = vmmov %vm9045_vm5 }
 0x67a   : > { %7059 = vmatmul.mubr.msk.bf16.gmra.mrb[216].mxu0 %vm420_vm1, %v5675_v22 }
 0x690   : > { %v4156_v41 = vpop.f32.mrb[124].mxu0 }
 0x691   : > { %v6255_v47 = vadd.f32 -1.0, %v4156_v41  ;;  %v6856_v48 = vpop.f32.mrb[125].mxu0 }
 0x692   : > { %v4159_v63 = vpop.f32.mrb[126].mxu0 }
 0x693   : > { %v6256_v46 = vadd.f32 -1.0, %v4159_v63  ;;  %4191 = vrot.lane.b32.xlu0 %v6255_v47, %s9030_s19  ;;  %v6857_v30 = vpop.f32.mrb[127].mxu0 }
 0x695   : > { %4193 = vrot.lane.b32.xlu1 %v6256_v46, %s9030_s19 }
 0x698   : > { %v4164_v40 = vpop.f32.mrb[128].mxu0 }
 0x699   : > { %v6860_v56 = vpop.f32.mrb[129].mxu0  ;;  %v6257_v45 = vadd.f32 -1.0, %v4164_v40 }
 0x69a   : > { %v4167_v61 = vpop.f32.mrb[130].mxu0 }
 0x69b   : > { %v6861_v24 = vpop.f32.mrb[131].mxu0  ;;  %v6258_v3 = vadd.f32 -1.0, %v4167_v61 }
 0x69c   : > { %v4270_v1 = vpop.f32.mrb[108].mxu1 }
 0x69d   : > { %v6264_v51 = vadd.f32 -1.0, %v4270_v1  ;;  %v6870_v13 = vpop.f32.mrb[109].mxu1 }
 0x69e   : > { %v4273_v57 = vpop.f32.mrb[110].mxu1 }
 0x69f   : > { %v6265_v59 = vadd.f32 -1.0, %v4273_v57  ;;  %v6871_v62 = vpop.f32.mrb[111].mxu1  ;;  %4305 = vrot.lane.b32.xlu0 %v6264_v51, %s9029_s18 }
 0x6a1   : > { %4307 = vrot.lane.b32.xlu1 %v6265_v59, %s9029_s18 }
 0x6a3   : > { %4195 = vrot.lane.b32.xlu0 %v6257_v45, %s9030_s19 }
 0x6a4   : > { %v4278_v5 = vpop.f32.mrb[112].mxu1 }
 0x6a5   : > { %v4172_v21 = vpop.f32.mrb[132].mxu0  ;;  %v6266_v6 = vadd.f32 -1.0, %v4278_v5  ;;  %v6874_v7 = vpop.f32.mrb[113].mxu1  ;;  %4197 = vrot.lane.b32.xlu1 %v6258_v3, %s9030_s19 }
 0x6a6   : > { %v6864_v8 = vpop.f32.mrb[133].mxu0  ;;  %v4281_v9 = vpop.f32.mrb[114].mxu1  ;;  %v6259_v14 = vadd.f32 -1.0, %v4172_v21 }
 0x6a7   : > { %v4175_v4 = vpop.f32.mrb[134].mxu0  ;;  %v6267_v10 = vadd.f32 -1.0, %v4281_v9  ;;  %v6875_v26 = vpop.f32.mrb[115].mxu1  ;;  %4309 = vrot.lane.b32.xlu0 %v6266_v6, %s9029_s18 }
 0x6a8   : > { %v6865_v12 = vpop.f32.mrb[135].mxu0  ;;  %v6260_v15 = vadd.f32 -1.0, %v4175_v4 }
 0x6a9   : > { %4311 = vrot.lane.b32.xlu1 %v6267_v10, %s9029_s18 }
 0x6ab   : > { %4199 = vrot.lane.b32.xlu0 %v6259_v14, %s9030_s19 }
 0x6ac   : > { %v4286_v16 = vpop.f32.mrb[116].mxu1 }
 0x6ad   : > { %v4384_v11 = vpop.f32.mrb[136].mxu0  ;;  %v6268_v55 = vadd.f32 -1.0, %v4286_v16  ;;  %v6878_v17 = vpop.f32.mrb[117].mxu1  ;;  %4201 = vrot.lane.b32.xlu1 %v6260_v15, %s9030_s19 }
 0x6ae   : > { %v6884_v18 = vpop.f32.mrb[137].mxu0  ;;  %v4289_v39 = vpop.f32.mrb[118].mxu1  ;;  %v6273_v28 = vadd.f32 -1.0, %v4384_v11 }
 0x6af   : > { %v4387_v19 = vpop.f32.mrb[138].mxu0  ;;  %v6269_v20 = vadd.f32 -1.0, %v4289_v39  ;;  %v6879_v23 = vpop.f32.mrb[119].mxu1  ;;  %4313 = vrot.lane.b32.xlu0 %v6268_v55, %s9029_s18 }
 0x6b0   : > { %v6885_v0 = vpop.f32.mrb[139].mxu0  ;;  %v6274_v44 = vadd.f32 -1.0, %v4387_v19 }
 0x6b1   : > { %4315 = vrot.lane.b32.xlu1 %v6269_v20, %s9029_s18 }
 0x6b3   : > { %4419 = vrot.lane.b32.xlu0 %v6273_v28, %s7369_s20 }
 0x6b4   : > { %v4498_v25 = vpop.f32.mrb[120].mxu1 }
 0x6b5   : > { %v4392_v60 = vpop.f32.mrb[140].mxu0  ;;  %v6282_v29 = vadd.f32 -1.0, %v4498_v25  ;;  %v6898_v50 = vpop.f32.mrb[121].mxu1  ;;  %4421 = vrot.lane.b32.xlu1 %v6274_v44, %s7369_s20 }
 0x6b6   : > { %v6888_v33 = vpop.f32.mrb[141].mxu0  ;;  %v4501_v34 = vpop.f32.mrb[122].mxu1  ;;  %v6275_v37 = vadd.f32 -1.0, %v4392_v60 }
 0x6b7   : > { %v4395_v49 = vpop.f32.mrb[142].mxu0  ;;  %v6283_v35 = vadd.f32 -1.0, %v4501_v34  ;;  %v6899_v53 = vpop.f32.mrb[123].mxu1  ;;  %4533 = vrot.lane.b32.xlu0 %v6282_v29, %s7370_s26 }
 0x6b8   : > { %v6889_v2 = vpop.f32.mrb[143].mxu0  ;;  %v6276_v38 = vadd.f32 -1.0, %v4395_v49 }
 0x6b9   : > { %4535 = vrot.lane.b32.xlu1 %v6283_v35, %s7370_s26 }
 0x6bb   : > { %4423 = vrot.lane.b32.xlu0 %v6275_v37, %s7369_s20 }
 0x6bc   : > { %v4506_v54 = vpop.f32.mrb[124].mxu1 }
 0x6bd   : > { %v4400_v42 = vpop.f32.mrb[144].mxu0  ;;  %v6284_v43 = vadd.f32 -1.0, %v4506_v54  ;;  %v6902_v52 = vpop.f32.mrb[125].mxu1  ;;  %4425 = vrot.lane.b32.xlu1 %v6276_v38, %s7369_s20 }
 0x6be   : > { %v6892_v31 = vpop.f32.mrb[145].mxu0  ;;  %v4509_v36 = vpop.f32.mrb[126].mxu1  ;;  %v6277_v41 = vadd.f32 -1.0, %v4400_v42 }
 0x6bf   : > { %v4403_v32 = vpop.f32.mrb[146].mxu0  ;;  %v6285_v27 = vadd.f32 -1.0, %v4509_v36  ;;  %v6903_v58 = vpop.f32.mrb[127].mxu1  ;;  %4537 = vrot.lane.b32.xlu0 %v6284_v43, %s7370_s26 }
 0x6c0   : > { %v6893_v22 = vpop.f32.mrb[147].mxu0  ;;  %v6278_v47 = vadd.f32 -1.0, %v4403_v32 }
 0x6c1   : > { %4539 = vrot.lane.b32.xlu1 %v6285_v27, %s7370_s26 }
 0x6c3   : > { %4427 = vrot.lane.b32.xlu0 %v6277_v41, %s7369_s20 }
 0x6c4   : > { %v4514_v48 = vpop.f32.mrb[128].mxu1 }
 0x6c5   : > { %v4612_v63 = vpop.f32.mrb[148].mxu0  ;;  %v6286_v46 = vadd.f32 -1.0, %v4514_v48  ;;  %v6906_v30 = vpop.f32.mrb[129].mxu1  ;;  %4429 = vrot.lane.b32.xlu1 %v6278_v47, %s7369_s20 }
 0x6c6   : > { %v6912_v40 = vpop.f32.mrb[149].mxu0  ;;  %v4517_v56 = vpop.f32.mrb[130].mxu1  ;;  %v6291_v13 = vadd.f32 -1.0, %v4612_v63 }
 0x6c7   : > { %v4615_v61 = vpop.f32.mrb[150].mxu0  ;;  %v6287_v24 = vadd.f32 -1.0, %v4517_v56  ;;  %v6907_v1 = vpop.f32.mrb[131].mxu1  ;;  %4541 = vrot.lane.b32.xlu0 %v6286_v46, %s7370_s26 }
 0x6c8   : > { %v6913_v51 = vpop.f32.mrb[151].mxu0  ;;  %v6292_v57 = vadd.f32 -1.0, %v4615_v61 }
 0x6c9   : > { %4543 = vrot.lane.b32.xlu1 %v6287_v24, %s7370_s26 }
 0x6cb   : > { %4647 = vrot.lane.b32.xlu0 %v6291_v13, %s7371_s28 }
 0x6cc   : > { %v4726_v59 = vpop.f32.mrb[132].mxu1 }
 0x6cd   : > { %v4620_v62 = vpop.f32.mrb[152].mxu0  ;;  %v6300_v45 = vadd.f32 -1.0, %v4726_v59  ;;  %v6926_v3 = vpop.f32.mrb[133].mxu1  ;;  %4649 = vrot.lane.b32.xlu1 %v6292_v57, %s7371_s28 }
 0x6ce   : > { %v6916_v5 = vpop.f32.mrb[153].mxu0  ;;  %v4729_v21 = vpop.f32.mrb[134].mxu1  ;;  %v6293_v4 = vadd.f32 -1.0, %v4620_v62 }
 0x6cf   : > { %v4623_v6 = vpop.f32.mrb[154].mxu0  ;;  %v6301_v7 = vadd.f32 -1.0, %v4729_v21  ;;  %v6927_v8 = vpop.f32.mrb[135].mxu1  ;;  %4761 = vrot.lane.b32.xlu0 %v6300_v45, %s7372_s29 }
 0x6d0   : > { %v6917_v9 = vpop.f32.mrb[155].mxu0  ;;  %v6294_v10 = vadd.f32 -1.0, %v4623_v6 }
 0x6d1   : > { %4763 = vrot.lane.b32.xlu1 %v6301_v7, %s7372_s29 }
 0x6d3   : > { %4651 = vrot.lane.b32.xlu0 %v6293_v4, %s7371_s28 }
 0x6d4   : > { %v4734_v26 = vpop.f32.mrb[136].mxu1 }
 0x6d5   : > { %v4628_v12 = vpop.f32.mrb[156].mxu0  ;;  %v6302_v14 = vadd.f32 -1.0, %v4734_v26  ;;  %v6930_v15 = vpop.f32.mrb[137].mxu1  ;;  %4653 = vrot.lane.b32.xlu1 %v6294_v10, %s7371_s28 }
 0x6d6   : > { %v6920_v16 = vpop.f32.mrb[157].mxu0  ;;  %v4737_v11 = vpop.f32.mrb[138].mxu1  ;;  %v6295_v19 = vadd.f32 -1.0, %v4628_v12 }
 0x6d7   : > { %v4631_v55 = vpop.f32.mrb[158].mxu0  ;;  %v6303_v17 = vadd.f32 -1.0, %v4737_v11  ;;  %v6931_v18 = vpop.f32.mrb[139].mxu1  ;;  %4765 = vrot.lane.b32.xlu0 %v6302_v14, %s7372_s29 }
 0x6d8   : > { %v6921_v39 = vpop.f32.mrb[159].mxu0  ;;  %v6296_v20 = vadd.f32 -1.0, %v4631_v55 }
 0x6d9   : > { %4767 = vrot.lane.b32.xlu1 %v6303_v17, %s7372_s29 }
 0x6db   : > { %4655 = vrot.lane.b32.xlu0 %v6295_v19, %s7371_s28 }
 0x6dc   : > { %v4742_v23 = vpop.f32.mrb[140].mxu1 }
 0x6dd   : > { %v4840_v0 = vpop.f32.mrb[160].mxu0  ;;  %v6304_v28 = vadd.f32 -1.0, %v4742_v23  ;;  %v6934_v44 = vpop.f32.mrb[141].mxu1  ;;  %4657 = vrot.lane.b32.xlu1 %v6296_v20, %s7371_s28 }
 0x6de   : > { %v6940_v25 = vpop.f32.mrb[161].mxu0  ;;  %v4745_v60 = vpop.f32.mrb[142].mxu1  ;;  %v6309_v49 = vadd.f32 -1.0, %v4840_v0 }
 0x6df   : > { %v4843_v29 = vpop.f32.mrb[162].mxu0  ;;  %v6305_v50 = vadd.f32 -1.0, %v4745_v60  ;;  %v6935_v33 = vpop.f32.mrb[143].mxu1  ;;  %4769 = vrot.lane.b32.xlu0 %v6304_v28, %s7372_s29 }
 0x6e0   : > { %v6941_v34 = vpop.f32.mrb[163].mxu0  ;;  %v6310_v35 = vadd.f32 -1.0, %v4843_v29 }
 0x6e1   : > { %4771 = vrot.lane.b32.xlu1 %v6305_v50, %s7372_s29 }
 0x6e3   : > { %4875 = vrot.lane.b32.xlu0 %v6309_v49, %s7373_s9 }
 0x6e4   : > { %v4945_v53 = vpop.f32.mrb[144].mxu1 }
 0x6e5   : > { %v4848_v2 = vpop.f32.mrb[164].mxu0  ;;  %v6318_v37 = vadd.f32 -1.0, %v4945_v53  ;;  %4877 = vrot.lane.b32.xlu1 %v6310_v35, %s7373_s9  ;;  %v6954_v38 = vpop.f32.mrb[145].mxu1 }
 0x6e6   : > { %v6311_v54 = vadd.f32 -1.0, %v4848_v2  ;;  %v6944_v42 = vpop.f32.mrb[165].mxu0  ;;  %v4948_v43 = vpop.f32.mrb[146].mxu1 }
 0x6e7   : > { %v4851_v52 = vpop.f32.mrb[166].mxu0  ;;  %4974 = vst.msk [vmem:[%s8599_s10 + $0x8] sm:$0xff] %vm420_vm1, %v6318_v37  ;;  %v6319_v31 = vadd.f32 -1.0, %v4948_v43  ;;  %v6955_v36 = vpop.f32.mrb[147].mxu1 }
 0x6e8   : > { %v6312_v32 = vadd.f32 -1.0, %v4851_v52  ;;  %v6945_v27 = vpop.f32.mrb[167].mxu0  ;;  %4879 = vrot.lane.b32.xlu0 %v6311_v54, %s7373_s9 }
 0x6e9   : > { %4975 = vst.msk [vmem:[%s8599_s10 + $0x18] sm:$0xff] %vm420_vm1, %v6319_v31 }
 0x6ea   : > { %4881 = vrot.lane.b32.xlu1 %v6312_v32, %s7373_s9 }
 0x6ec   : > { %v4953_v58 = vpop.f32.mrb[148].mxu1 }
 0x6ed   : > { %v4856_v22 = vpop.f32.mrb[168].mxu0  ;;  %v6320_v41 = vadd.f32 -1.0, %v4953_v58  ;;  %v6958_v47 = vpop.f32.mrb[149].mxu1 }
 0x6ee   : > { %v6313_v48 = vadd.f32 -1.0, %v4856_v22  ;;  %v6948_v63 = vpop.f32.mrb[169].mxu0  ;;  %v4956_v46 = vpop.f32.mrb[150].mxu1 }
 0x6ef   : > { %v4859_v30 = vpop.f32.mrb[170].mxu0  ;;  %4976 = vst.msk [vmem:[%s8599_s10 + $0x28] sm:$0xff] %vm420_vm1, %v6320_v41  ;;  %v6321_v40 = vadd.f32 -1.0, %v4956_v46  ;;  %v6959_v56 = vpop.f32.mrb[151].mxu1 }
 0x6f0   : > { %v6314_v61 = vadd.f32 -1.0, %v4859_v30  ;;  %v6949_v24 = vpop.f32.mrb[171].mxu0  ;;  %4883 = vrot.lane.b32.xlu0 %v6313_v48, %s7373_s9 }
 0x6f1   : > { %4977 = vst.msk [vmem:[%s8599_s10 + $0x38] sm:$0xff] %vm420_vm1, %v6321_v40 }
 0x6f2   : > { %4885 = vrot.lane.b32.xlu1 %v6314_v61, %s7373_s9 }
 0x6f4   : > { %v4961_v1 = vpop.f32.mrb[152].mxu1 }
 0x6f5   : > { %v5035_v51 = vpop.f32.mrb[172].mxu0  ;;  %v6322_v13 = vadd.f32 -1.0, %v4961_v1  ;;  %v6962_v57 = vpop.f32.mrb[153].mxu1 }
 0x6f6   : > { %v6327_v59 = vadd.f32 -1.0, %v5035_v51  ;;  %v6968_v62 = vpop.f32.mrb[173].mxu0  ;;  %v4964_v45 = vpop.f32.mrb[154].mxu1 }
 0x6f7   : > { %v5038_v3 = vpop.f32.mrb[174].mxu0  ;;  %4978 = vst.msk [vmem:[%s8599_s10 + $0x48] sm:$0xff] %vm420_vm1, %v6322_v13  ;;  %v6323_v5 = vadd.f32 -1.0, %v4964_v45  ;;  %v6963_v21 = vpop.f32.mrb[155].mxu1 }
 0x6f8   : > { %v6328_v6 = vadd.f32 -1.0, %v5038_v3  ;;  %5070 = vrot.lane.b32.xlu0 %v6327_v59, %s9030_s19  ;;  %v6969_v7 = vpop.f32.mrb[175].mxu0 }
 0x6f9   : > { %4979 = vst.msk [vmem:[%s8599_s10 + $0x58] sm:$0xff] %vm420_vm1, %v6323_v5  ;;  %vm9031_vm1 = vcmask 261248  }
 0x6fa   : > { %5072 = vrot.lane.b32.xlu1 %v6328_v6, %s9030_s19  ;;  %vm9032_vm9 = vmmov %vm9031_vm1 }
 0x6fb   : > { %vm9035_vm3 = vmmov %vm9031_vm1 }
 0x6fc   : > { %v5149_v8 = vpop.f32.mrb[156].mxu1  ;;  %vm9036_vm6 = vmmov %vm9031_vm1 }
 0x6fd   : > { %v5043_v9 = vpop.f32.mrb[176].mxu0  ;;  %v6336_v4 = vadd.f32 -1.0, %v5149_v8  ;;  %v6982_v10 = vpop.f32.mrb[157].mxu1  ;;  %vm9039_vm12 = vmmov %vm9031_vm1 }
 0x6fe   : > { %v6972_v26 = vpop.f32.mrb[177].mxu0  ;;  %v5152_v12 = vpop.f32.mrb[158].mxu1  ;;  %v6329_v55 = vadd.f32 -1.0, %v5043_v9  ;;  %vm9040_vm15 = vmmov %vm9031_vm1 }
 0x6ff   : > { %v5046_v14 = vpop.f32.mrb[178].mxu0  ;;  %v6337_v15 = vadd.f32 -1.0, %v5152_v12  ;;  %5184 = vrot.lane.b32.xlu0 %v6336_v4, %s9029_s18  ;;  %v6983_v16 = vpop.f32.mrb[159].mxu1 }
 0x700   : > { %v6973_v11 = vpop.f32.mrb[179].mxu0  ;;  %v6330_v17 = vadd.f32 -1.0, %v5046_v14 }
 0x701   : > { %5186 = vrot.lane.b32.xlu1 %v6337_v15, %s9029_s18 }
 0x703   : > { %5074 = vrot.lane.b32.xlu0 %v6329_v55, %s9030_s19 }
 0x704   : > { %v5157_v18 = vpop.f32.mrb[160].mxu1 }
 0x705   : > { %v5051_v39 = vpop.f32.mrb[180].mxu0  ;;  %v6338_v19 = vadd.f32 -1.0, %v5157_v18  ;;  %5076 = vrot.lane.b32.xlu1 %v6330_v17, %s9030_s19  ;;  %v6986_v20 = vpop.f32.mrb[161].mxu1 }
 0x706   : > { %v6976_v23 = vpop.f32.mrb[181].mxu0  ;;  %v5160_v0 = vpop.f32.mrb[162].mxu1  ;;  %v6331_v50 = vadd.f32 -1.0, %v5051_v39 }
 0x707   : > { %v5054_v28 = vpop.f32.mrb[182].mxu0  ;;  %v6339_v44 = vadd.f32 -1.0, %v5160_v0  ;;  %5188 = vrot.lane.b32.xlu0 %v6338_v19, %s9029_s18  ;;  %v6987_v25 = vpop.f32.mrb[163].mxu1 }
 0x708   : > { %v6977_v60 = vpop.f32.mrb[183].mxu0  ;;  %v4192_v29 = vpop.permute.xlu0 %4191  ;;  %v6332_v34 = vadd.f32 -1.0, %v5054_v28 }
 0x709   : > { %5190 = vrot.lane.b32.xlu1 %v6339_v44, %s9029_s18  ;;  %4209 = vst.msk [vmem:[%s8599_s10] sm:$0xff] %vm9031_vm1, %v4192_v29  ;;  %v4194_v33 = vpop.permute.xlu1 %4193  ;;  %vm9047_vm1 = vmmov %vm9043_vm0 }
 0x70a   : > { %4210 = vst.msk [vmem:[%s8599_s10 + $0x10] sm:$0xff] %vm9032_vm9, %v4194_v33  ;;  %vm9048_vm9 = vmmov %vm9043_vm0 }
 0x70b   : > { %5078 = vrot.lane.b32.xlu0 %v6331_v50, %s9030_s19 }
 0x70c   : > { %v5165_v49 = vpop.f32.mrb[164].mxu1 }
 0x70d   : > { %v5263_v35 = vpop.f32.mrb[184].mxu0  ;;  %v6340_v53 = vadd.f32 -1.0, %v5165_v49  ;;  %5080 = vrot.lane.b32.xlu1 %v6332_v34, %s9030_s19  ;;  %v6990_v2 = vpop.f32.mrb[165].mxu1 }
 0x70e   : > { %v6996_v37 = vpop.f32.mrb[185].mxu0  ;;  %v5168_v38 = vpop.f32.mrb[166].mxu1  ;;  %v6345_v31 = vadd.f32 -1.0, %v5263_v35 }
 0x70f   : > { %v5266_v54 = vpop.f32.mrb[186].mxu0  ;;  %v6341_v42 = vadd.f32 -1.0, %v5168_v38  ;;  %5192 = vrot.lane.b32.xlu0 %v6340_v53, %s9029_s18  ;;  %v6991_v43 = vpop.f32.mrb[167].mxu1 }
 0x710   : > { %v6997_v52 = vpop.f32.mrb[187].mxu0  ;;  %v6346_v32 = vadd.f32 -1.0, %v5266_v54 }
 0x711   : > { %v4306_v36 = vpop.permute.xlu0 %4305  ;;  %5194 = vrot.lane.b32.xlu1 %v6341_v42, %s9029_s18 }
 0x712   : > { %4323 = vst.msk [vmem:[%s8599_s10] sm:$0xff] %vm9033_vm7, %v4306_v36  ;;  %vm9049_vm7 = vmmov %vm9046_vm4 }
 0x713   : > { %v4308_v27 = vpop.permute.xlu1 %4307  ;;  %5298 = vrot.lane.b32.xlu0 %v6345_v31, %s7369_s20 }
 0x714   : > { %4324 = vst.msk [vmem:[%s8599_s10 + $0x10] sm:$0xff] %vm9034_vm2, %v4308_v27  ;;  %v5377_v58 = vpop.f32.mrb[168].mxu1  ;;  %vm9050_vm2 = vmmov %vm9046_vm4 }
 0x715   : > { %v5271_v22 = vpop.f32.mrb[188].mxu0  ;;  %v6354_v41 = vadd.f32 -1.0, %v5377_v58  ;;  %v4196_v47 = vpop.permute.xlu0 %4195  ;;  %5300 = vrot.lane.b32.xlu1 %v6346_v32, %s7369_s20 }
 0x716   : > { %v7000_v48 = vpop.f32.mrb[189].mxu0  ;;  %4211 = vst.msk [vmem:[%s8599_s10 + $0x20] sm:$0xff] %vm9035_vm3, %v4196_v47  ;;  %v7010_v63 = vpop.f32.mrb[169].mxu1  ;;  %v6347_v24 = vadd.f32 -1.0, %v5271_v22  ;;  %vm9051_vm3 = vmmov %vm9043_vm0 }
 0x717   : > { %v5274_v46 = vpop.f32.mrb[190].mxu0  ;;  %v5380_v30 = vpop.f32.mrb[170].mxu1  ;;  %5412 = vrot.lane.b32.xlu0 %v6354_v41, %s7370_s26 }
 0x718   : > { %v7001_v40 = vpop.f32.mrb[191].mxu0  ;;  %v6355_v56 = vadd.f32 -1.0, %v5380_v30  ;;  %v4198_v61 = vpop.permute.xlu1 %4197  ;;  %v6348_v13 = vadd.f32 -1.0, %v5274_v46 }
 0x719   : > { %4212 = vst.msk [vmem:[%s8599_s10 + $0x30] sm:$0xff] %vm9036_vm6, %v4198_v61  ;;  %v7011_v1 = vpop.f32.mrb[171].mxu1  ;;  %v4310_v51 = vpop.permute.xlu0 %4309  ;;  %vm9052_vm6 = vmmov %vm9043_vm0 }
 0x71a   : > { %4325 = vst.msk [vmem:[%s8599_s10 + $0x20] sm:$0xff] %vm9037_vm8, %v4310_v51  ;;  %5414 = vrot.lane.b32.xlu1 %v6355_v56, %s7370_s26  ;;  %vm9053_vm8 = vmmov %vm9050_vm2 }
 0x71b   : > { %5302 = vrot.lane.b32.xlu0 %v6347_v24, %s7369_s20 }
 0x71c   : > { %v4312_v57 = vpop.permute.xlu1 %4311  ;;  %v5385_v59 = vpop.f32.mrb[172].mxu1 }
 0x71d   : > { %v5279_v62 = vpop.f32.mrb[192].mxu0  ;;  %4326 = vst.msk [vmem:[%s8599_s10 + $0x30] sm:$0xff] %vm9038_vm11, %v4312_v57  ;;  %v6356_v45 = vadd.f32 -1.0, %v5385_v59  ;;  %v4200_v3 = vpop.permute.xlu0 %4199  ;;  %vm9054_vm11 = vmmov %vm9050_vm2 }
 0x71e   : > { %v7004_v5 = vpop.f32.mrb[193].mxu0  ;;  %4213 = vst.msk [vmem:[%s8599_s10 + $0x40] sm:$0xff] %vm9039_vm12, %v4200_v3  ;;  %5304 = vrot.lane.b32.xlu1 %v6348_v13, %s7369_s20  ;;  %v7014_v21 = vpop.f32.mrb[173].mxu1  ;;  %v6349_v10 = vadd.f32 -1.0, %v5279_v62  ;;  %vm9055_vm12 = vcmask 786048  }
 0x71f   : > { %v5282_v6 = vpop.f32.mrb[194].mxu0  ;;  %v5388_v7 = vpop.f32.mrb[174].mxu1  ;;  %5416 = vrot.lane.b32.xlu0 %v6356_v45, %s7370_s26 }
 0x720   : > { %v7005_v8 = vpop.f32.mrb[195].mxu0  ;;  %v6357_v9 = vadd.f32 -1.0, %v5388_v7  ;;  %v4202_v4 = vpop.permute.xlu1 %4201  ;;  %v6350_v14 = vadd.f32 -1.0, %v5282_v6 }
 0x721   : > { %4214 = vst.msk [vmem:[%s8599_s10 + $0x50] sm:$0xff] %vm9040_vm15, %v4202_v4  ;;  %v7015_v26 = vpop.f32.mrb[175].mxu1  ;;  %v4314_v12 = vpop.permute.xlu0 %4313  ;;  %vm9056_vm15 = vmmov %vm9055_vm12 }
 0x722   : > { %4327 = vst.msk [vmem:[%s8599_s10 + $0x40] sm:$0xff] %vm9041_vm13, %v4314_v12  ;;  %5418 = vrot.lane.b32.xlu1 %v6357_v9, %s7370_s26  ;;  %vm9057_vm13 = vcmask 917248  }
 0x723   : > { %5306 = vrot.lane.b32.xlu0 %v6349_v10, %s7369_s20 }
 0x724   : > { %v4316_v15 = vpop.permute.xlu1 %4315  ;;  %v5393_v16 = vpop.f32.mrb[176].mxu1 }
 0x725   : > { %v5491_v11 = vpop.f32.mrb[196].mxu0  ;;  %4328 = vst.msk [vmem:[%s8599_s10 + $0x50] sm:$0xff] %vm9042_vm14, %v4316_v15  ;;  %v6358_v55 = vadd.f32 -1.0, %v5393_v16  ;;  %v4420_v17 = vpop.permute.xlu0 %4419  ;;  %vm9058_vm14 = vmmov %vm9057_vm13 }
 0x726   : > { %v7024_v18 = vpop.f32.mrb[197].mxu0  ;;  %4437 = vst.msk [vmem:[%s8599_s10] sm:$0xff] %vm9043_vm0, %v4420_v17  ;;  %5308 = vrot.lane.b32.xlu1 %v6350_v14, %s7369_s20  ;;  %v7018_v39 = vpop.f32.mrb[177].mxu1  ;;  %v6363_v44 = vadd.f32 -1.0, %v5491_v11  ;;  %vm9059_vm0 = vmmov %vm9055_vm12  ;;  %s7134_s20 = smul.u32 1536, %s7436_s25 }
 0x727   : > { %v5494_v19 = vpop.f32.mrb[198].mxu0  ;;  %v5396_v20 = vpop.f32.mrb[178].mxu1  ;;  %5420 = vrot.lane.b32.xlu0 %v6358_v55, %s7370_s26 }
 0x728   : > { %v7025_v23 = vpop.f32.mrb[199].mxu0  ;;  %v6359_v0 = vadd.f32 -1.0, %v5396_v20  ;;  %v4422_v28 = vpop.permute.xlu1 %4421  ;;  %v6364_v29 = vadd.f32 -1.0, %v5494_v19 }
 0x729   : > { %4438 = vst.msk [vmem:[%s8599_s10 + $0x10] sm:$0xff] %vm9044_vm10, %v4422_v28  ;;  %v7019_v25 = vpop.f32.mrb[179].mxu1  ;;  %v4534_v60 = vpop.permute.xlu0 %4533  ;;  %vm9060_vm10 = vmmov %vm9059_vm0 }
 0x72a   : > { %4551 = vst.msk [vmem:[%s8599_s10] sm:$0xff] %vm9045_vm5, %v4534_v60  ;;  %5422 = vrot.lane.b32.xlu1 %v6359_v0, %s7370_s26  ;;  %vm9061_vm5 = vmmov %vm9057_vm13  ;;  %s5792_s26 = sshll.u32 %s8599_s10, 4  ;;  %s8953_s26 = int_to_ptr.vmem [resolvable:$true] %s5792_s26 }
 0x72b   : > { %5526 = vrot.lane.b32.xlu0 %v6363_v44, %s7371_s28  ;;  %s7303_s25 = scalar_lea.vmem %s8953_s26, 1536  ;;  %p7310_p0 = scmp.lt.s32.totalorder %s8953_s26, %s7308_s13 }
 0x72c   : > { %v4536_v50 = vpop.permute.xlu1 %4535  ;;  %v5605_v33 = vpop.f32.mrb[180].mxu1  ;;  %p7304_p11 = scmp.ne.s32.totalorder %s8953_s26, %s7303_s25  ;;  %p7311_p1 = scmp.lt.s32.totalorder %s7309_s14, %s7303_s25 }
 0x72d   : > { %v5499_v34 = vpop.f32.mrb[200].mxu0  ;;  %4552 = vst.msk [vmem:[%s8599_s10 + $0x10] sm:$0xff] %vm9046_vm4, %v4536_v50  ;;  %v6372_v49 = vadd.f32 -1.0, %v5605_v33  ;;  %v4424_v35 = vpop.permute.xlu0 %4423  ;;  %vm9062_vm4 = vmmov %vm9061_vm5 }
 0x72e   : > { %v7028_v53 = vpop.f32.mrb[201].mxu0  ;;  %4439 = vst.msk [vmem:[%s8599_s10 + $0x20] sm:$0xff] %vm9047_vm1, %v4424_v35  ;;  %5528 = vrot.lane.b32.xlu1 %v6364_v29, %s7371_s28  ;;  %v7038_v2 = vpop.f32.mrb[181].mxu1  ;;  %v6365_v52 = vadd.f32 -1.0, %v5499_v34  ;;  %vm9063_vm1 = vmmov %vm9059_vm0  ;;  %p7305_p12 = pnand %p7304_p11, %p7453_p5  ;;  %p7312_p2 = por %p7311_p1, %p7310_p0 }
 0x72f   : > { %v5502_v37 = vpop.f32.mrb[202].mxu0  ;;  %v5608_v38 = vpop.f32.mrb[182].mxu1  ;;  %5640 = vrot.lane.b32.xlu0 %v6372_v49, %s7372_s29 }
 0x730   : > { %v7029_v54 = vpop.f32.mrb[203].mxu0  ;;  %v6373_v42 = vadd.f32 -1.0, %v5608_v38  ;;  %v4426_v43 = vpop.permute.xlu1 %4425  ;;  %v6366_v32 = vadd.f32 -1.0, %v5502_v37  ;;  %p7306_p13 = pneg %p7305_p12 }
 0x731   : > { %4440 = vst.msk [vmem:[%s8599_s10 + $0x30] sm:$0xff] %vm9048_vm9, %v4426_v43  ;;  %v7039_v31 = vpop.f32.mrb[183].mxu1  ;;  %v4538_v36 = vpop.permute.xlu0 %4537  ;;  %vm9064_vm9 = vmmov %vm9059_vm0 }
 0x732   : > { %4553 = vst.msk [vmem:[%s8599_s10 + $0x20] sm:$0xff] %vm9049_vm7, %v4538_v36  ;;  %5642 = vrot.lane.b32.xlu1 %v6373_v42, %s7372_s29  ;;  %vm9065_vm7 = vmmov %vm9062_vm4  ;;  %p7313_p3 = pnand %p7312_p2, %p7306_p13 }
 0x733   : > { %5530 = vrot.lane.b32.xlu0 %v6365_v52, %s7371_s28 }
 0x734   : > { %v4540_v27 = vpop.permute.xlu1 %4539  ;;  %v5613_v58 = vpop.f32.mrb[184].mxu1 }
 0x735   : > { %v5507_v22 = vpop.f32.mrb[204].mxu0  ;;  %4554 = vst.msk [vmem:[%s8599_s10 + $0x30] sm:$0xff] %vm9050_vm2, %v4540_v27  ;;  %v6374_v41 = vadd.f32 -1.0, %v5613_v58  ;;  %v4428_v47 = vpop.permute.xlu0 %4427  ;;  %vm9066_vm2 = vmmov %vm9062_vm4 }
 0x736   : > { %v7032_v48 = vpop.f32.mrb[205].mxu0  ;;  %4441 = vst.msk [vmem:[%s8599_s10 + $0x40] sm:$0xff] %vm9051_vm3, %v4428_v47  ;;  %5532 = vrot.lane.b32.xlu1 %v6366_v32, %s7371_s28  ;;  %v7042_v63 = vpop.f32.mrb[185].mxu1  ;;  %v6367_v24 = vadd.f32 -1.0, %v5507_v22  ;;  %vm9067_vm3 = vcmask 1048448  }
 0x737   : > { %v5510_v46 = vpop.f32.mrb[206].mxu0  ;;  %v5616_v30 = vpop.f32.mrb[186].mxu1  ;;  %5644 = vrot.lane.b32.xlu0 %v6374_v41, %s7372_s29 }
 0x738   : > { %v7033_v40 = vpop.f32.mrb[207].mxu0  ;;  %v6375_v56 = vadd.f32 -1.0, %v5616_v30  ;;  %v4430_v61 = vpop.permute.xlu1 %4429  ;;  %v6368_v13 = vadd.f32 -1.0, %v5510_v46 }
 0x739   : > { %4442 = vst.msk [vmem:[%s8599_s10 + $0x50] sm:$0xff] %vm9052_vm6, %v4430_v61  ;;  %v7043_v1 = vpop.f32.mrb[187].mxu1  ;;  %v4542_v51 = vpop.permute.xlu0 %4541  ;;  %vm9068_vm6 = vmmov %vm9067_vm3 }
 0x73a   : > { %4555 = vst.msk [vmem:[%s8599_s10 + $0x40] sm:$0xff] %vm9053_vm8, %v4542_v51  ;;  %5646 = vrot.lane.b32.xlu1 %v6375_v56, %s7372_s29  ;;  %vm9069_vm8 = vmmov %vm9067_vm3 }
 0x73b   : > { %5534 = vrot.lane.b32.xlu0 %v6367_v24, %s7371_s28 }
 0x73c   : > { %v4544_v57 = vpop.permute.xlu1 %4543  ;;  %v5621_v59 = vpop.f32.mrb[188].mxu1 }
 0x73d   : > { %v5719_v62 = vpop.f32.mrb[208].mxu0  ;;  %4556 = vst.msk [vmem:[%s8599_s10 + $0x50] sm:$0xff] %vm9054_vm11, %v4544_v57  ;;  %v6376_v45 = vadd.f32 -1.0, %v5621_v59  ;;  %v4648_v3 = vpop.permute.xlu0 %4647  ;;  %vm9070_vm11 = vmmov %vm9067_vm3 }
 0x73e   : > { %v7052_v5 = vpop.f32.mrb[209].mxu0  ;;  %4665 = vst.msk [vmem:[%s8599_s10] sm:$0xff] %vm9055_vm12, %v4648_v3  ;;  %5536 = vrot.lane.b32.xlu1 %v6368_v13, %s7371_s28  ;;  %v7046_v21 = vpop.f32.mrb[189].mxu1  ;;  %v6381_v10 = vadd.f32 -1.0, %v5719_v62  ;;  %vm9071_vm12 = vmmov %vm9067_vm3 }
 0x73f   : > { %v5722_v6 = vpop.f32.mrb[210].mxu0  ;;  %v5624_v7 = vpop.f32.mrb[190].mxu1  ;;  %5648 = vrot.lane.b32.xlu0 %v6376_v45, %s7372_s29 }
 0x740   : > { %v7053_v8 = vpop.f32.mrb[211].mxu0  ;;  %v6377_v9 = vadd.f32 -1.0, %v5624_v7  ;;  %v4650_v4 = vpop.permute.xlu1 %4649  ;;  %v6382_v14 = vadd.f32 -1.0, %v5722_v6 }
 0x741   : > { %4666 = vst.msk [vmem:[%s8599_s10 + $0x10] sm:$0xff] %vm9056_vm15, %v4650_v4  ;;  %v7047_v26 = vpop.f32.mrb[191].mxu1  ;;  %v4762_v12 = vpop.permute.xlu0 %4761  ;;  %vm9072_vm15 = vmmov %vm9067_vm3 }
 0x742   : > { %4779 = vst.msk [vmem:[%s8599_s10] sm:$0xff] %vm9057_vm13, %v4762_v12  ;;  %5650 = vrot.lane.b32.xlu1 %v6377_v9, %s7372_s29  ;;  %vm9073_vm13 = vcmask 261248  }
 0x743   : > { %5754 = vrot.lane.b32.xlu0 %v6381_v10, %s7373_s9 }
 0x744   : > { %v4764_v15 = vpop.permute.xlu1 %4763 }
 0x745   : > { %v5727_v16 = vpop.f32.mrb[212].mxu0  ;;  %4780 = vst.msk [vmem:[%s8599_s10 + $0x10] sm:$0xff] %vm9058_vm14, %v4764_v15  ;;  %v4652_v11 = vpop.permute.xlu0 %4651  ;;  %vm9074_vm14 = vmmov %vm9073_vm13 }
 0x746   : > { %v6383_v55 = vadd.f32 -1.0, %v5727_v16  ;;  %v7056_v17 = vpop.f32.mrb[213].mxu0  ;;  %4667 = vst.msk [vmem:[%s8599_s10 + $0x20] sm:$0xff] %vm9059_vm0, %v4652_v11  ;;  %5756 = vrot.lane.b32.xlu1 %v6382_v14, %s7373_s9  ;;  %vm9075_vm0 = vcmask 392448  }
 0x747   : > { %v5730_v18 = vpop.f32.mrb[214].mxu0 }
 0x748   : > { %v6384_v39 = vadd.f32 -1.0, %v5730_v18  ;;  %v7057_v19 = vpop.f32.mrb[215].mxu0  ;;  %v4654_v20 = vpop.permute.xlu1 %4653  ;;  %5758 = vrot.lane.b32.xlu0 %v6383_v55, %s7373_s9 }
 0x749   : > { %4668 = vst.msk [vmem:[%s8599_s10 + $0x30] sm:$0xff] %vm9060_vm10, %v4654_v20  ;;  %v4766_v23 = vpop.permute.xlu0 %4765  ;;  %vm9076_vm10 = vmmov %vm9075_vm0 }
 0x74a   : > { %4781 = vst.msk [vmem:[%s8599_s10 + $0x20] sm:$0xff] %vm9061_vm5, %v4766_v23  ;;  %5760 = vrot.lane.b32.xlu1 %v6384_v39, %s7373_s9  ;;  %vm9077_vm5 = vmmov %vm9073_vm13 }
 0x74c   : > { %v4768_v0 = vpop.permute.xlu1 %4767 }
 0x74d   : > { %v5735_v28 = vpop.f32.mrb[216].mxu0  ;;  %4782 = vst.msk [vmem:[%s8599_s10 + $0x30] sm:$0xff] %vm9062_vm4, %v4768_v0  ;;  %v4656_v44 = vpop.permute.xlu0 %4655  ;;  %vm9078_vm4 = vmmov %vm9077_vm5 }
 0x74e   : > { %v6385_v25 = vadd.f32 -1.0, %v5735_v28  ;;  %v7060_v60 = vpop.f32.mrb[217].mxu0  ;;  %4669 = vst.msk [vmem:[%s8599_s10 + $0x40] sm:$0xff] %vm9063_vm1, %v4656_v44  ;;  %vm9079_vm1 = vmmov %vm9075_vm0 }
 0x74f   : > { %v5738_v29 = vpop.f32.mrb[218].mxu0 }
 0x750   : > { %v6386_v50 = vadd.f32 -1.0, %v5738_v29  ;;  %v7061_v33 = vpop.f32.mrb[219].mxu0  ;;  %5762 = vrot.lane.b32.xlu0 %v6385_v25, %s7373_s9  ;;  %v4658_v34 = vpop.permute.xlu1 %4657 }
 0x751   : > { %4670 = vst.msk [vmem:[%s8599_s10 + $0x50] sm:$0xff] %vm9064_vm9, %v4658_v34  ;;  %v4770_v49 = vpop.permute.xlu0 %4769  ;;  %vm9080_vm9 = vmmov %vm9075_vm0 }
 0x752   : > { %5764 = vrot.lane.b32.xlu1 %v6386_v50, %s7373_s9  ;;  %4783 = vst.msk [vmem:[%s8599_s10 + $0x40] sm:$0xff] %vm9065_vm7, %v4770_v49  ;;  %vm9081_vm7 = vmmov %vm9078_vm4  ;;  %s8951_s9 = scalar_lea.hbm %s9007_s6, %s7134_s20 }
 0x754   : > { %v4772_v35 = vpop.permute.xlu1 %4771 }
 0x755   : > { %4784 = vst.msk [vmem:[%s8599_s10 + $0x50] sm:$0xff] %vm9066_vm2, %v4772_v35  ;;  %v4876_v53 = vpop.permute.xlu0 %4875  ;;  %vm9082_vm2 = vmmov %vm9078_vm4 }
 0x756   : > { %4893 = vst.msk [vmem:[%s8599_s10] sm:$0xff] %vm9067_vm3, %v4876_v53  ;;  %vm9083_vm3 = vmmov %vm9075_vm0 }
 0x758   : > { %v4878_v2 = vpop.permute.xlu1 %4877 }
 0x759   : > { %4894 = vst.msk [vmem:[%s8599_s10 + $0x10] sm:$0xff] %vm9068_vm6, %v4878_v2  ;;  %vm9084_vm6 = vmmov %vm9075_vm0 }
 0x75a   : > { %v4880_v37 = vpop.permute.xlu0 %4879 }
 0x75b   : > { %4895 = vst.msk [vmem:[%s8599_s10 + $0x20] sm:$0xff] %vm9069_vm8, %v4880_v37  ;;  %vm9085_vm8 = vcmask 523648  }
 0x75c   : > { %v4882_v38 = vpop.permute.xlu1 %4881 }
 0x75d   : > { %4896 = vst.msk [vmem:[%s8599_s10 + $0x30] sm:$0xff] %vm9070_vm11, %v4882_v38  ;;  %vm9086_vm11 = vmmov %vm9085_vm8 }
 0x762   : > { %v4884_v54 = vpop.permute.xlu0 %4883 }
 0x763   : > { %4897 = vst.msk [vmem:[%s8599_s10 + $0x40] sm:$0xff] %vm9071_vm12, %v4884_v54  ;;  %vm9087_vm12 = vcmask 654848  }
 0x764   : > { %v4886_v42 = vpop.permute.xlu1 %4885 }
 0x765   : > { %4898 = vst.msk [vmem:[%s8599_s10 + $0x50] sm:$0xff] %vm9072_vm15, %v4886_v42  ;;  %vm9088_vm15 = vmmov %vm9087_vm12 }
 0x76a   : > { %v5071_v43 = vpop.permute.xlu0 %5070 }
 0x76b   : > { %5088 = vst.msk [vmem:[%s8599_s10 + $0x8] sm:$0xff] %vm9073_vm13, %v5071_v43  ;;  %vm9089_vm13 = vmmov %vm9085_vm8 }
 0x76c   : > { %v5073_v52 = vpop.permute.xlu1 %5072 }
 0x76d   : > { %5089 = vst.msk [vmem:[%s8599_s10 + $0x18] sm:$0xff] %vm9074_vm14, %v5073_v52  ;;  %vm9090_vm14 = vmmov %vm9085_vm8 }
 0x771   : > { %v5185_v31 = vpop.permute.xlu0 %5184 }
 0x772   : > { %5202 = vst.msk [vmem:[%s8599_s10 + $0x8] sm:$0xff] %vm9075_vm0, %v5185_v31  ;;  %vm9091_vm0 = vmmov %vm9087_vm12 }
 0x773   : > { %v5187_v36 = vpop.permute.xlu1 %5186 }
 0x774   : > { %5203 = vst.msk [vmem:[%s8599_s10 + $0x18] sm:$0xff] %vm9076_vm10, %v5187_v36  ;;  %vm9092_vm10 = vmmov %vm9091_vm0 }
 0x775   : > { %v5075_v32 = vpop.permute.xlu0 %5074 }
 0x776   : > { %5090 = vst.msk [vmem:[%s8599_s10 + $0x28] sm:$0xff] %vm9077_vm5, %v5075_v32  ;;  %vm9093_vm5 = vmmov %vm9085_vm8 }
 0x777   : > { %v5077_v27 = vpop.permute.xlu1 %5076 }
 0x778   : > { %5091 = vst.msk [vmem:[%s8599_s10 + $0x38] sm:$0xff] %vm9078_vm4, %v5077_v27  ;;  %vm9094_vm4 = vmmov %vm9093_vm5 }
 0x779   : > { %v5189_v58 = vpop.permute.xlu0 %5188 }
 0x77a   : > { %5204 = vst.msk [vmem:[%s8599_s10 + $0x28] sm:$0xff] %vm9079_vm1, %v5189_v58  ;;  %vm9095_vm1 = vmmov %vm9091_vm0 }
 0x77b   : > { %v5191_v22 = vpop.permute.xlu1 %5190 }
 0x77c   : > { %5205 = vst.msk [vmem:[%s8599_s10 + $0x38] sm:$0xff] %vm9080_vm9, %v5191_v22  ;;  %vm9096_vm9 = vmmov %vm9091_vm0 }
 0x77d   : > { %v5079_v41 = vpop.permute.xlu0 %5078 }
 0x77e   : > { %5092 = vst.msk [vmem:[%s8599_s10 + $0x48] sm:$0xff] %vm9081_vm7, %v5079_v41  ;;  %vm9097_vm7 = vcmask 786048  }
 0x77f   : > { %v5081_v47 = vpop.permute.xlu1 %5080 }
 0x780   : > { %5093 = vst.msk [vmem:[%s8599_s10 + $0x58] sm:$0xff] %vm9082_vm2, %v5081_v47  ;;  %vm9098_vm2 = vmmov %vm9097_vm7 }
 0x781   : > { %v5193_v48 = vpop.permute.xlu0 %5192 }
 0x782   : > { %5206 = vst.msk [vmem:[%s8599_s10 + $0x48] sm:$0xff] %vm9083_vm3, %v5193_v48  ;;  %vm9099_vm3 = vcmask 917248  }
 0x783   : > { %v5195_v63 = vpop.permute.xlu1 %5194 }
 0x784   : > { %5207 = vst.msk [vmem:[%s8599_s10 + $0x58] sm:$0xff] %vm9084_vm6, %v5195_v63  ;;  %vm9100_vm6 = vmmov %vm9099_vm3 }
 0x785   : > { %v5299_v46 = vpop.permute.xlu0 %5298 }
 0x786   : > { %5316 = vst.msk [vmem:[%s8599_s10 + $0x8] sm:$0xff] %vm9085_vm8, %v5299_v46  ;;  %vm9101_vm8 = vmmov %vm9098_vm2 }
 0x787   : > { %v5301_v30 = vpop.permute.xlu1 %5300 }
 0x788   : > { %5317 = vst.msk [vmem:[%s8599_s10 + $0x18] sm:$0xff] %vm9086_vm11, %v5301_v30  ;;  %vm9102_vm11 = vmmov %vm9098_vm2 }
 0x789   : > { %v5413_v40 = vpop.permute.xlu0 %5412 }
 0x78a   : > { %5430 = vst.msk [vmem:[%s8599_s10 + $0x8] sm:$0xff] %vm9087_vm12, %v5413_v40  ;;  %vm9103_vm12 = vmmov %vm9099_vm3 }
 0x78c   : > { %v5415_v56 = vpop.permute.xlu1 %5414 }
 0x78d   : > { %5431 = vst.msk [vmem:[%s8599_s10 + $0x18] sm:$0xff] %vm9088_vm15, %v5415_v56  ;;  %v5303_v61 = vpop.permute.xlu0 %5302  ;;  %vm9104_vm15 = vmmov %vm9099_vm3 }
 0x78e   : > { %5318 = vst.msk [vmem:[%s8599_s10 + $0x28] sm:$0xff] %vm9089_vm13, %v5303_v61  ;;  %vm9105_vm13 = vmmov %vm9098_vm2 }
 0x790   : > { %v5305_v24 = vpop.permute.xlu1 %5304 }
 0x791   : > { %5319 = vst.msk [vmem:[%s8599_s10 + $0x38] sm:$0xff] %vm9090_vm14, %v5305_v24  ;;  %v5417_v1 = vpop.permute.xlu0 %5416  ;;  %vm9106_vm14 = vmmov %vm9098_vm2 }
 0x792   : > { %5432 = vst.msk [vmem:[%s8599_s10 + $0x28] sm:$0xff] %vm9091_vm0, %v5417_v1  ;;  %vm9107_vm0 = vmmov %vm9099_vm3 }
 0x794   : > { %v5419_v51 = vpop.permute.xlu1 %5418 }
 0x795   : > { %5433 = vst.msk [vmem:[%s8599_s10 + $0x38] sm:$0xff] %vm9092_vm10, %v5419_v51  ;;  %v5307_v13 = vpop.permute.xlu0 %5306  ;;  %vm9108_vm10 = vmmov %vm9107_vm0 }
 0x796   : > { %5320 = vst.msk [vmem:[%s8599_s10 + $0x48] sm:$0xff] %vm9093_vm5, %v5307_v13  ;;  %vm9109_vm5 = vcmask 1048448  }
 0x798   : > { %v5309_v57 = vpop.permute.xlu1 %5308 }
 0x799   : > { %5321 = vst.msk [vmem:[%s8599_s10 + $0x58] sm:$0xff] %vm9094_vm4, %v5309_v57  ;;  %v5421_v59 = vpop.permute.xlu0 %5420  ;;  %vm9110_vm4 = vmmov %vm9109_vm5 }
 0x79a   : > { %5434 = vst.msk [vmem:[%s8599_s10 + $0x48] sm:$0xff] %vm9095_vm1, %v5421_v59  ;;  %vm9111_vm1 = vmmov %vm9110_vm4 }
 0x79c   : > { %v5423_v62 = vpop.permute.xlu1 %5422 }
 0x79d   : > { %5435 = vst.msk [vmem:[%s8599_s10 + $0x58] sm:$0xff] %vm9096_vm9, %v5423_v62  ;;  %v5527_v45 = vpop.permute.xlu0 %5526  ;;  %vm9112_vm9 = vmmov %vm9111_vm1 }
 0x79e   : > { %5544 = vst.msk [vmem:[%s8599_s10 + $0x8] sm:$0xff] %vm9097_vm7, %v5527_v45  ;;  %vm9113_vm7 = vmmov %vm9111_vm1 }
 0x7a0   : > { %v5529_v3 = vpop.permute.xlu1 %5528 }
 0x7a1   : > { %5545 = vst.msk [vmem:[%s8599_s10 + $0x18] sm:$0xff] %vm9098_vm2, %v5529_v3  ;;  %v5641_v5 = vpop.permute.xlu0 %5640  ;;  %vm9114_vm2 = vmmov %vm9111_vm1 }
 0x7a2   : > { %5658 = vst.msk [vmem:[%s8599_s10 + $0x8] sm:$0xff] %vm9099_vm3, %v5641_v5 }
 0x7a4   : > { %v5643_v21 = vpop.permute.xlu1 %5642 }
 0x7a5   : > { %5659 = vst.msk [vmem:[%s8599_s10 + $0x18] sm:$0xff] %vm9100_vm6, %v5643_v21  ;;  %v5531_v6 = vpop.permute.xlu0 %5530 }
 0x7a6   : > { %5546 = vst.msk [vmem:[%s8599_s10 + $0x28] sm:$0xff] %vm9101_vm8, %v5531_v6 }
 0x7a8   : > { %v5533_v7 = vpop.permute.xlu1 %5532 }
 0x7a9   : > { %5547 = vst.msk [vmem:[%s8599_s10 + $0x38] sm:$0xff] %vm9102_vm11, %v5533_v7  ;;  %v5645_v8 = vpop.permute.xlu0 %5644 }
 0x7aa   : > { %5660 = vst.msk [vmem:[%s8599_s10 + $0x28] sm:$0xff] %vm9103_vm12, %v5645_v8 }
 0x7ac   : > { %v5647_v9 = vpop.permute.xlu1 %5646 }
 0x7ad   : > { %5661 = vst.msk [vmem:[%s8599_s10 + $0x38] sm:$0xff] %vm9104_vm15, %v5647_v9  ;;  %v5535_v4 = vpop.permute.xlu0 %5534 }
 0x7ae   : > { %5548 = vst.msk [vmem:[%s8599_s10 + $0x48] sm:$0xff] %vm9105_vm13, %v5535_v4 }
 0x7b0   : > { %v5537_v10 = vpop.permute.xlu1 %5536 }
 0x7b1   : > { %5549 = vst.msk [vmem:[%s8599_s10 + $0x58] sm:$0xff] %vm9106_vm14, %v5537_v10  ;;  %v5649_v26 = vpop.permute.xlu0 %5648 }
 0x7b2   : > { %5662 = vst.msk [vmem:[%s8599_s10 + $0x48] sm:$0xff] %vm9107_vm0, %v5649_v26 }
 0x7b4   : > { %v5651_v12 = vpop.permute.xlu1 %5650 }
 0x7b5   : > { %5663 = vst.msk [vmem:[%s8599_s10 + $0x58] sm:$0xff] %vm9108_vm10, %v5651_v12  ;;  %v5755_v14 = vpop.permute.xlu0 %5754 }
 0x7b6   : > { %5772 = vst.msk [vmem:[%s8599_s10 + $0x8] sm:$0xff] %vm9109_vm5, %v5755_v14 }
 0x7b8   : > { %v5757_v15 = vpop.permute.xlu1 %5756 }
 0x7b9   : > { %5773 = vst.msk [vmem:[%s8599_s10 + $0x18] sm:$0xff] %vm9110_vm4, %v5757_v15 }
 0x7ba   : > { %v5759_v16 = vpop.permute.xlu0 %5758 }
 0x7bb   : > { %5774 = vst.msk [vmem:[%s8599_s10 + $0x28] sm:$0xff] %vm9111_vm1, %v5759_v16 }
 0x7bc   : > { %v5761_v11 = vpop.permute.xlu1 %5760 }
 0x7bd   : > { %5775 = vst.msk [vmem:[%s8599_s10 + $0x38] sm:$0xff] %vm9112_vm9, %v5761_v11 }
 0x7c2   : > { %v5763_v55 = vpop.permute.xlu0 %5762 }
 0x7c3   : > { %5776 = vst.msk [vmem:[%s8599_s10 + $0x48] sm:$0xff] %vm9113_vm7, %v5763_v55 }
 0x7c4   : > { %v5765_v17 = vpop.permute.xlu1 %5764 }
 0x7c5   : > { %5777 = vst.msk [vmem:[%s8599_s10 + $0x58] sm:$0xff] %vm9114_vm2, %v5765_v17 }
 0x7c6   : > { %7316 = shalt.err (!%p7313_p3)
}
 0x7c7   : > { %s7317_s15 = scalar_lea.hbm %s8951_s9, 1536  ;;  %s7321_s17 = scalar_lea.hbm %s9007_s6, 3072 }
 0x7c8   : > { %p7318_p4 = scmp.ne.s32.totalorder %s8951_s9, %s7317_s15  ;;  %p7322_p9 = scmp.lt.u32.totalorder %s8951_s9, %s9007_s6 }
 0x7c9   : > { %p7323_p10 = scmp.lt.u32.totalorder %s7321_s17, %s7317_s15  ;;  %p7325_p12 = scmp.lt.u32.totalorder %s7317_s15, %s8951_s9 }
 0x7ca   : > { %p7319_p7 = pnand %p7318_p4, %p7453_p5 }
 0x7cb   : > { %p7324_p11 = por %p7323_p10, %p7322_p9 }
 0x7cc   : > { %p7320_p8 = pneg %p7319_p7 }
 0x7cd   : > { %p7326_p13 = por %p7325_p12, %p7324_p11 }
 0x7cf   : > { %p7327_p0 = pnand %p7326_p13, %p7320_p8 }
 0x7d1   : > { %7330 = shalt.err (!%p7327_p0)
}
 0x7d2   : > { %s7379_s28 = smov 256  }
 0x7d3   : > { %7135 = dma.vmem_to_hbm [thread:$0]  (%p7453_p5), %s8953_s26, 1536, %s8951_s9, %s8959_s11, %s7379_s28, %s7379_s28, %s9030_s19  }
 0x7d4 PF: > { %p7141_p1 = scmp.ge.s32.totalorder %s7365_s24, 2  ;;  %s5807_s29 = sand.u32 1, %s7353_s21  }
 0x7d5   : > { %s5808_s25 = scalar_lea.sflag [#allocation5], %s5807_s29 }
 0x7d6   : > { %p7138_p2 = pnand %p7141_p1, %p7457_p6 }
 0x7d8   : > { %7348 = dma.done.wait (!%p7138_p2), %s5808_s25, 1536  }
 0x7d9   : > { %7350 = vsyncadd (!%p7138_p2), %s5808_s25, 4294965760  ;;  %p16_p3 = scmp.ge.s32.totalorder %s7440_s27, 4   ;;  %s9115_s21 = smov %s7357_s22 }
 0x7da   : > { %s9116_s22 = smov %s7361_s23  ;;  %s9117_s23 = smov %s7451_s30 }
 0x7db   : > { %s9118_s24 = smov %s7440_s27  ;;  %18 = sbr.rel (!%p16_p3) target bundleno = 3 (0x3), region = 94 }
 0x7e2   :  { %5813 = vsyncpa [#allocation5], 1 }
 0x7e3   :  { %5815 = vsyncpa [#allocation5 + $0x1], 1 }

</bundles_post_ra>
